<compile_context>
chip_gen: v7x
topology: tpu7x:2x2x1
jax: 0.10.0
libtpu: 0.0.40
codegen_flags: <defaults>
</compile_context>

<pallas_src>
import jax
import jax.numpy as jnp
from jax.experimental import pallas as pl
from jax.experimental.pallas import tpu as pltpu


# ----------------------- fused conv3x3 (+BN-affine+ReLU prologue, +stats) ----
def _make_fused_conv_kernel(H, W, Cin, Cout, *, prologue, emit_stats, pad_output):
    """Builds the fused kernel for one conv layer (static config via closure)."""

    def kernel(*refs):
        if prologue:
            x_ref, w_ref, s_ref, b_ref = refs[0], refs[1], refs[2], refs[3]
            out_refs = refs[4:]
        else:
            x_ref, w_ref = refs[0], refs[1]
            out_refs = refs[2:]
        o_ref = out_refs[0]

        x = x_ref[0]                                   # (H+2, W+2, Cin), bf16, zero halo

        if prologue:
            # previous layer's BN-affine + ReLU, fused here (f32 VPU math).
            xf = x.astype(jnp.float32)
            s = s_ref[...].astype(jnp.float32)         # (1, 1, Cin)
            b = b_ref[...].astype(jnp.float32)
            xt = jnp.maximum(xf * s + b, 0.0)
            # Reference model pads AFTER BN+ReLU, so the 1-pixel halo must stay 0.
            row = jax.lax.broadcasted_iota(jnp.int32, (H + 2, W + 2, Cin), 0)
            col = jax.lax.broadcasted_iota(jnp.int32, (H + 2, W + 2, Cin), 1)
            interior = (row >= 1) & (row <= H) & (col >= 1) & (col <= W)
            xt = jnp.where(interior, xt, 0.0).astype(jnp.bfloat16)
        else:
            xt = x                                      # raw (layer 0) input

        # im2col: pack the 9 taps into the contraction dim -> one MXU matmul, K=9*Cin.
        taps = [xt[dy:dy + H, dx:dx + W, :] for dy in range(3) for dx in range(3)]
        patch = jnp.concatenate(taps, axis=-1).reshape(H * W, 9 * Cin)
        acc = jnp.dot(patch, w_ref[...],
                      preferred_element_type=jnp.float32)            # (H*W, Cout) f32

        if emit_stats:
            # per-batch-element partial BN statistics of the *raw* conv output (f32)
            sum_ref, sq_ref = out_refs[1], out_refs[2]
            sum_ref[...] = jnp.sum(acc, axis=0).reshape(1, 1, Cout)
            sq_ref[...] = jnp.sum(acc * acc, axis=0).reshape(1, 1, Cout)

        y = acc.reshape(H, W, Cout).astype(o_ref.dtype)
        if pad_output:
            # store into a pre-padded activation so the next layer needs no jnp.pad
            o_ref[...] = jnp.zeros_like(o_ref)
            o_ref[0, 1:H + 1, 1:W + 1, :] = y
        else:
            o_ref[0] = y

    return kernel


def fused_conv3x3(x_pad, w, scale=None, shift=None, *, emit_stats=False, pad_output=True):
    """One fused layer.

    x_pad : (N, H+2, W+2, Cin) bf16, zero halo.
    w     : (9*Cin, Cout) bf16, taps ordered (dy, dx, cin) row-major.
    scale/shift : (Cin,) f32 or None. If given, relu(x*scale+shift) is applied to
                  the interior of x before the conv (previous layer's BN+ReLU).
    Returns y_pad (N, H+2, W+2, Cout) bf16 (or unpadded (N,H,W,Cout) if
    pad_output=False) and, if emit_stats, per-batch (N,1,Cout) f32 sum / sumsq.
    """
    N, Hp, Wp, Cin = x_pad.shape
    H, W = Hp - 2, Wp - 2
    Cout = w.shape[-1]
    assert w.shape[0] == 9 * Cin
    prologue = scale is not None

    kernel = _make_fused_conv_kernel(H, W, Cin, Cout, prologue=prologue,
                                     emit_stats=emit_stats, pad_output=pad_output)

    in_specs = [
        pl.BlockSpec((1, Hp, Wp, Cin), lambda n: (n, 0, 0, 0)),
        pl.BlockSpec((9 * Cin, Cout), lambda n: (0, 0)),
    ]
    inputs = [x_pad.astype(jnp.bfloat16), w.astype(jnp.bfloat16)]
    if prologue:
        in_specs += [
            pl.BlockSpec((1, 1, Cin), lambda n: (0, 0, 0)),
            pl.BlockSpec((1, 1, Cin), lambda n: (0, 0, 0)),
        ]
        inputs += [scale.reshape(1, 1, Cin).astype(jnp.float32),
                   shift.reshape(1, 1, Cin).astype(jnp.float32)]

    Ho, Wo = (H + 2, W + 2) if pad_output else (H, W)
    out_shape = [jax.ShapeDtypeStruct((N, Ho, Wo, Cout), jnp.bfloat16)]
    out_specs = [pl.BlockSpec((1, Ho, Wo, Cout), lambda n: (n, 0, 0, 0))]
    if emit_stats:
        out_shape += [jax.ShapeDtypeStruct((N, 1, Cout), jnp.float32),
                      jax.ShapeDtypeStruct((N, 1, Cout), jnp.float32)]
        out_specs += [pl.BlockSpec((1, 1, Cout), lambda n: (n, 0, 0)),
                      pl.BlockSpec((1, 1, Cout), lambda n: (n, 0, 0))]

    res = pl.pallas_call(
        kernel,
        out_shape=tuple(out_shape),
        grid_spec=pltpu.PrefetchScalarGridSpec(
            num_scalar_prefetch=0,
            grid=(N,),
            in_specs=in_specs,
            out_specs=tuple(out_specs),
        ),
        compiler_params=pltpu.CompilerParams(
            dimension_semantics=("parallel",)),
    )(*inputs)

    if emit_stats:
        return res[0], res[1], res[2]
    return res[0]


# ------------------------------ parameter init -------------------------------
def init_generator_params(key, channels=1, features=32, num_layers=4):
    """Synthetic init matching the nn.Module shapes.

    Weights are stored as (9*Cin, Cout), taps row-major (dy, dx, cin).
    NOTE: real PyTorch Conv2d weights are (Cout, Cin, 3, 3); permute with
    w.transpose(2, 3, 1, 0).reshape(9*Cin, Cout) when porting checkpoints.
    BatchNorm: gamma=1, beta=0 (PyTorch defaults)."""
    keys = jax.random.split(key, num_layers)
    io = ([(channels, features)]
          + [(features, features)] * (num_layers - 2)
          + [(features, channels)])
    ws = []
    for k, (cin, cout) in zip(keys, io):
        w = jax.random.normal(k, (3, 3, cin, cout), jnp.float32) * 0.05
        ws.append(w.reshape(9 * cin, cout).astype(jnp.bfloat16))
    gammas = [jnp.ones((features,), jnp.float32) for _ in range(num_layers - 2)]
    betas = [jnp.zeros((features,), jnp.float32) for _ in range(num_layers - 2)]
    return ws, gammas, betas


# --------------------------------- forward -----------------------------------
def generator_forward(x_nchw, params, eps=1e-5):
    ws, gammas, betas = params
    L = len(ws)

    x = jnp.transpose(x_nchw, (0, 2, 3, 1))                    # NCHW -> NHWC
    N, H, W, _ = x.shape
    # only external pad in the whole network (1-channel input, tiny)
    xp = jnp.pad(x, ((0, 0), (1, 1), (1, 1), (0, 0))).astype(jnp.bfloat16)

    # layer 0: Conv (its ReLU is fused into layer 1's prologue)
    y = fused_conv3x3(xp, ws[0], emit_stats=False, pad_output=True)

    feat = ws[0].shape[-1]
    scale = jnp.ones((feat,), jnp.float32)                     # plain-ReLU prologue
    shift = jnp.zeros((feat,), jnp.float32)
    count = float(N * H * W)

    # middle layers: (prev BN+ReLU) -> Conv -> emit batch stats
    for i in range(1, L - 1):
        y, sums, sqs = fused_conv3x3(y, ws[i], scale, shift,
                                     emit_stats=True, pad_output=True)
        mean = jnp.sum(sums, axis=(0, 1)) / count
        var = jnp.maximum(jnp.sum(sqs, axis=(0, 1)) / count - mean * mean, 0.0)
        scale = gammas[i - 1] * jax.lax.rsqrt(var + eps)
        shift = betas[i - 1] - mean * scale
        # TODO(synk): running_mean/running_var updates are a training-only side
        # effect and do not affect this forward output; not materialized here.

    # last layer: (prev BN+ReLU) -> Conv, unpadded output
    y = fused_conv3x3(y, ws[L - 1], scale, shift, emit_stats=False, pad_output=False)
    return jnp.transpose(y.astype(jnp.float32), (0, 3, 1, 2))  # back to NCHW


if __name__ == "__main__":
    # Small, forward-consistent shapes: batch=2, channels=1, 16x16 images,
    # features=32, num_layers=4 (module defaults 128/16 are just larger).
    N, C, H, W = 2, 1, 16, 16
    FEATURES, NUM_LAYERS = 32, 4

    key = jax.random.PRNGKey(0)
    kx, kp = jax.random.split(key)
    x = jax.random.normal(kx, (N, C, H, W), jnp.float32)       # PyTorch-style NCHW

    params = init_generator_params(kp, channels=C, features=FEATURES,
                                   num_layers=NUM_LAYERS)

    fwd = jax.jit(generator_forward)
    out = jax.block_until_ready(fwd(x, params))
    assert out.shape == (N, C, H, W), out.shape
    assert bool(jnp.all(jnp.isfinite(out)))
    print("KERNEL_OK")
</pallas_src>

<mosaic_0001>
module attributes {stable_mosaic.version = 11 : i64} {
  func.func @kernel(%arg0: i32, %arg1: memref<1x18x18x1xbf16, #tpu.memory_space<vmem>>, %arg2: memref<9x32xbf16, #tpu.memory_space<vmem>>, %arg3: memref<1x18x18x32xbf16, #tpu.memory_space<vmem>>) attributes {dimension_semantics = [#tpu.dimension_semantics<parallel>], iteration_bounds = array<i64: 2>, scalar_prefetch = 0 : i64, scratch_operands = 0 : i64, tpu.core_type = #tpu.core_type<tc>, window_params = [{transform_indices = @transform_0, window_bounds = array<i64: 1, 18, 18, 1>}, {pipeline_mode = #tpu.pipeline_mode<synchronous>, transform_indices = @transform_1, window_bounds = array<i64: 9, 32>}, {transform_indices = @transform_2, window_bounds = array<i64: 1, 18, 18, 32>}]} {
    %c0 = arith.constant 0 : index
    %c0_0 = arith.constant 0 : index
    %c0_1 = arith.constant 0 : index
    %c0_2 = arith.constant 0 : index
    %0 = vector.load %arg1[%c0, %c0_0, %c0_1, %c0_2] : memref<1x18x18x1xbf16, #tpu.memory_space<vmem>>, vector<1x18x18x1xbf16>
    %1 = vector.shape_cast %0 : vector<1x18x18x1xbf16> to vector<18x18x1xbf16>
    %2 = vector.extract_strided_slice %1 {offsets = [0, 0, 0], sizes = [16, 16, 1], strides = [1, 1, 1]} : vector<18x18x1xbf16> to vector<16x16x1xbf16>
    %3 = vector.extract_strided_slice %1 {offsets = [0, 1, 0], sizes = [16, 16, 1], strides = [1, 1, 1]} : vector<18x18x1xbf16> to vector<16x16x1xbf16>
    %4 = vector.extract_strided_slice %1 {offsets = [0, 2, 0], sizes = [16, 16, 1], strides = [1, 1, 1]} : vector<18x18x1xbf16> to vector<16x16x1xbf16>
    %5 = vector.extract_strided_slice %1 {offsets = [1, 0, 0], sizes = [16, 16, 1], strides = [1, 1, 1]} : vector<18x18x1xbf16> to vector<16x16x1xbf16>
    %6 = vector.extract_strided_slice %1 {offsets = [1, 1, 0], sizes = [16, 16, 1], strides = [1, 1, 1]} : vector<18x18x1xbf16> to vector<16x16x1xbf16>
    %7 = vector.extract_strided_slice %1 {offsets = [1, 2, 0], sizes = [16, 16, 1], strides = [1, 1, 1]} : vector<18x18x1xbf16> to vector<16x16x1xbf16>
    %8 = vector.extract_strided_slice %1 {offsets = [2, 0, 0], sizes = [16, 16, 1], strides = [1, 1, 1]} : vector<18x18x1xbf16> to vector<16x16x1xbf16>
    %9 = vector.extract_strided_slice %1 {offsets = [2, 1, 0], sizes = [16, 16, 1], strides = [1, 1, 1]} : vector<18x18x1xbf16> to vector<16x16x1xbf16>
    %10 = vector.extract_strided_slice %1 {offsets = [2, 2, 0], sizes = [16, 16, 1], strides = [1, 1, 1]} : vector<18x18x1xbf16> to vector<16x16x1xbf16>
    %11 = tpu.concatenate %2, %3, %4, %5, %6, %7, %8, %9, %10 in 2 : vector<16x16x1xbf16>, vector<16x16x1xbf16>, vector<16x16x1xbf16>, vector<16x16x1xbf16>, vector<16x16x1xbf16>, vector<16x16x1xbf16>, vector<16x16x1xbf16>, vector<16x16x1xbf16>, vector<16x16x1xbf16> -> vector<16x16x9xbf16>
    %12 = vector.shape_cast %11 : vector<16x16x9xbf16> to vector<256x9xbf16>
    %c0_3 = arith.constant 0 : index
    %c0_4 = arith.constant 0 : index
    %13 = vector.load %arg2[%c0_3, %c0_4] : memref<9x32xbf16, #tpu.memory_space<vmem>>, vector<9x32xbf16>
    %cst = arith.constant dense<0.000000e+00> : vector<256x32xf32>
    %14 = tpu.matmul %12, %13, %cst {dimension_numbers = #tpu.dot_dimension_numbers<[1], [0], [0], [1], [0, 0, 1, 1], [], []>} : vector<256x9xbf16>, vector<9x32xbf16>, vector<256x32xf32> -> vector<256x32xf32>
    %15 = vector.shape_cast %14 : vector<256x32xf32> to vector<16x16x32xf32>
    %16 = arith.truncf %15 : vector<16x16x32xf32> to vector<16x16x32xbf16>
    %cst_5 = arith.constant 0.000000e+00 : bf16
    %17 = vector.broadcast %cst_5 : bf16 to vector<1x18x18x32xbf16>
    %c0_6 = arith.constant 0 : index
    %c0_7 = arith.constant 0 : index
    %c0_8 = arith.constant 0 : index
    %c0_9 = arith.constant 0 : index
    %18 = vector.load %arg3[%c0_6, %c0_7, %c0_8, %c0_9] : memref<1x18x18x32xbf16, #tpu.memory_space<vmem>>, vector<1x18x18x32xbf16>
    tpu.vector_store %arg3[%c0_6, %c0_7, %c0_8, %c0_9], %17 {strides = array<i32>} : memref<1x18x18x32xbf16, #tpu.memory_space<vmem>>, vector<1x18x18x32xbf16>,
    %c0_10 = arith.constant 0 : index
    %c1 = arith.constant 1 : index
    %c1_11 = arith.constant 1 : index
    %c0_12 = arith.constant 0 : index
    %19 = vector.load %arg3[%c0_10, %c1, %c1_11, %c0_12] : memref<1x18x18x32xbf16, #tpu.memory_space<vmem>>, vector<1x16x16x32xbf16>
    %20 = vector.shape_cast %19 : vector<1x16x16x32xbf16> to vector<16x16x32xbf16>
    %21 = vector.shape_cast %16 : vector<16x16x32xbf16> to vector<1x16x16x32xbf16>
    tpu.vector_store %arg3[%c0_10, %c1, %c1_11, %c0_12], %21 {strides = array<i32>} : memref<1x18x18x32xbf16, #tpu.memory_space<vmem>>, vector<1x16x16x32xbf16>,
    return
  }
  func.func @transform_0(%arg0: i32) -> (i32, i32, i32, i32) {
    %c0_i32 = arith.constant 0 : i32
    %c0_i32_0 = arith.constant 0 : i32
    %c0_i32_1 = arith.constant 0 : i32
    %c0_i32_2 = arith.constant 0 : i32
    return %arg0, %c0_i32, %c0_i32_0, %c0_i32_1 : i32, i32, i32, i32
  }
  func.func @transform_1(%arg0: i32) -> (i32, i32) {
    %c0_i32 = arith.constant 0 : i32
    %c0_i32_0 = arith.constant 0 : i32
    %c0_i32_1 = arith.constant 0 : i32
    return %c0_i32, %c0_i32_0 : i32, i32
  }
  func.func @transform_2(%arg0: i32) -> (i32, i32, i32, i32) {
    %c0_i32 = arith.constant 0 : i32
    %c0_i32_0 = arith.constant 0 : i32
    %c0_i32_1 = arith.constant 0 : i32
    %c0_i32_2 = arith.constant 0 : i32
    return %arg0, %c0_i32, %c0_i32_0, %c0_i32_1 : i32, i32, i32, i32
  }
}

module attributes {stable_mosaic.version = 11 : i64} {
  func.func @kernel(%arg0: i32, %arg1: memref<1x18x18x32xbf16, #tpu.memory_space<vmem>>, %arg2: memref<288x32xbf16, #tpu.memory_space<vmem>>, %arg3: memref<1x1x32xf32, #tpu.memory_space<vmem>>, %arg4: memref<1x1x32xf32, #tpu.memory_space<vmem>>, %arg5: memref<1x18x18x32xbf16, #tpu.memory_space<vmem>>, %arg6: memref<1x1x32xf32, #tpu.memory_space<vmem>>, %arg7: memref<1x1x32xf32, #tpu.memory_space<vmem>>) attributes {dimension_semantics = [#tpu.dimension_semantics<parallel>], iteration_bounds = array<i64: 2>, scalar_prefetch = 0 : i64, scratch_operands = 0 : i64, tpu.core_type = #tpu.core_type<tc>, window_params = [{transform_indices = @transform_0, window_bounds = array<i64: 1, 18, 18, 32>}, {pipeline_mode = #tpu.pipeline_mode<synchronous>, transform_indices = @transform_1, window_bounds = array<i64: 288, 32>}, {pipeline_mode = #tpu.pipeline_mode<synchronous>, transform_indices = @transform_2, window_bounds = array<i64: 1, 1, 32>}, {pipeline_mode = #tpu.pipeline_mode<synchronous>, transform_indices = @transform_3, window_bounds = array<i64: 1, 1, 32>}, {transform_indices = @transform_4, window_bounds = array<i64: 1, 18, 18, 32>}, {transform_indices = @transform_5, window_bounds = array<i64: 1, 1, 32>}, {transform_indices = @transform_6, window_bounds = array<i64: 1, 1, 32>}]} {
    %c0 = arith.constant 0 : index
    %c0_0 = arith.constant 0 : index
    %c0_1 = arith.constant 0 : index
    %c0_2 = arith.constant 0 : index
    %0 = vector.load %arg1[%c0, %c0_0, %c0_1, %c0_2] : memref<1x18x18x32xbf16, #tpu.memory_space<vmem>>, vector<1x18x18x32xbf16>
    %1 = vector.shape_cast %0 : vector<1x18x18x32xbf16> to vector<18x18x32xbf16>
    %2 = arith.extf %1 : vector<18x18x32xbf16> to vector<18x18x32xf32>
    %c0_3 = arith.constant 0 : index
    %c0_4 = arith.constant 0 : index
    %c0_5 = arith.constant 0 : index
    %3 = vector.load %arg3[%c0_3, %c0_4, %c0_5] : memref<1x1x32xf32, #tpu.memory_space<vmem>>, vector<1x1x32xf32>
    %c0_6 = arith.constant 0 : index
    %c0_7 = arith.constant 0 : index
    %c0_8 = arith.constant 0 : index
    %4 = vector.load %arg4[%c0_6, %c0_7, %c0_8] : memref<1x1x32xf32, #tpu.memory_space<vmem>>, vector<1x1x32xf32>
    %5 = vector.broadcast %3 : vector<1x1x32xf32> to vector<18x18x32xf32>
    %6 = arith.mulf %2, %5 : vector<18x18x32xf32>
    %7 = vector.broadcast %4 : vector<1x1x32xf32> to vector<18x18x32xf32>
    %8 = arith.addf %6, %7 : vector<18x18x32xf32>
    %cst = arith.constant 0.000000e+00 : f32
    %9 = vector.broadcast %cst : f32 to vector<18x18x32xf32>
    %10 = arith.maximumf %8, %9 : vector<18x18x32xf32>
    %11 = tpu.iota {dimensions = array<i32: 0>} : vector<18x18x32xi32>
    %12 = tpu.iota {dimensions = array<i32: 1>} : vector<18x18x32xi32>
    %c1_i32 = arith.constant 1 : i32
    %13 = vector.broadcast %c1_i32 : i32 to vector<18x18x32xi32>
    %14 = arith.cmpi sge, %11, %13 : vector<18x18x32xi32>
    %c16_i32 = arith.constant 16 : i32
    %15 = vector.broadcast %c16_i32 : i32 to vector<18x18x32xi32>
    %16 = arith.cmpi sle, %11, %15 : vector<18x18x32xi32>
    %17 = arith.andi %14, %16 : vector<18x18x32xi1>
    %c1_i32_9 = arith.constant 1 : i32
    %18 = vector.broadcast %c1_i32_9 : i32 to vector<18x18x32xi32>
    %19 = arith.cmpi sge, %12, %18 : vector<18x18x32xi32>
    %20 = arith.andi %17, %19 : vector<18x18x32xi1>
    %c16_i32_10 = arith.constant 16 : i32
    %21 = vector.broadcast %c16_i32_10 : i32 to vector<18x18x32xi32>
    %22 = arith.cmpi sle, %12, %21 : vector<18x18x32xi32>
    %23 = arith.andi %20, %22 : vector<18x18x32xi1>
    %cst_11 = arith.constant 0.000000e+00 : f32
    %24 = vector.broadcast %cst_11 : f32 to vector<18x18x32xf32>
    %25 = arith.select %23, %10, %24 : vector<18x18x32xi1>, vector<18x18x32xf32>
    %26 = arith.truncf %25 : vector<18x18x32xf32> to vector<18x18x32xbf16>
    %27 = vector.extract_strided_slice %26 {offsets = [0, 0, 0], sizes = [16, 16, 32], strides = [1, 1, 1]} : vector<18x18x32xbf16> to vector<16x16x32xbf16>
    %28 = vector.extract_strided_slice %26 {offsets = [0, 1, 0], sizes = [16, 16, 32], strides = [1, 1, 1]} : vector<18x18x32xbf16> to vector<16x16x32xbf16>
    %29 = vector.extract_strided_slice %26 {offsets = [0, 2, 0], sizes = [16, 16, 32], strides = [1, 1, 1]} : vector<18x18x32xbf16> to vector<16x16x32xbf16>
    %30 = vector.extract_strided_slice %26 {offsets = [1, 0, 0], sizes = [16, 16, 32], strides = [1, 1, 1]} : vector<18x18x32xbf16> to vector<16x16x32xbf16>
    %31 = vector.extract_strided_slice %26 {offsets = [1, 1, 0], sizes = [16, 16, 32], strides = [1, 1, 1]} : vector<18x18x32xbf16> to vector<16x16x32xbf16>
    %32 = vector.extract_strided_slice %26 {offsets = [1, 2, 0], sizes = [16, 16, 32], strides = [1, 1, 1]} : vector<18x18x32xbf16> to vector<16x16x32xbf16>
    %33 = vector.extract_strided_slice %26 {offsets = [2, 0, 0], sizes = [16, 16, 32], strides = [1, 1, 1]} : vector<18x18x32xbf16> to vector<16x16x32xbf16>
    %34 = vector.extract_strided_slice %26 {offsets = [2, 1, 0], sizes = [16, 16, 32], strides = [1, 1, 1]} : vector<18x18x32xbf16> to vector<16x16x32xbf16>
    %35 = vector.extract_strided_slice %26 {offsets = [2, 2, 0], sizes = [16, 16, 32], strides = [1, 1, 1]} : vector<18x18x32xbf16> to vector<16x16x32xbf16>
    %36 = tpu.concatenate %27, %28, %29, %30, %31, %32, %33, %34, %35 in 2 : vector<16x16x32xbf16>, vector<16x16x32xbf16>, vector<16x16x32xbf16>, vector<16x16x32xbf16>, vector<16x16x32xbf16>, vector<16x16x32xbf16>, vector<16x16x32xbf16>, vector<16x16x32xbf16>, vector<16x16x32xbf16> -> vector<16x16x288xbf16>
    %37 = vector.shape_cast %36 : vector<16x16x288xbf16> to vector<256x288xbf16>
    %c0_12 = arith.constant 0 : index
    %c0_13 = arith.constant 0 : index
    %38 = vector.load %arg2[%c0_12, %c0_13] : memref<288x32xbf16, #tpu.memory_space<vmem>>, vector<288x32xbf16>
    %cst_14 = arith.constant dense<0.000000e+00> : vector<256x32xf32>
    %39 = tpu.matmul %37, %38, %cst_14 {dimension_numbers = #tpu.dot_dimension_numbers<[1], [0], [0], [1], [0, 0, 1, 1], [], []>} : vector<256x288xbf16>, vector<288x32xbf16>, vector<256x32xf32> -> vector<256x32xf32>
    %cst_15 = arith.constant dense<0.000000e+00> : vector<32xf32>
    %40 = vector.multi_reduction <add>, %39, %cst_15 [0] : vector<256x32xf32> to vector<32xf32>
    %41 = vector.shape_cast %40 : vector<32xf32> to vector<1x1x32xf32>
    %c0_16 = arith.constant 0 : index
    %c0_17 = arith.constant 0 : index
    %c0_18 = arith.constant 0 : index
    %42 = vector.load %arg6[%c0_16, %c0_17, %c0_18] : memref<1x1x32xf32, #tpu.memory_space<vmem>>, vector<1x1x32xf32>
    tpu.vector_store %arg6[%c0_16, %c0_17, %c0_18], %41 {strides = array<i32>} : memref<1x1x32xf32, #tpu.memory_space<vmem>>, vector<1x1x32xf32>,
    %43 = arith.mulf %39, %39 : vector<256x32xf32>
    %cst_19 = arith.constant dense<0.000000e+00> : vector<32xf32>
    %44 = vector.multi_reduction <add>, %43, %cst_19 [0] : vector<256x32xf32> to vector<32xf32>
    %45 = vector.shape_cast %44 : vector<32xf32> to vector<1x1x32xf32>
    %c0_20 = arith.constant 0 : index
    %c0_21 = arith.constant 0 : index
    %c0_22 = arith.constant 0 : index
    %46 = vector.load %arg7[%c0_20, %c0_21, %c0_22] : memref<1x1x32xf32, #tpu.memory_space<vmem>>, vector<1x1x32xf32>
    tpu.vector_store %arg7[%c0_20, %c0_21, %c0_22], %45 {strides = array<i32>} : memref<1x1x32xf32, #tpu.memory_space<vmem>>, vector<1x1x32xf32>,
    %47 = vector.shape_cast %39 : vector<256x32xf32> to vector<16x16x32xf32>
    %48 = arith.truncf %47 : vector<16x16x32xf32> to vector<16x16x32xbf16>
    %cst_23 = arith.constant 0.000000e+00 : bf16
    %49 = vector.broadcast %cst_23 : bf16 to vector<1x18x18x32xbf16>
    %c0_24 = arith.constant 0 : index
    %c0_25 = arith.constant 0 : index
    %c0_26 = arith.constant 0 : index
    %c0_27 = arith.constant 0 : index
    %50 = vector.load %arg5[%c0_24, %c0_25, %c0_26, %c0_27] : memref<1x18x18x32xbf16, #tpu.memory_space<vmem>>, vector<1x18x18x32xbf16>
    tpu.vector_store %arg5[%c0_24, %c0_25, %c0_26, %c0_27], %49 {strides = array<i32>} : memref<1x18x18x32xbf16, #tpu.memory_space<vmem>>, vector<1x18x18x32xbf16>,
    %c0_28 = arith.constant 0 : index
    %c1 = arith.constant 1 : index
    %c1_29 = arith.constant 1 : index
    %c0_30 = arith.constant 0 : index
    %51 = vector.load %arg5[%c0_28, %c1, %c1_29, %c0_30] : memref<1x18x18x32xbf16, #tpu.memory_space<vmem>>, vector<1x16x16x32xbf16>
    %52 = vector.shape_cast %51 : vector<1x16x16x32xbf16> to vector<16x16x32xbf16>
    %53 = vector.shape_cast %48 : vector<16x16x32xbf16> to vector<1x16x16x32xbf16>
    tpu.vector_store %arg5[%c0_28, %c1, %c1_29, %c0_30], %53 {strides = array<i32>} : memref<1x18x18x32xbf16, #tpu.memory_space<vmem>>, vector<1x16x16x32xbf16>,
    return
  }
  func.func @transform_0(%arg0: i32) -> (i32, i32, i32, i32) {
    %c0_i32 = arith.constant 0 : i32
    %c0_i32_0 = arith.constant 0 : i32
    %c0_i32_1 = arith.constant 0 : i32
    %c0_i32_2 = arith.constant 0 : i32
    return %arg0, %c0_i32, %c0_i32_0, %c0_i32_1 : i32, i32, i32, i32
  }
  func.func @transform_1(%arg0: i32) -> (i32, i32) {
    %c0_i32 = arith.constant 0 : i32
    %c0_i32_0 = arith.constant 0 : i32
    %c0_i32_1 = arith.constant 0 : i32
    return %c0_i32, %c0_i32_0 : i32, i32
  }
  func.func @transform_2(%arg0: i32) -> (i32, i32, i32) {
    %c0_i32 = arith.constant 0 : i32
    %c0_i32_0 = arith.constant 0 : i32
    %c0_i32_1 = arith.constant 0 : i32
    %c0_i32_2 = arith.constant 0 : i32
    return %c0_i32, %c0_i32_0, %c0_i32_1 : i32, i32, i32
  }
  func.func @transform_3(%arg0: i32) -> (i32, i32, i32) {
    %c0_i32 = arith.constant 0 : i32
    %c0_i32_0 = arith.constant 0 : i32
    %c0_i32_1 = arith.constant 0 : i32
    %c0_i32_2 = arith.constant 0 : i32
    return %c0_i32, %c0_i32_0, %c0_i32_1 : i32, i32, i32
  }
  func.func @transform_4(%arg0: i32) -> (i32, i32, i32, i32) {
    %c0_i32 = arith.constant 0 : i32
    %c0_i32_0 = arith.constant 0 : i32
    %c0_i32_1 = arith.constant 0 : i32
    %c0_i32_2 = arith.constant 0 : i32
    return %arg0, %c0_i32, %c0_i32_0, %c0_i32_1 : i32, i32, i32, i32
  }
  func.func @transform_5(%arg0: i32) -> (i32, i32, i32) {
    %c0_i32 = arith.constant 0 : i32
    %c0_i32_0 = arith.constant 0 : i32
    %c0_i32_1 = arith.constant 0 : i32
    return %arg0, %c0_i32, %c0_i32_0 : i32, i32, i32
  }
  func.func @transform_6(%arg0: i32) -> (i32, i32, i32) {
    %c0_i32 = arith.constant 0 : i32
    %c0_i32_0 = arith.constant 0 : i32
    %c0_i32_1 = arith.constant 0 : i32
    return %arg0, %c0_i32, %c0_i32_0 : i32, i32, i32
  }
}

module attributes {stable_mosaic.version = 11 : i64} {
  func.func @kernel(%arg0: i32, %arg1: memref<1x18x18x32xbf16, #tpu.memory_space<vmem>>, %arg2: memref<288x1xbf16, #tpu.memory_space<vmem>>, %arg3: memref<1x1x32xf32, #tpu.memory_space<vmem>>, %arg4: memref<1x1x32xf32, #tpu.memory_space<vmem>>, %arg5: memref<1x16x16x1xbf16, #tpu.memory_space<vmem>>) attributes {dimension_semantics = [#tpu.dimension_semantics<parallel>], iteration_bounds = array<i64: 2>, scalar_prefetch = 0 : i64, scratch_operands = 0 : i64, tpu.core_type = #tpu.core_type<tc>, window_params = [{transform_indices = @transform_0, window_bounds = array<i64: 1, 18, 18, 32>}, {pipeline_mode = #tpu.pipeline_mode<synchronous>, transform_indices = @transform_1, window_bounds = array<i64: 288, 1>}, {pipeline_mode = #tpu.pipeline_mode<synchronous>, transform_indices = @transform_2, window_bounds = array<i64: 1, 1, 32>}, {pipeline_mode = #tpu.pipeline_mode<synchronous>, transform_indices = @transform_3, window_bounds = array<i64: 1, 1, 32>}, {transform_indices = @transform_4, window_bounds = array<i64: 1, 16, 16, 1>}]} {
    %c0 = arith.constant 0 : index
    %c0_0 = arith.constant 0 : index
    %c0_1 = arith.constant 0 : index
    %c0_2 = arith.constant 0 : index
    %0 = vector.load %arg1[%c0, %c0_0, %c0_1, %c0_2] : memref<1x18x18x32xbf16, #tpu.memory_space<vmem>>, vector<1x18x18x32xbf16>
    %1 = vector.shape_cast %0 : vector<1x18x18x32xbf16> to vector<18x18x32xbf16>
    %2 = arith.extf %1 : vector<18x18x32xbf16> to vector<18x18x32xf32>
    %c0_3 = arith.constant 0 : index
    %c0_4 = arith.constant 0 : index
    %c0_5 = arith.constant 0 : index
    %3 = vector.load %arg3[%c0_3, %c0_4, %c0_5] : memref<1x1x32xf32, #tpu.memory_space<vmem>>, vector<1x1x32xf32>
    %c0_6 = arith.constant 0 : index
    %c0_7 = arith.constant 0 : index
    %c0_8 = arith.constant 0 : index
    %4 = vector.load %arg4[%c0_6, %c0_7, %c0_8] : memref<1x1x32xf32, #tpu.memory_space<vmem>>, vector<1x1x32xf32>
    %5 = vector.broadcast %3 : vector<1x1x32xf32> to vector<18x18x32xf32>
    %6 = arith.mulf %2, %5 : vector<18x18x32xf32>
    %7 = vector.broadcast %4 : vector<1x1x32xf32> to vector<18x18x32xf32>
    %8 = arith.addf %6, %7 : vector<18x18x32xf32>
    %cst = arith.constant 0.000000e+00 : f32
    %9 = vector.broadcast %cst : f32 to vector<18x18x32xf32>
    %10 = arith.maximumf %8, %9 : vector<18x18x32xf32>
    %11 = tpu.iota {dimensions = array<i32: 0>} : vector<18x18x32xi32>
    %12 = tpu.iota {dimensions = array<i32: 1>} : vector<18x18x32xi32>
    %c1_i32 = arith.constant 1 : i32
    %13 = vector.broadcast %c1_i32 : i32 to vector<18x18x32xi32>
    %14 = arith.cmpi sge, %11, %13 : vector<18x18x32xi32>
    %c16_i32 = arith.constant 16 : i32
    %15 = vector.broadcast %c16_i32 : i32 to vector<18x18x32xi32>
    %16 = arith.cmpi sle, %11, %15 : vector<18x18x32xi32>
    %17 = arith.andi %14, %16 : vector<18x18x32xi1>
    %c1_i32_9 = arith.constant 1 : i32
    %18 = vector.broadcast %c1_i32_9 : i32 to vector<18x18x32xi32>
    %19 = arith.cmpi sge, %12, %18 : vector<18x18x32xi32>
    %20 = arith.andi %17, %19 : vector<18x18x32xi1>
    %c16_i32_10 = arith.constant 16 : i32
    %21 = vector.broadcast %c16_i32_10 : i32 to vector<18x18x32xi32>
    %22 = arith.cmpi sle, %12, %21 : vector<18x18x32xi32>
    %23 = arith.andi %20, %22 : vector<18x18x32xi1>
    %cst_11 = arith.constant 0.000000e+00 : f32
    %24 = vector.broadcast %cst_11 : f32 to vector<18x18x32xf32>
    %25 = arith.select %23, %10, %24 : vector<18x18x32xi1>, vector<18x18x32xf32>
    %26 = arith.truncf %25 : vector<18x18x32xf32> to vector<18x18x32xbf16>
    %27 = vector.extract_strided_slice %26 {offsets = [0, 0, 0], sizes = [16, 16, 32], strides = [1, 1, 1]} : vector<18x18x32xbf16> to vector<16x16x32xbf16>
    %28 = vector.extract_strided_slice %26 {offsets = [0, 1, 0], sizes = [16, 16, 32], strides = [1, 1, 1]} : vector<18x18x32xbf16> to vector<16x16x32xbf16>
    %29 = vector.extract_strided_slice %26 {offsets = [0, 2, 0], sizes = [16, 16, 32], strides = [1, 1, 1]} : vector<18x18x32xbf16> to vector<16x16x32xbf16>
    %30 = vector.extract_strided_slice %26 {offsets = [1, 0, 0], sizes = [16, 16, 32], strides = [1, 1, 1]} : vector<18x18x32xbf16> to vector<16x16x32xbf16>
    %31 = vector.extract_strided_slice %26 {offsets = [1, 1, 0], sizes = [16, 16, 32], strides = [1, 1, 1]} : vector<18x18x32xbf16> to vector<16x16x32xbf16>
    %32 = vector.extract_strided_slice %26 {offsets = [1, 2, 0], sizes = [16, 16, 32], strides = [1, 1, 1]} : vector<18x18x32xbf16> to vector<16x16x32xbf16>
    %33 = vector.extract_strided_slice %26 {offsets = [2, 0, 0], sizes = [16, 16, 32], strides = [1, 1, 1]} : vector<18x18x32xbf16> to vector<16x16x32xbf16>
    %34 = vector.extract_strided_slice %26 {offsets = [2, 1, 0], sizes = [16, 16, 32], strides = [1, 1, 1]} : vector<18x18x32xbf16> to vector<16x16x32xbf16>
    %35 = vector.extract_strided_slice %26 {offsets = [2, 2, 0], sizes = [16, 16, 32], strides = [1, 1, 1]} : vector<18x18x32xbf16> to vector<16x16x32xbf16>
    %36 = tpu.concatenate %27, %28, %29, %30, %31, %32, %33, %34, %35 in 2 : vector<16x16x32xbf16>, vector<16x16x32xbf16>, vector<16x16x32xbf16>, vector<16x16x32xbf16>, vector<16x16x32xbf16>, vector<16x16x32xbf16>, vector<16x16x32xbf16>, vector<16x16x32xbf16>, vector<16x16x32xbf16> -> vector<16x16x288xbf16>
    %37 = vector.shape_cast %36 : vector<16x16x288xbf16> to vector<256x288xbf16>
    %c0_12 = arith.constant 0 : index
    %c0_13 = arith.constant 0 : index
    %38 = vector.load %arg2[%c0_12, %c0_13] : memref<288x1xbf16, #tpu.memory_space<vmem>>, vector<288x1xbf16>
    %cst_14 = arith.constant dense<0.000000e+00> : vector<256x1xf32>
    %39 = tpu.matmul %37, %38, %cst_14 {dimension_numbers = #tpu.dot_dimension_numbers<[1], [0], [0], [1], [0, 0, 1, 1], [], []>} : vector<256x288xbf16>, vector<288x1xbf16>, vector<256x1xf32> -> vector<256x1xf32>
    %40 = vector.shape_cast %39 : vector<256x1xf32> to vector<16x16x1xf32>
    %41 = arith.truncf %40 : vector<16x16x1xf32> to vector<16x16x1xbf16>
    %c0_15 = arith.constant 0 : index
    %c0_16 = arith.constant 0 : index
    %c0_17 = arith.constant 0 : index
    %c0_18 = arith.constant 0 : index
    %42 = vector.load %arg5[%c0_15, %c0_16, %c0_17, %c0_18] : memref<1x16x16x1xbf16, #tpu.memory_space<vmem>>, vector<1x16x16x1xbf16>
    %43 = vector.shape_cast %42 : vector<1x16x16x1xbf16> to vector<16x16x1xbf16>
    %44 = vector.shape_cast %41 : vector<16x16x1xbf16> to vector<1x16x16x1xbf16>
    tpu.vector_store %arg5[%c0_15, %c0_16, %c0_17, %c0_18], %44 {strides = array<i32>} : memref<1x16x16x1xbf16, #tpu.memory_space<vmem>>, vector<1x16x16x1xbf16>,
    return
  }
  func.func @transform_0(%arg0: i32) -> (i32, i32, i32, i32) {
    %c0_i32 = arith.constant 0 : i32
    %c0_i32_0 = arith.constant 0 : i32
    %c0_i32_1 = arith.constant 0 : i32
    %c0_i32_2 = arith.constant 0 : i32
    return %arg0, %c0_i32, %c0_i32_0, %c0_i32_1 : i32, i32, i32, i32
  }
  func.func @transform_1(%arg0: i32) -> (i32, i32) {
    %c0_i32 = arith.constant 0 : i32
    %c0_i32_0 = arith.constant 0 : i32
    %c0_i32_1 = arith.constant 0 : i32
    return %c0_i32, %c0_i32_0 : i32, i32
  }
  func.func @transform_2(%arg0: i32) -> (i32, i32, i32) {
    %c0_i32 = arith.constant 0 : i32
    %c0_i32_0 = arith.constant 0 : i32
    %c0_i32_1 = arith.constant 0 : i32
    %c0_i32_2 = arith.constant 0 : i32
    return %c0_i32, %c0_i32_0, %c0_i32_1 : i32, i32, i32
  }
  func.func @transform_3(%arg0: i32) -> (i32, i32, i32) {
    %c0_i32 = arith.constant 0 : i32
    %c0_i32_0 = arith.constant 0 : i32
    %c0_i32_1 = arith.constant 0 : i32
    %c0_i32_2 = arith.constant 0 : i32
    return %c0_i32, %c0_i32_0, %c0_i32_1 : i32, i32, i32
  }
  func.func @transform_4(%arg0: i32) -> (i32, i32, i32, i32) {
    %c0_i32 = arith.constant 0 : i32
    %c0_i32_0 = arith.constant 0 : i32
    %c0_i32_1 = arith.constant 0 : i32
    %c0_i32_2 = arith.constant 0 : i32
    return %arg0, %c0_i32, %c0_i32_0, %c0_i32_1 : i32, i32, i32, i32
  }
}

</mosaic_0001>

<bundles_post_ra>
// kernel: generator_forward.4
= control target key start
LH: loop header
LB: loop body
LE: loop exit
PB: predicated region body
PF: predicated region fallthrough
CT: control target
= control target key end

     0   :  { %s2340_s9 = smov 0   ;;  %s3369_s0 = inlined_call_operand.vmem [shape: bf16[2,18,18,1], index: 0, kind: input, shape index: {}]   ;;  %s3370_s1 = inlined_call_operand.vmem [shape: bf16[9,32], index: 1, kind: input, shape index: {}]   ;;  %s3371_s2 = inlined_call_operand.vmem [shape: bf16[2,18,18,32], index: 2, kind: output, shape index: {}]  }
   0x1 LB: > { %s1991_s10 = sadd.s32 4294967295, %s2313_s9   ;;  %p1995_p0 = scmp.ge.s32.totalorder %s2313_s9, 1  ;;  %s2313_s9 = sphi %s2340_s9, %s12_s9  }
   0x2   : > { %p112_p1 = scmp.lt.s32.totalorder %s2313_s9, 3 }
   0x4   : > { %p113_p2 = pnand %p1995_p0, %p112_p1 }
   0x5   : > { %p134_p3 = scmp.lt.s32.totalorder (!%p113_p2), %s1991_s10, 1  ;;  %vm552_vm0 = vcmask (!%p113_p2), 1046528   ;;  %s2315_s15 = smov (!%p113_p2), 3   ;;  %vm327_vm1 = vsmask.f32 (!%p113_p2), 7424  ;;  %vm1175_vm2 = vcmask (!%p113_p2), 1043456  }
   0x6   : > { %116 = sbr.rel (%p113_p2) target bundleno = 618 (0x26a), region = 28  ;;  %s2316_s16 = smov (!%p113_p2), 2   ;;  %vm1176_vm3 = vcmask (!%p113_p2), 1044480   ;;  %vm871_vm4 = vcmask (!%p113_p2), 7168   ;;  %vm904_vm5 = vcmask (!%p113_p2), 15360   ;;  %vm970_vm6 = vcmask (!%p113_p2), 31744  }
   0x7   : > { %s2317_s17 = smov (!%p113_p2), 1   ;;  %s2318_s18 = smov (!%p113_p2), 4   ;;  %vm937_vm7 = vcmask (!%p113_p2), 23552   ;;  %vm1003_vm8 = vcmask (!%p113_p2), 39936   ;;  %vm1036_vm9 = vcmask (!%p113_p2), 48128   ;;  %vm1069_vm10 = vcmask (!%p113_p2), 56320  }
   0x8   : > { %s2319_s19 = smov (!%p113_p2), 5   ;;  %s2320_s20 = smov (!%p113_p2), 6   ;;  %vm1102_vm11 = vcmask (!%p113_p2), 64512   ;;  %vm1142_vm12 = vcmask (!%p113_p2), 72704   ;;  %vm1359_vm13 = vcmask (!%p113_p2), 257024   ;;  %vm1362_vm14 = vcmask (!%p113_p2), 253952  }
   0x9   : > { %s2322_s23 = smov (!%p113_p2), 7   ;;  %s2323_s24 = smov (!%p113_p2), 8   ;;  %vm1820_vm15 = vsmask.f32 (!%p113_p2), 7938 }
   0xd   : > { %s3379_s10 = smov (!%p134_p3, %s1991_s10), 1 }
   0xe   : > { %s2250_s11 = smul.u32 216, %s3379_s10 }
  0x10   : > { %s2356_s14 = scalar_lea.vmem %s3369_s0, %s2250_s11  ;;  %s2945_s27 = scalar_lea.vmem %s3371_s2, %s2250_s11 }
  0x11   : > { %v2359_v0 = vld [vmem:[%s2356_s14 + $0x6c] sm:$0xff]   ;;  %v2369_v2 = vld [vmem:[%s2356_s14 + $0x60] sm:$0xff]   ;;  %v2272_v3 = vld [vmem:[%s2356_s14 + $0x68] ss:$0 sps:$4 sm:$0x11]  }
  0x12   : > { %v2362_v1 = vld [vmem:[%s2356_s14 + $0xc] sm:$0xff]   ;;  %654 = vrot.lane.b32.xlu1 %v2359_v0, %s2315_s15  ;;  %v2373_v4 = vld [vmem:[%s2356_s14] sm:$0xff]   ;;  %v580_v5 = vrot.slane %v2359_v0, 1  ;;  %v577_v6 = vrot.slane %v2369_v2, 1  ;;  %v578_v7 = vrot.slane %v2272_v3, 1  ;;  %v437_v26 = vshrl.u32 %v2359_v0, 16 }
  0x13   : > { %638 = vrot.lane.b32.xlu0 %v2362_v1, %s2315_s15  ;;  %v2274_v8 = vld [vmem:[%s2356_s14 + $0x8] ss:$0 sps:$4 sm:$0x11]   ;;  %v556_v9 = vrot.slane %v2362_v1, 1  ;;  %v553_v10 = vrot.slane %v2373_v4, 1  ;;  %v341_v16 = vshrl.u32 %v2362_v1, 16 }
  0x14   : > { %v2275_v11 = vld [vmem:[%s2356_s14 + $0x74] ss:$0 sps:$4 sm:$0x11]   ;;  %v2382_v12 = vsel %vm552_vm0, %v577_v6, %v578_v7  ;;  %v554_v13 = vrot.slane %v2274_v8, 1  ;;  %v343_v17 = vshll.u32 %v2362_v1, 16  ;;  %v329_v18 = vshrl.u32 %v2373_v4, 16 }
  0x15   : > { %v2276_v14 = vld [vmem:[%s2356_s14 + $0x14] ss:$0 sps:$4 sm:$0x11]   ;;  %v581_v15 = vrot.slane %v2275_v11, 1  ;;  %v331_v22 = vshll.u32 %v2373_v4, 16  ;;  %v336_v25 = vshll.u32 %v2274_v8, 16 }
  0x16   : > { %617 = vrot.lane.b32.xlu1 %v2382_v12, %s2316_s16  ;;  %v555_v19 = vsel %vm552_vm0, %v553_v10, %v554_v13  ;;  %v557_v20 = vrot.slane %v2276_v14, 1  ;;  %v348_v21 = vshll.u32 %v2276_v14, 16  ;;  %v345_v24 = vrot.slane %v343_v17, 1  ;;  %v2404_v39 = vld [vmem:[%s2356_s14 + $0x78] sm:$0xff]   ;;  %v2447_v10 = vld [vmem:[%s2356_s14 + $0x84] sm:$0xff]  }
  0x17   : > { %601 = vrot.lane.b32.xlu0 %v555_v19, %s2316_s16  ;;  %v2394_v23 = vsel %vm552_vm0, %v580_v5, %v581_v15  ;;  %v333_v29 = vrot.slane %v331_v22, 1  ;;  %v439_v30 = vshll.u32 %v2359_v0, 16  ;;  %v338_v32 = vrot.slane %v336_v25, 1  ;;  %v2410_v46 = vld [vmem:[%s2356_s14 + $0x18] sm:$0xff]   ;;  %v2454_v13 = vld [vmem:[%s2356_s14 + $0x24] sm:$0xff]  }
  0x18   : > { %v558_v27 = vsel %vm552_vm0, %v556_v9, %v557_v20  ;;  %v350_v28 = vrot.slane %v348_v21, 1  ;;  %v346_v31 = vor.u32 %v345_v24, %v341_v16  ;;  %v444_v33 = vshll.u32 %v2275_v11, 16  ;;  %v2279_v47 = vld [vmem:[%s2356_s14 + $0x80] ss:$0 sps:$4 sm:$0x11]  }
  0x19   : > { %v425_v34 = vshrl.u32 %v2369_v2, 16  ;;  %v334_v35 = vor.u32 %v333_v29, %v329_v18  ;;  %v441_v36 = vrot.slane %v439_v30, 1  ;;  %v427_v37 = vshll.u32 %v2369_v2, 16  ;;  %v2280_v52 = vld [vmem:[%s2356_s14 + $0x20] ss:$0 sps:$4 sm:$0x11]  }
  0x1a   : > { %619 = vrot.lane.b32.xlu1 %v2394_v23, %s2316_s16  ;;  %v432_v38 = vshll.u32 %v2272_v3, 16  ;;  %v351_v40 = vsel %vm327_vm1, %v346_v31, %v350_v28  ;;  %v446_v41 = vrot.slane %v444_v33, 1  ;;  %v451_v50 = vshll.u32 %v2404_v39, 16  ;;  %v2283_v15 = vld [vmem:[%s2356_s14 + $0x8c] ss:$0 sps:$4 sm:$0x11]  }
  0x1b   : > { %603 = vrot.lane.b32.xlu0 %v558_v27, %s2316_s16  ;;  %v339_v42 = vsel %vm327_vm1, %v334_v35, %v338_v32  ;;  %v442_v43 = vor.u32 %v441_v36, %v437_v26  ;;  %v429_v44 = vrot.slane %v427_v37, 1  ;;  %v355_v53 = vshll.u32 %v2410_v46, 16  ;;  %v2284_v18 = vld [vmem:[%s2356_s14 + $0x2c] ss:$0 sps:$4 sm:$0x11]  }
  0x1c   : > { %v434_v45 = vrot.slane %v432_v38, 1  ;;  %v449_v54 = vshrl.u32 %v2404_v39, 16  ;;  %v453_v55 = vrot.slane %v451_v50, 1  ;;  %v456_v56 = vshll.u32 %v2279_v47, 16  ;;  %v2299_v28 = vld [vmem:[%s3370_s1] sm:$0x1f]  }
  0x1d   : > { %v2415_v48 = vsel %vm327_vm1, %v442_v43, %v446_v41  ;;  %v430_v49 = vor.u32 %v429_v44, %v425_v34  ;;  %v353_v57 = vshrl.u32 %v2410_v46, 16  ;;  %v357_v58 = vrot.slane %v355_v53, 1  ;;  %v2498_v44 = vld [vmem:[%s2356_s14 + $0x90] sm:$0xff]   ;;  %v2288_v50 = vld [vmem:[%s2356_s14 + $0x38] ss:$0 sps:$4 sm:$0x11]  }
  0x1e   : > { %522 = vrot.lane.b32.xlu1 %v351_v40, %s2317_s17  ;;  %v360_v59 = vshll.u32 %v2280_v52, 16  ;;  %v454_v60 = vor.u32 %v453_v55, %v449_v54  ;;  %v458_v61 = vrot.slane %v456_v56, 1  ;;  %v583_v6 = vrot.slane %v2404_v39, 1 }
  0x1f   : > { %520 = vrot.lane.b32.xlu0 %v339_v42, %s2317_s17  ;;  %v2420_v51 = vsel %vm327_vm1, %v430_v49, %v434_v45  ;;  %v358_v62 = vor.u32 %v357_v58, %v353_v57  ;;  %v584_v7 = vrot.slane %v2279_v47, 1  ;;  %v559_v8 = vrot.slane %v2410_v46, 1  ;;  %v2502_v45 = vld [vmem:[%s2356_s14 + $0x30] sm:$0xff]   ;;  %v2287_v47 = vld [vmem:[%s2356_s14 + $0x98] ss:$0 sps:$4 sm:$0x11]  }
  0x20   : > { %v362_v63 = vrot.slane %v360_v59, 1  ;;  %v459_v3 = vsel %vm327_vm1, %v454_v60, %v458_v61  ;;  %v560_v9 = vrot.slane %v2280_v52, 1  ;;  %v463_v16 = vshll.u32 %v2447_v10, 16 }
  0x21   : > { %v585_v11 = vsel %vm552_vm0, %v583_v6, %v584_v7  ;;  %v461_v17 = vshrl.u32 %v2447_v10, 16  ;;  %v367_v19 = vshll.u32 %v2454_v13, 16  ;;  %v468_v21 = vshll.u32 %v2283_v15, 16 }
  0x22   : > { %538 = vrot.lane.b32.xlu1 %v2415_v48, %s2317_s17  ;;  %v2439_v5 = vsel %vm327_vm1, %v358_v62, %v362_v63  ;;  %v561_v14 = vsel %vm552_vm0, %v559_v8, %v560_v9  ;;  %v465_v20 = vrot.slane %v463_v16, 1  ;;  %v365_v22 = vshrl.u32 %v2454_v13, 16  ;;  %v2291_v16 = vld [vmem:[%s2356_s14 + $0xa4] ss:$0 sps:$4 sm:$0x11]  }
  0x23   : > { %536 = vrot.lane.b32.xlu0 %v2420_v51, %s2317_s17  ;;  %v369_v24 = vrot.slane %v367_v19, 1  ;;  %v372_v25 = vshll.u32 %v2284_v18, 16  ;;  %v2321_v29 = vmov 65535   ;;  %v586_v37 = vrot.slane %v2447_v10, 1 }
  0x24   : > { %v466_v26 = vor.u32 %v465_v20, %v461_v17  ;;  %v1177_v30 = vsel %vm1175_vm2, 4294967295, %v2321_v29  ;;  %v587_v38 = vrot.slane %v2283_v15, 1  ;;  %v563_v41 = vrot.slane %v2284_v18, 1  ;;  %v2536_v15 = vld [vmem:[%s2356_s14 + $0x3c] sm:$0xff]   ;;  %vm3154_vm2 = vmand %vm1359_vm13, %vm1820_vm15 }
  0x25   : > { %v370_v31 = vor.u32 %v369_v24, %v365_v22  ;;  %v374_v32 = vrot.slane %v372_v25, 1  ;;  %v1178_v33 = vsel %vm1176_vm3, %v1177_v30, 0  ;;  %v475_v49 = vshll.u32 %v2498_v44, 16  ;;  %v2292_v18 = vld [vmem:[%s2356_s14 + $0x44] ss:$0 sps:$4 sm:$0x11]  }
  0x26   : > { %656 = vrot.lane.b32.xlu1 %v2404_v39, %s2315_s15  ;;  %v1180_v34 = vand.u32 %v2299_v28, %v1178_v33  ;;  %v588_v42 = vsel %vm552_vm0, %v586_v37, %v587_v38  ;;  %v379_v52 = vshll.u32 %v2502_v45, 16  ;;  %v473_v53 = vshrl.u32 %v2498_v44, 16 }
  0x27   : > { %640 = vrot.lane.b32.xlu0 %v2410_v46, %s2315_s15  ;;  %v375_v36 = vsel %vm327_vm1, %v370_v31, %v374_v32  ;;  %v477_v54 = vrot.slane %v475_v49, 1  ;;  %v480_v55 = vshll.u32 %v2287_v47, 16  ;;  %v377_v56 = vshrl.u32 %v2502_v45, 16 }
  0x28   : > { %2214 = vmatprep.subr.bf16.mxu0 %v1180_v34  ;;  %2248 = vmatprep.subr.bf16.mxu1 %v1180_v34  ;;  %v381_v57 = vrot.slane %v379_v52, 1  ;;  %v384_v58 = vshll.u32 %v2288_v50, 16  ;;  %v590_v6 = vrot.slane %v2287_v47, 1  ;;  %v565_v7 = vrot.slane %v2502_v45, 1 }
  0x29   : > { %2215 = vmatpush3.bf16.msra.mxu0 %v1180_v34  ;;  %2249 = vmatpush3.bf16.msra.mxu1 %v1180_v34  ;;  %v478_v59 = vor.u32 %v477_v54, %v473_v53  ;;  %v482_v60 = vrot.slane %v480_v55, 1  ;;  %v566_v8 = vrot.slane %v2288_v50, 1  ;;  %v391_v19 = vshll.u32 %v2536_v15, 16 }
  0x2a   : > { %701 = vrot.lane.b32.xlu1 %v2415_v48, %s2318_s18  ;;  %v382_v61 = vor.u32 %v381_v57, %v377_v56  ;;  %v386_v62 = vrot.slane %v384_v58, 1  ;;  %v492_v22 = vshll.u32 %v2291_v16, 16  ;;  %v389_v24 = vshrl.u32 %v2536_v15, 16  ;;  %v2597_v57 = vld [vmem:[%s2356_s14 + $0xa8] sm:$0xff]  }
  0x2b   : > { %685 = vrot.lane.b32.xlu0 %v351_v40, %s2318_s18  ;;  %v562_v40 = vrot.slane %v2454_v13, 1  ;;  %v483_v63 = vsel %vm327_vm1, %v478_v59, %v482_v60  ;;  %v393_v25 = vrot.slane %v391_v19, 1  ;;  %v593_v38 = vrot.slane %v2291_v16, 1  ;;  %v2603_v59 = vld [vmem:[%s2356_s14 + $0x48] sm:$0xff]  }
  0x2c   : > { %v494_v28 = vrot.slane %v492_v22, 1  ;;  %v401_v16 = vshrl.u32 %v2603_v59, 16 }
  0x2d   : > { %v564_v43 = vsel %vm552_vm0, %v562_v40, %v563_v41  ;;  %v394_v29 = vor.u32 %v393_v25, %v389_v24  ;;  %v568_v41 = vrot.slane %v2536_v15, 1 }
  0x2e   : > { %703 = vrot.lane.b32.xlu1 %v459_v3, %s2318_s18 }
  0x2f   : > { %687 = vrot.lane.b32.xlu0 %v2439_v5, %s2318_s18 }
  0x32   : > { %736 = vrot.lane.b32.xlu1 %v2394_v23, %s2319_s19 }
  0x33   : > { %720 = vrot.lane.b32.xlu0 %v558_v27, %s2319_s19  ;;  %v470_v27 = vrot.slane %v468_v21, 1 }
  0x35   : > { %v471_v35 = vsel %vm327_vm1, %v466_v26, %v470_v27  ;;  %v396_v26 = vshll.u32 %v2292_v18, 16 }
  0x36   : > { %738 = vrot.lane.b32.xlu1 %v585_v11, %s2319_s19 }
  0x37   : > { %722 = vrot.lane.b32.xlu0 %v561_v14, %s2319_s19  ;;  %v398_v30 = vrot.slane %v396_v26, 1 }
  0x39   : > { %v399_v34 = vsel %vm327_vm1, %v394_v29, %v398_v30 }
  0x3a   : > { %773 = vrot.lane.b32.xlu1 %v2404_v39, %s2320_s20 }
  0x3b   : > { %757 = vrot.lane.b32.xlu0 %v2410_v46, %s2320_s20 }
  0x3e   : > { %775 = vrot.lane.b32.xlu1 %v2447_v10, %s2320_s20 }
  0x3f   : > { %759 = vrot.lane.b32.xlu0 %v2454_v13, %s2320_s20 }
  0x42   : > { %820 = vrot.lane.b32.xlu1 %v459_v3, %s2322_s23 }
  0x43   : > { %804 = vrot.lane.b32.xlu0 %v2439_v5, %s2322_s23 }
  0x46   : > { %822 = vrot.lane.b32.xlu1 %v471_v35, %s2322_s23 }
  0x47   : > { %806 = vrot.lane.b32.xlu0 %v375_v36, %s2322_s23 }
  0x4a   : > { %855 = vrot.lane.b32.xlu1 %v585_v11, %s2323_s24 }
  0x4b   : > { %839 = vrot.lane.b32.xlu0 %v561_v14, %s2323_s24 }
  0x4e   : > { %540 = vrot.lane.b32.xlu1 %v459_v3, %s2317_s17  ;;  %v387_v3 = vsel %vm327_vm1, %v382_v61, %v386_v62  ;;  %v2295_v61 = vld [vmem:[%s2356_s14 + $0xb0] ss:$0 sps:$4 sm:$0x11]   ;;  %v499_v62 = vshll.u32 %v2597_v57, 16 }
  0x4f   : > { %524 = vrot.lane.b32.xlu0 %v2439_v5, %s2317_s17  ;;  %v589_v5 = vrot.slane %v2498_v44, 1 }
  0x51   : > { %v591_v9 = vsel %vm552_vm0, %v589_v5, %v590_v6  ;;  %v403_v5 = vshll.u32 %v2603_v59, 16 }
  0x52   : > { %857 = vrot.lane.b32.xlu1 %v588_v42, %s2323_s24 }
  0x53   : > { %841 = vrot.lane.b32.xlu0 %v564_v43, %s2323_s24 }
  0x56   : > { %542 = vrot.lane.b32.xlu1 %v471_v35, %s2317_s17 }
  0x57   : > { %526 = vrot.lane.b32.xlu0 %v375_v36, %s2317_s17 }
  0x5a   : > { %621 = vrot.lane.b32.xlu1 %v585_v11, %s2316_s16  ;;  %v2531_v11 = vld [vmem:[%s2356_s14 + $0x9c] sm:$0xff]  }
  0x5b   : > { %605 = vrot.lane.b32.xlu0 %v561_v14, %s2316_s16  ;;  %v567_v14 = vsel %vm552_vm0, %v565_v7, %v566_v8  ;;  %v487_v17 = vshll.u32 %v2531_v11, 16  ;;  %v485_v20 = vshrl.u32 %v2531_v11, 16  ;;  %v592_v37 = vrot.slane %v2531_v11, 1 }
  0x5c   : > { %v497_v7 = vshrl.u32 %v2597_v57, 16  ;;  %v501_v8 = vrot.slane %v499_v62, 1 }
  0x5d   : > { %v489_v21 = vrot.slane %v487_v17, 1  ;;  %v594_v47 = vsel %vm552_vm0, %v592_v37, %v593_v38  ;;  %v405_v17 = vrot.slane %v403_v5, 1  ;;  %v595_v37 = vrot.slane %v2597_v57, 1  ;;  %v2659_v5 = vld [vmem:[%s2356_s14 + $0xb4] sm:$0xff]  }
  0x5e   : > { %623 = vrot.lane.b32.xlu1 %v588_v42, %s2316_s16  ;;  %v596_v38 = vrot.slane %v2295_v61, 1 }
  0x5f   : > { %607 = vrot.lane.b32.xlu0 %v564_v43, %s2316_s16  ;;  %v490_v27 = vor.u32 %v489_v21, %v485_v20  ;;  %v502_v20 = vor.u32 %v501_v8, %v497_v7  ;;  %v406_v24 = vor.u32 %v405_v17, %v401_v16 }
  0x61   : > { %v495_v32 = vsel %vm327_vm1, %v490_v27, %v494_v28 }
  0x62   : > { %658 = vrot.lane.b32.xlu1 %v2447_v10, %s2315_s15 }
  0x63   : > { %642 = vrot.lane.b32.xlu0 %v2454_v13, %s2315_s15 }
  0x66   : > { %660 = vrot.lane.b32.xlu1 %v2498_v44, %s2315_s15 }
  0x67   : > { %644 = vrot.lane.b32.xlu0 %v2502_v45, %s2315_s15 }
  0x6a   : > { %705 = vrot.lane.b32.xlu1 %v471_v35, %s2318_s18 }
  0x6b   : > { %689 = vrot.lane.b32.xlu0 %v375_v36, %s2318_s18 }
  0x6e   : > { %707 = vrot.lane.b32.xlu1 %v483_v63, %s2318_s18 }
  0x6f   : > { %691 = vrot.lane.b32.xlu0 %v387_v3, %s2318_s18 }
  0x72   : > { %740 = vrot.lane.b32.xlu1 %v588_v42, %s2319_s19  ;;  %v569_v42 = vrot.slane %v2292_v18, 1 }
  0x73   : > { %724 = vrot.lane.b32.xlu0 %v564_v43, %s2319_s19 }
  0x74   : > { %v2582_v50 = vsel %vm552_vm0, %v568_v41, %v569_v42 }
  0x76   : > { %742 = vrot.lane.b32.xlu1 %v591_v9, %s2319_s19 }
  0x77   : > { %726 = vrot.lane.b32.xlu0 %v567_v14, %s2319_s19 }
  0x7a   : > { %777 = vrot.lane.b32.xlu1 %v2498_v44, %s2320_s20 }
  0x7b   : > { %761 = vrot.lane.b32.xlu0 %v2502_v45, %s2320_s20 }
  0x7e   : > { %779 = vrot.lane.b32.xlu1 %v2531_v11, %s2320_s20 }
  0x7f   : > { %763 = vrot.lane.b32.xlu0 %v2536_v15, %s2320_s20 }
  0x82   : > { %824 = vrot.lane.b32.xlu1 %v483_v63, %s2322_s23 }
  0x83   : > { %808 = vrot.lane.b32.xlu0 %v387_v3, %s2322_s23 }
  0x84   : > { %v2555_v31 = vpop.permute.xlu1 %654 }
  0x85   : > { %v2559_v33 = vpop.permute.xlu0 %638 }
  0x86   : > { %826 = vrot.lane.b32.xlu1 %v495_v32, %s2322_s23 }
  0x87   : > { %810 = vrot.lane.b32.xlu0 %v399_v34, %s2322_s23 }
  0x88   : > { %v2564_v35 = vpop.permute.xlu1 %617 }
  0x89   : > { %v2566_v36 = vpop.permute.xlu0 %601 }
  0x8a   : > { %859 = vrot.lane.b32.xlu1 %v591_v9, %s2323_s24 }
  0x8b   : > { %843 = vrot.lane.b32.xlu0 %v567_v14, %s2323_s24 }
  0x8c   : > { %v2571_v40 = vpop.permute.xlu1 %619 }
  0x8d   : > { %v2574_v43 = vpop.permute.xlu0 %603 }
  0x8e   : > { %544 = vrot.lane.b32.xlu1 %v483_v63, %s2317_s17 }
  0x8f   : > { %528 = vrot.lane.b32.xlu0 %v387_v3, %s2317_s17  ;;  %v2296_v3 = vld [vmem:[%s2356_s14 + $0x50] ss:$0 sps:$4 sm:$0x11]  }
  0x90   : > { %v2579_v49 = vpop.permute.xlu1 %522  ;;  %v408_v18 = vshll.u32 %v2296_v3, 16  ;;  %v572_v41 = vrot.slane %v2296_v3, 1 }
  0x91   : > { %v521_v52 = vpop.permute.xlu0 %520 }
  0x92   : > { %861 = vrot.lane.b32.xlu1 %v594_v47, %s2323_s24  ;;  %v410_v25 = vrot.slane %v408_v18, 1  ;;  %v873_v7 = vsel %vm871_vm4, %v2373_v4, %v521_v52 }
  0x93   : > { %845 = vrot.lane.b32.xlu0 %v2582_v50, %s2323_s24  ;;  %v906_v4 = vsel %vm904_vm5, %v873_v7, %v2566_v36  ;;  %v2688_v36 = vld [vmem:[%s2356_s14 + $0x5c] ss:$0 sps:$4 sm:$0x11]  }
  0x94   : > { %v2587_v53 = vpop.permute.xlu1 %538  ;;  %v2640_v29 = vsel %vm327_vm1, %v406_v24, %v410_v25  ;;  %v509_v24 = vshrl.u32 %v2659_v5, 16 }
  0x95   : > { %v537_v54 = vpop.permute.xlu0 %536 }
  0x96   : > { %546 = vrot.lane.b32.xlu1 %v495_v32, %s2317_s17  ;;  %v889_v42 = vsel %vm871_vm4, %v2369_v2, %v537_v54 }
  0x97   : > { %530 = vrot.lane.b32.xlu0 %v399_v34, %s2317_s17  ;;  %v922_v54 = vsel %vm904_vm5, %v889_v42, %v2564_v35  ;;  %v511_v35 = vshll.u32 %v2659_v5, 16 }
  0x98   : > { %v2591_v55 = vpop.permute.xlu1 %656  ;;  %v955_v52 = vsel %vm937_vm7, %v922_v54, %v2555_v31  ;;  %v420_v54 = vshll.u32 %v2688_v36, 16 }
  0x99   : > { %v2593_v56 = vpop.permute.xlu0 %640 }
  0x9a   : > { %625 = vrot.lane.b32.xlu1 %v591_v9, %s2316_s16  ;;  %v504_v9 = vshll.u32 %v2295_v61, 16  ;;  %v2656_v61 = vsel %vm552_vm0, %v595_v37, %v596_v38  ;;  %v513_v37 = vrot.slane %v511_v35, 1 }
  0x9b   : > { %609 = vrot.lane.b32.xlu0 %v567_v14, %s2316_s16 }
  0x9c   : > { %v2600_v58 = vpop.permute.xlu1 %701  ;;  %v506_v21 = vrot.slane %v504_v9, 1 }
  0x9d   : > { %v2605_v60 = vpop.permute.xlu0 %685  ;;  %v988_v17 = vsel %vm970_vm6, %v955_v52, %v2600_v58 }
  0x9e   : > { %627 = vrot.lane.b32.xlu1 %v594_v47, %s2316_s16  ;;  %v2636_v27 = vsel %vm327_vm1, %v502_v20, %v506_v21  ;;  %v939_v20 = vsel %vm937_vm7, %v906_v4, %v2559_v33  ;;  %v891_v33 = vsel %vm871_vm4, %v2359_v0, %v2587_v53  ;;  %v875_v0 = vsel %vm871_vm4, %v2362_v1, %v2579_v49 }
  0x9f   : > { %611 = vrot.lane.b32.xlu0 %v2582_v50, %s2316_s16  ;;  %v972_v58 = vsel %vm970_vm6, %v939_v20, %v2605_v60  ;;  %v514_v4 = vor.u32 %v513_v37, %v509_v24  ;;  %v908_v49 = vsel %vm904_vm5, %v875_v0, %v2574_v43 }
  0xa0   : > { %v2612_v63 = vpop.permute.xlu1 %703 }
  0xa1   : > { %v2616_v6 = vpop.permute.xlu0 %687 }
  0xa2   : > { %662 = vrot.lane.b32.xlu1 %v2531_v11, %s2315_s15 }
  0xa3   : > { %646 = vrot.lane.b32.xlu0 %v2536_v15, %s2315_s15 }
  0xa4   : > { %v737_v14 = vpop.permute.xlu1 %736 }
  0xa5   : > { %v2624_v19 = vpop.permute.xlu0 %720  ;;  %v1021_v21 = vsel %vm1003_vm8, %v988_v17, %v737_v14  ;;  %v422_v17 = vrot.slane %v420_v54, 1  ;;  %v2302_v54 = vld [vmem:[%s2356_s14 + $0xc0] sm:$0xff]  }
  0xa6   : > { %664 = vrot.lane.b32.xlu1 %v2597_v57, %s2315_s15  ;;  %v1005_v14 = vsel %vm1003_vm8, %v972_v58, %v2624_v19 }
  0xa7   : > { %648 = vrot.lane.b32.xlu0 %v2603_v59, %s2315_s15 }
  0xa8   : > { %v2630_v22 = vpop.permute.xlu1 %738 }
  0xa9   : > { %v2632_v26 = vpop.permute.xlu0 %722 }
  0xaa   : > { %709 = vrot.lane.b32.xlu1 %v495_v32, %s2318_s18 }
  0xab   : > { %693 = vrot.lane.b32.xlu0 %v399_v34, %s2318_s18  ;;  %v571_v34 = vrot.slane %v2603_v59, 1 }
  0xac   : > { %v774_v28 = vpop.permute.xlu1 %773 }
  0xad   : > { %v758_v30 = vpop.permute.xlu0 %757  ;;  %v2668_v8 = vsel %vm552_vm0, %v571_v34, %v572_v41  ;;  %v1054_v25 = vsel %vm1036_vm9, %v1021_v21, %v774_v28 }
  0xae   : > { %711 = vrot.lane.b32.xlu1 %v2636_v27, %s2318_s18  ;;  %v1038_v28 = vsel %vm1036_vm9, %v1005_v14, %v758_v30  ;;  %v924_v30 = vsel %vm904_vm5, %v891_v33, %v2571_v40 }
  0xaf   : > { %695 = vrot.lane.b32.xlu0 %v2640_v29, %s2318_s18  ;;  %v957_v52 = vsel %vm937_vm7, %v924_v30, %v2591_v55  ;;  %v676_v30 = vshll.u32 %v2302_v54, 16 }
  0xb0   : > { %v2647_v32 = vpop.permute.xlu1 %775  ;;  %v990_v40 = vsel %vm970_vm6, %v957_v52, %v2612_v63 }
  0xb1   : > { %v2652_v62 = vpop.permute.xlu0 %759  ;;  %v1023_v55 = vsel %vm1003_vm8, %v990_v40, %v2630_v22 }
  0xb2   : > { %744 = vrot.lane.b32.xlu1 %v594_v47, %s2319_s19  ;;  %v2671_v47 = vld [vmem:[%s2356_s14 + $0x54] sm:$0xff]   ;;  %v1056_v43 = vsel %vm1036_vm9, %v1023_v55, %v2647_v32 }
  0xb3   : > { %728 = vrot.lane.b32.xlu0 %v2582_v50, %s2319_s19  ;;  %v2678_v50 = vld [vmem:[%s2356_s14 + $0xbc] ss:$0 sps:$4 sm:$0x11]   ;;  %v415_v18 = vshll.u32 %v2671_v47, 16  ;;  %v413_v60 = vshrl.u32 %v2671_v47, 16  ;;  %v574_v14 = vrot.slane %v2671_v47, 1 }
  0xb4   : > { %v821_v3 = vpop.permute.xlu1 %820  ;;  %v516_v38 = vshll.u32 %v2678_v50, 16 }
  0xb5   : > { %v805_v9 = vpop.permute.xlu0 %804  ;;  %v1087_v34 = vsel %vm1069_vm10, %v1054_v25, %v821_v3  ;;  %v417_v7 = vrot.slane %v415_v18, 1  ;;  %v941_v18 = vsel %vm937_vm7, %v908_v49, %v2593_v56 }
  0xb6   : > { %746 = vrot.lane.b32.xlu1 %v2656_v61, %s2319_s19  ;;  %v1071_v53 = vsel %vm1069_vm10, %v1038_v28, %v805_v9  ;;  %v518_v35 = vrot.slane %v516_v38, 1  ;;  %v974_v21 = vsel %vm970_vm6, %v941_v18, %v2616_v6  ;;  %v599_v38 = vrot.slane %v2678_v50, 1 }
  0xb7   : > { %730 = vrot.lane.b32.xlu0 %v2668_v8, %s2319_s19  ;;  %v418_v9 = vor.u32 %v417_v7, %v413_v60  ;;  %v1007_v24 = vsel %vm1003_vm8, %v974_v21, %v2632_v26 }
  0xb8   : > { %v823_v16 = vpop.permute.xlu1 %822  ;;  %v519_v63 = vsel %vm327_vm1, %v514_v4, %v518_v35  ;;  %v1040_v58 = vsel %vm1036_vm9, %v1007_v24, %v2652_v62  ;;  %v678_v35 = vrot.slane %v676_v30, 1  ;;  %v717_v24 = vrot.slane %v2302_v54, 1 }
  0xb9   : > { %v807_v31 = vpop.permute.xlu0 %806  ;;  %v1089_v56 = vsel %vm1069_vm10, %v1056_v43, %v823_v16  ;;  %v423_v6 = vsel %vm327_vm1, %v418_v9, %v422_v17 }
  0xba   : > { %781 = vrot.lane.b32.xlu1 %v2597_v57, %s2320_s20  ;;  %v1073_v32 = vsel %vm1069_vm10, %v1040_v58, %v807_v31  ;;  %v598_v31 = vrot.slane %v2659_v5, 1 }
  0xbb   : > { %765 = vrot.lane.b32.xlu0 %v2603_v59, %s2320_s20 }
  0xbc   : > { %v856_v41 = vpop.permute.xlu1 %855  ;;  %v600_v60 = vsel %vm552_vm0, %v598_v31, %v599_v38  ;;  %v2838_v31 = vld [vmem:[%s2356_s14 + $0xd4] ss:$0 sps:$4 sm:$0x11]  }
  0xbd   : > { %v1120_v42 = vsel %vm1102_vm11, %v1087_v34, %v856_v41  ;;  %v840_v19 = vpop.permute.xlu0 %839  ;;  %v575_v34 = vrot.slane %v2688_v36, 1 }
  0xbe   : > { %783 = vrot.lane.b32.xlu1 %v2659_v5, %s2320_s20  ;;  %2232 = vmatprep.mubr.msk.bf16.mxu1 %vm1142_vm12, %v1120_v42  ;;  %v1104_v3 = vsel %vm1102_vm11, %v1071_v53, %v840_v19  ;;  %v2303_v19 = vld [vmem:[%s2356_s14 + $0xc8] ss:$0 sps:$4 sm:$0x11]  }
  0xbf   : > { %767 = vrot.lane.b32.xlu0 %v2671_v47, %s2320_s20  ;;  %2216 = vmatprep.mubr.msk.bf16.mxu0 %vm1142_vm12, %v1104_v3  ;;  %v576_v28 = vsel %vm552_vm0, %v574_v14, %v575_v34  ;;  %v681_v52 = vshll.u32 %v2303_v19, 16 }
  0xc0   : > { %v2728_v1 = vpop.permute.xlu1 %540 }
  0xc1   : > { %v2738_v20 = vpop.permute.xlu0 %524  ;;  %v683_v9 = vrot.slane %v681_v52, 1 }
  0xc2   : > { %828 = vrot.lane.b32.xlu1 %v2636_v27, %s2322_s23  ;;  %v877_v14 = vsel %vm871_vm4, %v2410_v46, %v2738_v20 }
  0xc3   : > { %812 = vrot.lane.b32.xlu0 %v2640_v29, %s2322_s23 }
  0xc4   : > { %v858_v22 = vpop.permute.xlu1 %857 }
  0xc5   : > { %v1122_v25 = vsel %vm1102_vm11, %v1089_v56, %v858_v22  ;;  %v842_v37 = vpop.permute.xlu0 %841  ;;  %v718_v56 = vrot.slane %v2303_v19, 1 }
  0xc6   : > { %830 = vrot.lane.b32.xlu1 %v519_v63, %s2322_s23  ;;  %2233 = vmatmul.mubr.msk.bf16.vlgmr.msra.gmra.mrb[0].mxu1 %vm1142_vm12, %v1122_v25  ;;  %v1106_v26 = vsel %vm1102_vm11, %v1073_v32, %v842_v37  ;;  %v2828_v25 = vld [vmem:[%s2356_s14 + $0xcc] sm:$0xff]   ;;  %v893_v32 = vsel %vm871_vm4, %v2404_v39, %v2728_v1 }
  0xc7   : > { %814 = vrot.lane.b32.xlu0 %v423_v6, %s2322_s23  ;;  %2217 = vmatmul.mubr.msk.bf16.vlgmr.msra.gmra.mrb[0].mxu0 %vm1142_vm12, %v1106_v26  ;;  %v795_v38 = vshll.u32 %v2828_v25, 16  ;;  %v793_v46 = vshrl.u32 %v2828_v25, 16 }
  0xc8   : > { %v2762_v16 = vpop.permute.xlu1 %542 }
  0xc9   : > { %v2764_v62 = vpop.permute.xlu0 %526  ;;  %v797_v30 = vrot.slane %v795_v38, 1 }
  0xca   : > { %863 = vrot.lane.b32.xlu1 %v2656_v61, %s2323_s24 }
  0xcb   : > { %847 = vrot.lane.b32.xlu0 %v2668_v8, %s2323_s24 }
  0xcc   : > { %v622_v33 = vpop.permute.xlu1 %621 }
  0xcd   : > { %v2774_v41 = vpop.permute.xlu0 %605  ;;  %v926_v26 = vsel %vm904_vm5, %v893_v32, %v622_v33 }
  0xce   : > { %548 = vrot.lane.b32.xlu1 %v2636_v27, %s2317_s17  ;;  %v910_v1 = vsel %vm904_vm5, %v877_v14, %v2774_v41 }
  0xcf   : > { %532 = vrot.lane.b32.xlu0 %v2640_v29, %s2317_s17 }
  0xd0   : > { %v2781_v50 = vpop.permute.xlu1 %623 }
  0xd1   : > { %v2784_v42 = vpop.permute.xlu0 %607 }
  0xd2   : > { %865 = vrot.lane.b32.xlu1 %v600_v60, %s2323_s24 }
  0xd3   : > { %849 = vrot.lane.b32.xlu0 %v576_v28, %s2323_s24 }
  0xd4   : > { %v659_v36 = vpop.permute.xlu1 %658 }
  0xd5   : > { %v643_v7 = vpop.permute.xlu0 %642  ;;  %v959_v34 = vsel %vm937_vm7, %v926_v26, %v659_v36  ;;  %v837_v26 = vrot.slane %v2838_v31, 1 }
  0xd6   : > { %550 = vrot.lane.b32.xlu1 %v519_v63, %s2317_s17  ;;  %v943_v33 = vsel %vm937_vm7, %v910_v1, %v643_v7  ;;  %v2324_v1 = vmov 0  }
  0xd7   : > { %534 = vrot.lane.b32.xlu0 %v423_v6, %s2317_s17  ;;  %1367 = vst.msk [vmem:[%s2945_s27 + $0x18] sm:$0xf] %vm1359_vm13, %v2324_v1  ;;  %1360 = vst.msk [vmem:[%s2945_s27] sm:$0xf] %vm1359_vm13, %v2324_v1 }
  0xd8   : > { %v2790_v27 = vpop.permute.xlu1 %660  ;;  %1361 = vst.msk [vmem:[%s2945_s27 + $0x4] sm:$0xf] %vm1359_vm13, %v2324_v1  ;;  %1364 = vst.msk [vmem:[%s2945_s27 + $0xc] sm:$0xf] %vm1359_vm13, %v2324_v1 }
  0xd9   : > { %v2792_v29 = vpop.permute.xlu0 %644  ;;  %1365 = vst.msk [vmem:[%s2945_s27 + $0x10] sm:$0xf] %vm1359_vm13, %v2324_v1  ;;  %1368 = vst.msk [vmem:[%s2945_s27 + $0x1c] sm:$0xf] %vm1359_vm13, %v2324_v1 }
  0xda   : > { %629 = vrot.lane.b32.xlu1 %v2656_v61, %s2316_s16  ;;  %v674_v61 = vshrl.u32 %v2302_v54, 16  ;;  %1370 = vst.msk [vmem:[%s2945_s27 + $0x24] sm:$0xf] %vm1359_vm13, %v2324_v1  ;;  %1371 = vst.msk [vmem:[%s2945_s27 + $0x28] sm:$0xf] %vm1359_vm13, %v2324_v1 }
  0xdb   : > { %613 = vrot.lane.b32.xlu0 %v2668_v8, %s2316_s16  ;;  %1373 = vst.msk [vmem:[%s2945_s27 + $0x30] sm:$0xf] %vm1359_vm13, %v2324_v1  ;;  %1374 = vst.msk [vmem:[%s2945_s27 + $0x34] sm:$0xf] %vm1359_vm13, %v2324_v1 }
  0xdc   : > { %v706_v0 = vpop.permute.xlu1 %705  ;;  %v679_v40 = vor.u32 %v678_v35, %v674_v61  ;;  %v800_v61 = vshll.u32 %v2838_v31, 16  ;;  %1376 = vst.msk [vmem:[%s2945_s27 + $0x3c] sm:$0xf] %vm1359_vm13, %v2324_v1  ;;  %1377 = vst.msk [vmem:[%s2945_s27 + $0x40] sm:$0xf] %vm1359_vm13, %v2324_v1 }
  0xdd   : > { %v690_v53 = vpop.permute.xlu0 %689  ;;  %1379 = vst.msk [vmem:[%s2945_s27 + $0x48] sm:$0xf] %vm1359_vm13, %v2324_v1  ;;  %1380 = vst.msk [vmem:[%s2945_s27 + $0x4c] sm:$0xf] %vm1359_vm13, %v2324_v1 }
  0xde   : > { %631 = vrot.lane.b32.xlu1 %v600_v60, %s2316_s16  ;;  %v684_v55 = vsel %vm327_vm1, %v679_v40, %v683_v9  ;;  %v976_v20 = vsel %vm970_vm6, %v943_v33, %v690_v53  ;;  %v895_v53 = vsel %vm871_vm4, %v2447_v10, %v2762_v16  ;;  %v798_v40 = vor.u32 %v797_v30, %v793_v46  ;;  %v2306_v16 = vld [vmem:[%s2356_s14 + $0x6c] sm:$0xff]  }
  0xdf   : > { %615 = vrot.lane.b32.xlu0 %v576_v28, %s2316_s16  ;;  %v802_v9 = vrot.slane %v800_v61, 1  ;;  %1382 = vst.msk [vmem:[%s2945_s27 + $0x54] sm:$0xf] %vm1359_vm13, %v2324_v1  ;;  %1383 = vst.msk [vmem:[%s2945_s27 + $0x58] sm:$0xf] %vm1359_vm13, %v2324_v1 }
  0xe0   : > { %v2802_v3 = vpop.permute.xlu1 %707  ;;  %1385 = vst.msk [vmem:[%s2945_s27 + $0x60] sm:$0xf] %vm1359_vm13, %v2324_v1  ;;  %1386 = vst.msk [vmem:[%s2945_s27 + $0x64] sm:$0xf] %vm1359_vm13, %v2324_v1 }
  0xe1   : > { %v2804_v4 = vpop.permute.xlu0 %691  ;;  %1388 = vst.msk [vmem:[%s2945_s27 + $0x6c] sm:$0xf] %vm1359_vm13, %v2324_v1  ;;  %1389 = vst.msk [vmem:[%s2945_s27 + $0x70] sm:$0xf] %vm1359_vm13, %v2324_v1 }
  0xe2   : > { %666 = vrot.lane.b32.xlu1 %v2659_v5, %s2315_s15  ;;  %1391 = vst.msk [vmem:[%s2945_s27 + $0x78] sm:$0xf] %vm1359_vm13, %v2324_v1  ;;  %1392 = vst.msk [vmem:[%s2945_s27 + $0x7c] sm:$0xf] %vm1359_vm13, %v2324_v1 }
  0xe3   : > { %650 = vrot.lane.b32.xlu0 %v2671_v47, %s2315_s15  ;;  %1394 = vst.msk [vmem:[%s2945_s27 + $0x84] sm:$0xf] %vm1359_vm13, %v2324_v1  ;;  %1395 = vst.msk [vmem:[%s2945_s27 + $0x88] sm:$0xf] %vm1359_vm13, %v2324_v1 }
  0xe4   : > { %v741_v8 = vpop.permute.xlu1 %740  ;;  %1397 = vst.msk [vmem:[%s2945_s27 + $0x90] sm:$0xf] %vm1359_vm13, %v2324_v1  ;;  %1398 = vst.msk [vmem:[%s2945_s27 + $0x94] sm:$0xf] %vm1359_vm13, %v2324_v1 }
  0xe5   : > { %v725_v49 = vpop.permute.xlu0 %724  ;;  %1400 = vst.msk [vmem:[%s2945_s27 + $0x9c] sm:$0xf] %vm1359_vm13, %v2324_v1  ;;  %1401 = vst.msk [vmem:[%s2945_s27 + $0xa0] sm:$0xf] %vm1359_vm13, %v2324_v1 }
  0xe6   : > { %668 = vrot.lane.b32.xlu1 %v2302_v54, %s2315_s15  ;;  %v1009_v41 = vsel %vm1003_vm8, %v976_v20, %v725_v49  ;;  %1403 = vst.msk [vmem:[%s2945_s27 + $0xa8] sm:$0xf] %vm1359_vm13, %v2324_v1  ;;  %1404 = vst.msk [vmem:[%s2945_s27 + $0xac] sm:$0xf] %vm1359_vm13, %v2324_v1 }
  0xe7   : > { %652 = vrot.lane.b32.xlu0 %v2369_v2, %s2315_s15  ;;  %1406 = vst.msk [vmem:[%s2945_s27 + $0xb4] sm:$0xf] %vm1359_vm13, %v2324_v1  ;;  %1407 = vst.msk [vmem:[%s2945_s27 + $0xb8] sm:$0xf] %vm1359_vm13, %v2324_v1 }
  0xe8   : > { %v2813_v17 = vpop.permute.xlu1 %742  ;;  %1409 = vst.msk [vmem:[%s2945_s27 + $0xc0] sm:$0xf] %vm1359_vm13, %v2324_v1  ;;  %1410 = vst.msk [vmem:[%s2945_s27 + $0xc4] sm:$0xf] %vm1359_vm13, %v2324_v1 }
  0xe9   : > { %v2815_v18 = vpop.permute.xlu0 %726  ;;  %1412 = vst.msk [vmem:[%s2945_s27 + $0xcc] sm:$0xf] %vm1359_vm13, %v2324_v1  ;;  %1413 = vst.msk [vmem:[%s2945_s27 + $0xd0] sm:$0xf] %vm1359_vm13, %v2324_v1 }
  0xea   : > { %713 = vrot.lane.b32.xlu1 %v519_v63, %s2318_s18  ;;  %v2825_v63 = vsel %vm552_vm0, %v717_v24, %v718_v56  ;;  %1369 = vst.msk [vmem:[%s2945_s27 + $0x20] sm:$0x1] %vm1362_vm14, %v2324_v1  ;;  %1363 = vst.msk [vmem:[%s2945_s27 + $0x8] sm:$0x1] %vm1362_vm14, %v2324_v1 }
  0xeb   : > { %697 = vrot.lane.b32.xlu0 %v423_v6, %s2318_s18  ;;  %1366 = vst.msk [vmem:[%s2945_s27 + $0x14] sm:$0x1] %vm1362_vm14, %v2324_v1  ;;  %1372 = vst.msk [vmem:[%s2945_s27 + $0x2c] sm:$0x1] %vm1362_vm14, %v2324_v1 }
  0xec   : > { %v778_v21 = vpop.permute.xlu1 %777  ;;  %1375 = vst.msk [vmem:[%s2945_s27 + $0x38] sm:$0x1] %vm1362_vm14, %v2324_v1  ;;  %1378 = vst.msk [vmem:[%s2945_s27 + $0x44] sm:$0x1] %vm1362_vm14, %v2324_v1 }
  0xed   : > { %v762_v43 = vpop.permute.xlu0 %761  ;;  %1381 = vst.msk [vmem:[%s2945_s27 + $0x50] sm:$0x1] %vm1362_vm14, %v2324_v1  ;;  %1384 = vst.msk [vmem:[%s2945_s27 + $0x5c] sm:$0x1] %vm1362_vm14, %v2324_v1 }
  0xee   : > { %715 = vrot.lane.b32.xlu1 %v684_v55, %s2318_s18  ;;  %1387 = vst.msk [vmem:[%s2945_s27 + $0x68] sm:$0x1] %vm1362_vm14, %v2324_v1  ;;  %1390 = vst.msk [vmem:[%s2945_s27 + $0x74] sm:$0x1] %vm1362_vm14, %v2324_v1 }
  0xef   : > { %699 = vrot.lane.b32.xlu0 %v2420_v51, %s2318_s18  ;;  %1393 = vst.msk [vmem:[%s2945_s27 + $0x80] sm:$0x1] %vm1362_vm14, %v2324_v1  ;;  %1396 = vst.msk [vmem:[%s2945_s27 + $0x8c] sm:$0x1] %vm1362_vm14, %v2324_v1 }
  0xf0   : > { %v780_v22 = vpop.permute.xlu1 %779  ;;  %1399 = vst.msk [vmem:[%s2945_s27 + $0x98] sm:$0x1] %vm1362_vm14, %v2324_v1  ;;  %1402 = vst.msk [vmem:[%s2945_s27 + $0xa4] sm:$0x1] %vm1362_vm14, %v2324_v1 }
  0xf1   : > { %v764_v58 = vpop.permute.xlu0 %763  ;;  %1405 = vst.msk [vmem:[%s2945_s27 + $0xb0] sm:$0x1] %vm1362_vm14, %v2324_v1  ;;  %1408 = vst.msk [vmem:[%s2945_s27 + $0xbc] sm:$0x1] %vm1362_vm14, %v2324_v1 }
  0xf2   : > { %748 = vrot.lane.b32.xlu1 %v600_v60, %s2319_s19  ;;  %v992_v60 = vsel %vm970_vm6, %v959_v34, %v706_v0  ;;  %1411 = vst.msk [vmem:[%s2945_s27 + $0xc8] sm:$0x1] %vm1362_vm14, %v2324_v1  ;;  %1414 = vst.msk [vmem:[%s2945_s27 + $0xd4] sm:$0x1] %vm1362_vm14, %v2324_v1 }
  0xf3   : > { %732 = vrot.lane.b32.xlu0 %v576_v28, %s2319_s19  ;;  %v1025_v28 = vsel %vm1003_vm8, %v992_v60, %v741_v8 }
  0xf4   : > { %v825_v6 = vpop.permute.xlu1 %824  ;;  %v1058_v36 = vsel %vm1036_vm9, %v1025_v28, %v778_v21  ;;  %v879_v21 = vsel %vm871_vm4, %v2454_v13, %v2764_v62 }
  0xf5   : > { %v809_v37 = vpop.permute.xlu0 %808  ;;  %v1091_v0 = vsel %vm1069_vm10, %v1058_v36, %v825_v6 }
  0xf6   : > { %750 = vrot.lane.b32.xlu1 %v2825_v63, %s2319_s19 }
  0xf7   : > { %734 = vrot.lane.b32.xlu0 %v2382_v12, %s2319_s19 }
  0xf8   : > { %v827_v39 = vpop.permute.xlu1 %826 }
  0xf9   : > { %v811_v19 = vpop.permute.xlu0 %810 }
  0xfa   : > { %785 = vrot.lane.b32.xlu1 %v2302_v54, %s2320_s20  ;;  %v1042_v54 = vsel %vm1036_vm9, %v1009_v41, %v762_v43 }
  0xfb   : > { %769 = vrot.lane.b32.xlu0 %v2369_v2, %s2320_s20  ;;  %v1075_v52 = vsel %vm1069_vm10, %v1042_v54, %v809_v37  ;;  %v928_v2 = vsel %vm904_vm5, %v895_v53, %v2781_v50  ;;  %v912_v50 = vsel %vm904_vm5, %v879_v21, %v2784_v42  ;;  %v803_v42 = vsel %vm327_vm1, %v798_v40, %v802_v9 }
  0xfc   : > { %v860_v7 = vpop.permute.xlu1 %859  ;;  %v961_v10 = vsel %vm937_vm7, %v928_v2, %v2790_v27  ;;  %v945_v56 = vsel %vm937_vm7, %v912_v50, %v2792_v29  ;;  %vm1496_vm1 = vsmask.f32 4368 }
  0xfd   : > { %v1124_v35 = vsel %vm1102_vm11, %v1091_v0, %v860_v7  ;;  %v844_v8 = vpop.permute.xlu0 %843  ;;  %v994_v24 = vsel %vm970_vm6, %v961_v10, %v2802_v3  ;;  %v978_v27 = vsel %vm970_vm6, %v945_v56, %v2804_v4 }
  0xfe   : > { %787 = vrot.lane.b32.xlu1 %v2828_v25, %s2320_s20  ;;  %2236 = vmatprep.mubr.msk.bf16.mxu1 %vm1142_vm12, %v1124_v35  ;;  %v1108_v49 = vsel %vm1102_vm11, %v1075_v52, %v844_v8  ;;  %v1027_v13 = vsel %vm1003_vm8, %v994_v24, %v2813_v17  ;;  %v1011_v3 = vsel %vm1003_vm8, %v978_v27, %v2815_v18  ;;  %v836_v18 = vrot.slane %v2828_v25, 1 }
  0xff   : > { %771 = vrot.lane.b32.xlu0 %v2306_v16, %s2320_s20  ;;  %2220 = vmatprep.mubr.msk.bf16.mxu0 %vm1142_vm12, %v1108_v49  ;;  %v1060_v6 = vsel %vm1036_vm9, %v1027_v13, %v780_v22  ;;  %v1044_v17 = vsel %vm1036_vm9, %v1011_v3, %v764_v58 }
 0x100   : > { %v2881_v43 = vpop.permute.xlu1 %544  ;;  %v1093_v32 = vsel %vm1069_vm10, %v1060_v6, %v827_v39  ;;  %v1077_v37 = vsel %vm1069_vm10, %v1044_v17, %v811_v19  ;;  %v838_v38 = vsel %vm552_vm0, %v836_v18, %v837_v26  ;;  %vm1495_vm0 = vsmask.f32 256 }
 0x101   : > { %v2891_v62 = vpop.permute.xlu0 %528  ;;  %v897_v54 = vsel %vm871_vm4, %v2498_v44, %v2881_v43  ;;  %vm3169_vm3 = vmor %vm1495_vm0, %vm1496_vm1 }
 0x102   : > { %832 = vrot.lane.b32.xlu1 %v684_v55, %s2322_s23  ;;  %v881_v52 = vsel %vm871_vm4, %v2502_v45, %v2891_v62 }
 0x103   : > { %816 = vrot.lane.b32.xlu0 %v2420_v51, %s2322_s23 }
 0x104   : > { %v862_v29 = vpop.permute.xlu1 %861 }
 0x105   : > { %v1126_v55 = vsel %vm1102_vm11, %v1093_v32, %v862_v29  ;;  %v846_v4 = vpop.permute.xlu0 %845 }
 0x106   : > { %834 = vrot.lane.b32.xlu1 %v803_v42, %s2322_s23  ;;  %2237 = vmatmul.mubr.msk.bf16.gmra.mrb[4].mxu1 %vm1142_vm12, %v1126_v55  ;;  %v1110_v22 = vsel %vm1102_vm11, %v1077_v37, %v846_v4 }
 0x107   : > { %818 = vrot.lane.b32.xlu0 %v2415_v48, %s2322_s23  ;;  %2221 = vmatmul.mubr.msk.bf16.gmra.mrb[4].mxu0 %vm1142_vm12, %v1110_v22 }
 0x108   : > { %v2914_v51 = vpop.permute.xlu1 %546 }
 0x109   : > { %v2916_v58 = vpop.permute.xlu0 %530  ;;  %v899_v13 = vsel %vm871_vm4, %v2531_v11, %v2914_v51 }
 0x10a   : > { %867 = vrot.lane.b32.xlu1 %v2825_v63, %s2323_s24  ;;  %v883_v3 = vsel %vm871_vm4, %v2536_v15, %v2916_v58 }
 0x10b   : > { %851 = vrot.lane.b32.xlu0 %v2382_v12, %s2323_s24 }
 0x10c   : > { %v2923_v25 = vpop.permute.xlu1 %625 }
 0x10d   : > { %v2925_v31 = vpop.permute.xlu0 %609  ;;  %v930_v53 = vsel %vm904_vm5, %v897_v54, %v2923_v25 }
 0x10e   : > { %869 = vrot.lane.b32.xlu1 %v838_v38, %s2323_s24  ;;  %v914_v49 = vsel %vm904_vm5, %v881_v52, %v2925_v31 }
 0x10f   : > { %853 = vrot.lane.b32.xlu0 %v2394_v23, %s2323_s24 }
 0x110   : > { %v2930_v48 = vpop.permute.xlu1 %627 }
 0x111   : > { %v2932_v14 = vpop.permute.xlu0 %611  ;;  %v932_v6 = vsel %vm904_vm5, %v899_v13, %v2930_v48 }
 0x112   : > { %v916_v29 = vsel %vm904_vm5, %v883_v3, %v2932_v14 }
 0x114   : > { %v2934_v34 = vpop.permute.xlu1 %662 }
 0x115   : > { %v2936_v63 = vpop.permute.xlu0 %646  ;;  %v963_v8 = vsel %vm937_vm7, %v930_v53, %v2934_v34 }
 0x116   : > { %v947_v44 = vsel %vm937_vm7, %v914_v49, %v2936_v63 }
 0x118   : > { %v2938_v39 = vpop.permute.xlu1 %664 }
 0x119   : > { %v2947_v12 = vpop.permute.xlu0 %648  ;;  %v965_v32 = vsel %vm937_vm7, %v932_v6, %v2938_v39 }
 0x11a   : > { %v949_v55 = vsel %vm937_vm7, %v916_v29, %v2947_v12 }
 0x11c   : > { %v2949_v23 = vpop.permute.xlu1 %709 }
 0x11d   : > { %v694_v60 = vpop.permute.xlu0 %693  ;;  %v996_v40 = vsel %vm970_vm6, %v963_v8, %v2949_v23 }
 0x11e   : > { %v980_v10 = vsel %vm970_vm6, %v947_v44, %v694_v60 }
 0x120   : > { %v712_v33 = vpop.permute.xlu1 %711 }
 0x121   : > { %v696_v28 = vpop.permute.xlu0 %695  ;;  %v998_v17 = vsel %vm970_vm6, %v965_v32, %v712_v33 }
 0x122   : > { %v982_v22 = vsel %vm970_vm6, %v949_v55, %v696_v28 }
 0x124   : > { %v745_v19 = vpop.permute.xlu1 %744 }
 0x125   : > { %v729_v46 = vpop.permute.xlu0 %728  ;;  %v1029_v9 = vsel %vm1003_vm8, %v996_v40, %v745_v19 }
 0x126   : > { %v1013_v16 = vsel %vm1003_vm8, %v980_v10, %v729_v46 }
 0x128   : > { %v747_v20 = vpop.permute.xlu1 %746 }
 0x129   : > { %v731_v36 = vpop.permute.xlu0 %730  ;;  %v1031_v37 = vsel %vm1003_vm8, %v998_v17, %v747_v20 }
 0x12a   : > { %v1015_v18 = vsel %vm1003_vm8, %v982_v22, %v731_v36 }
 0x12c   : > { %v782_v30 = vpop.permute.xlu1 %781 }
 0x12d   : > { %v766_v61 = vpop.permute.xlu0 %765  ;;  %v1062_v45 = vsel %vm1036_vm9, %v1029_v9, %v782_v30 }
 0x12e   : > { %v1046_v24 = vsel %vm1036_vm9, %v1013_v16, %v766_v61 }
 0x130   : > { %v784_v41 = vpop.permute.xlu1 %783 }
 0x131   : > { %v768_v0 = vpop.permute.xlu0 %767  ;;  %v1064_v15 = vsel %vm1036_vm9, %v1031_v37, %v784_v41 }
 0x132   : > { %v1048_v58 = vsel %vm1036_vm9, %v1015_v18, %v768_v0 }
 0x134   : > { %v829_v7 = vpop.permute.xlu1 %828 }
 0x135   : > { %v813_v35 = vpop.permute.xlu0 %812  ;;  %v1095_v43 = vsel %vm1069_vm10, %v1062_v45, %v829_v7 }
 0x136   : > { %v1079_v62 = vsel %vm1069_vm10, %v1046_v24, %v813_v35 }
 0x138   : > { %v831_v2 = vpop.permute.xlu1 %830 }
 0x139   : > { %v815_v21 = vpop.permute.xlu0 %814  ;;  %v1097_v26 = vsel %vm1069_vm10, %v1064_v15, %v831_v2 }
 0x13a   : > { %v1081_v25 = vsel %vm1069_vm10, %v1048_v58, %v815_v21 }
 0x13c   : > { %v864_v50 = vpop.permute.xlu1 %863 }
 0x13d   : > { %v1128_v56 = vsel %vm1102_vm11, %v1095_v43, %v864_v50  ;;  %v848_v27 = vpop.permute.xlu0 %847 }
 0x13e   : > { %2240 = vmatprep.mubr.msk.bf16.mxu1 %vm1142_vm12, %v1128_v56  ;;  %v1112_v42 = vsel %vm1102_vm11, %v1079_v62, %v848_v27 }
 0x13f   : > { %2224 = vmatprep.mubr.msk.bf16.mxu0 %vm1142_vm12, %v1112_v42 }
 0x140   : > { %v549_v11 = vpop.permute.xlu1 %548 }
 0x141   : > { %v533_v4 = vpop.permute.xlu0 %532  ;;  %v901_v8 = vsel %vm871_vm4, %v2597_v57, %v549_v11 }
 0x142   : > { %v885_v40 = vsel %vm871_vm4, %v2603_v59, %v533_v4 }
 0x144   : > { %v866_v51 = vpop.permute.xlu1 %865 }
 0x145   : > { %v1130_v38 = vsel %vm1102_vm11, %v1097_v26, %v866_v51  ;;  %v850_v31 = vpop.permute.xlu0 %849 }
 0x146   : > { %2241 = vmatmul.mubr.msk.bf16.gmra.mrb[8].mxu1 %vm1142_vm12, %v1130_v38  ;;  %v1114_v48 = vsel %vm1102_vm11, %v1081_v25, %v850_v31 }
 0x147   : > { %2225 = vmatmul.mubr.msk.bf16.gmra.mrb[8].mxu0 %vm1142_vm12, %v1114_v48 }
 0x148   : > { %v551_v14 = vpop.permute.xlu1 %550 }
 0x149   : > { %v535_v34 = vpop.permute.xlu0 %534  ;;  %v903_v45 = vsel %vm871_vm4, %v2659_v5, %v551_v14 }
 0x14a   : > { %v887_v56 = vsel %vm871_vm4, %v2671_v47, %v535_v34  ;;  %vm3178_vm4 = vmand %vm1362_vm14, %vm1495_vm0 }
 0x14c   : > { %v630_v63 = vpop.permute.xlu1 %629 }
 0x14d   : > { %v614_v39 = vpop.permute.xlu0 %613  ;;  %v934_v49 = vsel %vm904_vm5, %v901_v8, %v630_v63 }
 0x14e   : > { %v918_v21 = vsel %vm904_vm5, %v885_v40, %v614_v39  ;;  %v2123_v40 = vld [vmem:[%s2945_s27 + $0x6c] sm:$0xf] }
 0x150   : > { %v632_v12 = vpop.permute.xlu1 %631 }
 0x151   : > { %v616_v23 = vpop.permute.xlu0 %615  ;;  %v936_v50 = vsel %vm904_vm5, %v903_v45, %v632_v12 }
 0x152   : > { %v920_v6 = vsel %vm904_vm5, %v887_v56, %v616_v23 }
 0x154   : > { %v667_v1 = vpop.permute.xlu1 %666 }
 0x155   : > { %v651_v60 = vpop.permute.xlu0 %650  ;;  %v967_v44 = vsel %vm937_vm7, %v934_v49, %v667_v1 }
 0x156   : > { %v951_v16 = vsel %vm937_vm7, %v918_v21, %v651_v60 }
 0x158   : > { %v669_v33 = vpop.permute.xlu1 %668 }
 0x159   : > { %v653_v28 = vpop.permute.xlu0 %652  ;;  %v969_v13 = vsel %vm937_vm7, %v936_v50, %v669_v33  ;;  %v2083_v50 = vld [vmem:[%s2945_s27 + $0xc] sm:$0xf] }
 0x15a   : > { %v953_v11 = vsel %vm937_vm7, %v920_v6, %v653_v28  ;;  %v2091_v6 = vld [vmem:[%s2945_s27 + $0x20] sm:$0x1] }
 0x15c   : > { %v714_v19 = vpop.permute.xlu1 %713 }
 0x15d   : > { %v698_v46 = vpop.permute.xlu0 %697  ;;  %v1000_v10 = vsel %vm970_vm6, %v967_v44, %v714_v19 }
 0x15e   : > { %v984_v24 = vsel %vm970_vm6, %v951_v16, %v698_v46 }
 0x160   : > { %v716_v20 = vpop.permute.xlu1 %715 }
 0x161   : > { %v700_v36 = vpop.permute.xlu0 %699  ;;  %v1002_v42 = vsel %vm970_vm6, %v969_v13, %v716_v20 }
 0x162   : > { %v986_v55 = vsel %vm970_vm6, %v953_v11, %v700_v36 }
 0x164   : > { %v749_v30 = vpop.permute.xlu1 %748 }
 0x165   : > { %v733_v61 = vpop.permute.xlu0 %732  ;;  %v1033_v57 = vsel %vm1003_vm8, %v1000_v10, %v749_v30 }
 0x166   : > { %v1017_v62 = vsel %vm1003_vm8, %v984_v24, %v733_v61 }
 0x168   : > { %v751_v41 = vpop.permute.xlu1 %750 }
 0x169   : > { %v735_v0 = vpop.permute.xlu0 %734  ;;  %v1035_v29 = vsel %vm1003_vm8, %v1002_v42, %v751_v41 }
 0x16a   : > { %v1019_v22 = vsel %vm1003_vm8, %v986_v55, %v735_v0 }
 0x16c   : > { %v786_v7 = vpop.permute.xlu1 %785 }
 0x16d   : > { %v770_v54 = vpop.permute.xlu0 %769  ;;  %v1066_v59 = vsel %vm1036_vm9, %v1033_v57, %v786_v7  ;;  %v2128_v7 = vld [vmem:[%s2945_s27 + $0x78] sm:$0xf] }
 0x16e   : > { %v1050_v3 = vsel %vm1036_vm9, %v1017_v62, %v770_v54 }
 0x170   : > { %v788_v35 = vpop.permute.xlu1 %787 }
 0x171   : > { %v772_v53 = vpop.permute.xlu0 %771  ;;  %v1068_v37 = vsel %vm1036_vm9, %v1035_v29, %v788_v35 }
 0x172   : > { %v1052_v26 = vsel %vm1036_vm9, %v1019_v22, %v772_v53 }
 0x174   : > { %v833_v52 = vpop.permute.xlu1 %832 }
 0x175   : > { %v817_v2 = vpop.permute.xlu0 %816  ;;  %v1099_v5 = vsel %vm1069_vm10, %v1066_v59, %v833_v52 }
 0x176   : > { %v1083_v47 = vsel %vm1069_vm10, %v1050_v3, %v817_v2 }
 0x178   : > { %v835_v9 = vpop.permute.xlu1 %834 }
 0x179   : > { %v819_v43 = vpop.permute.xlu0 %818  ;;  %v1101_v15 = vsel %vm1069_vm10, %v1068_v37, %v835_v9  ;;  %v2088_v9 = vld [vmem:[%s2945_s27 + $0x18] sm:$0xf] }
 0x17a   : > { %v1085_v58 = vsel %vm1069_vm10, %v1052_v26, %v819_v43 }
 0x17c   : > { %v868_v27 = vpop.permute.xlu1 %867 }
 0x17d   : > { %v1132_v32 = vsel %vm1102_vm11, %v1099_v5, %v868_v27  ;;  %v852_v17 = vpop.permute.xlu0 %851 }
 0x17e   : > { %2244 = vmatprep.mubr.msk.bf16.mxu1 %vm1142_vm12, %v1132_v32  ;;  %v1116_v4 = vsel %vm1102_vm11, %v1083_v47, %v852_v17  ;;  %v2131_v47 = vld [vmem:[%s2945_s27 + $0x80] sm:$0x1] }
 0x17f   : > { %2228 = vmatprep.mubr.msk.bf16.mxu0 %vm1142_vm12, %v1116_v4 }
 0x180   : > { %v870_v18 = vpop.permute.xlu1 %869 }
 0x181   : > { %v1134_v51 = vsel %vm1102_vm11, %v1101_v15, %v870_v18  ;;  %v854_v38 = vpop.permute.xlu0 %853 }
 0x182   : > { %2245 = vmatmul.mubr.msk.bf16.gmra.mrb[12].mxu1 %vm1142_vm12, %v1134_v51  ;;  %v1118_v25 = vsel %vm1102_vm11, %v1085_v58, %v854_v38 }
 0x183   : > { %2229 = vmatmul.mubr.msk.bf16.gmra.mrb[12].mxu0 %vm1142_vm12, %v1118_v25 }
 0x199   : > { %v2234_v31 = vpop.f32.mrb[0].mxu1 }
 0x19a   : > { %v2183_v48 = vpack.c.bf16 %v2234_v31, %v2234_v31  ;;  %v1280_v14 = vpop.f32.mrb[1].mxu1  ;;  %v2218_v34 = vpop.f32.mrb[0].mxu0 }
 0x19b   : > { %v2181_v63 = vpack.c.bf16 %v1280_v14, %v1280_v14  ;;  %v2235_v39 = vpop.f32.mrb[2].mxu1  ;;  %v2167_v12 = vpack.c.bf16 %v2218_v34, %v2218_v34  ;;  %v1216_v1 = vpop.f32.mrb[1].mxu0  ;;  %v2126_v14 = vld [vmem:[%s2945_s27 + $0x74] sm:$0x1] }
 0x19c   : > { %v1652_v23 = vshrl.u32 %v2183_v48, 16  ;;  %v2184_v60 = vpack.c.bf16 %v2235_v39, %v2235_v39  ;;  %v1283_v33 = vpop.f32.mrb[3].mxu1  ;;  %v2165_v28 = vpack.c.bf16 %v1216_v1, %v1216_v1  ;;  %v2219_v46 = vpop.f32.mrb[2].mxu0  ;;  %v1655_v30 = vshll.u32 %v2183_v48, 16  ;;  %v2086_v1 = vld [vmem:[%s2945_s27 + $0x14] sm:$0x1] }
 0x19d   : > { %v1635_v19 = vshrl.u32 %v2181_v63, 16  ;;  %v1516_v20 = vshrl.u32 %v2167_v12, 16  ;;  %v2168_v61 = vpack.c.bf16 %v2219_v46, %v2219_v46  ;;  %v1219_v41 = vpop.f32.mrb[3].mxu0  ;;  %v1638_v53 = vshll.u32 %v2181_v63, 16 }
 0x19e   : > { %v1654_v36 = vrot.slane %v1652_v23, 7  ;;  %v1499_v54 = vshrl.u32 %v2165_v28, 16  ;;  %v1660_v52 = vshrl.u32 %v2184_v60, 16  ;;  %v1519_v2 = vshll.u32 %v2167_v12, 16 }
 0x19f   : > { %v3159_v35 = vrot.slane %v1635_v19, 7  ;;  %v1518_v8 = vrot.slane %v1516_v20, 7  ;;  %v1524_v44 = vshrl.u32 %v2168_v61, 16  ;;  %v1502_v10 = vshll.u32 %v2165_v28, 16 }
 0x1a0   : > { %v1657_v49 = vor.u32 %v1655_v30, %v1654_v36  ;;  %v1501_v21 = vrot.slane %v1499_v54, 7  ;;  %v2182_v16 = vpack.c.bf16 %v1283_v33, %v1283_v33  ;;  %v1527_v56 = vshll.u32 %v2168_v61, 16 }
 0x1a1   : > { %v1640_v45 = vor.u32 %v1638_v53, %v3159_v35  ;;  %v1521_v57 = vor.u32 %v1519_v2, %v1518_v8  ;;  %v1526_v59 = vrot.slane %v1524_v44, 7  ;;  %v1522_v13 = vrot.slane %v1518_v8, 4 }
 0x1a2   : > { %v1888_v43 = vsel %vm3154_vm2, %v1657_v49, %v2128_v7  ;;  %v1504_v62 = vor.u32 %v1502_v10, %v1501_v21  ;;  %v1662_v42 = vrot.slane %v1660_v52, 7  ;;  %v1663_v29 = vshll.u32 %v2184_v60, 16 }
 0x1a3   : > { %2129 = vst [vmem:[%s2945_s27 + $0x78] sm:$0xf] %v1888_v43  ;;  %v1881_v5 = vsel %vm3154_vm2, %v1640_v45, %v2123_v40  ;;  %v1832_v3 = vsel %vm3154_vm2, %v1521_v57, %v2088_v9  ;;  %v1529_v32 = vor.u32 %v1527_v56, %v1526_v59  ;;  %v1531_v11 = vrot.slane %v1526_v59, 4  ;;  %v2138_v57 = vld [vmem:[%s2945_s27 + $0x90] sm:$0xf] }
 0x1a4   : > { %2124 = vst [vmem:[%s2945_s27 + $0x6c] sm:$0xf] %v1881_v5  ;;  %2089 = vst [vmem:[%s2945_s27 + $0x18] sm:$0xf] %v1832_v3  ;;  %v1823_v17 = vsel %vm3154_vm2, %v1504_v62, %v2083_v50  ;;  %v1667_v55 = vrot.slane %v1662_v42, 4  ;;  %v2166_v37 = vpack.c.bf16 %v1219_v41, %v1219_v41  ;;  %v1643_v4 = vshrl.u32 %v2182_v16, 16 }
 0x1a5   : > { %v1658_v22 = vrot.slane %v1654_v36, 4  ;;  %2084 = vst [vmem:[%s2945_s27 + $0xc] sm:$0xf] %v1823_v17  ;;  %v1530_v15 = vsel %vm3169_vm3, %v1522_v13, %v1529_v32  ;;  %v1836_v18 = vsel %vm3178_vm4, %v1531_v11, %v2091_v6  ;;  %v1665_v26 = vor.u32 %v1663_v29, %v1662_v42  ;;  %v2133_v6 = vld [vmem:[%s2945_s27 + $0x84] sm:$0xf] }
 0x1a6   : > { %2090 = vst.msk [vmem:[%s2945_s27 + $0x1c] sm:$0xf] %vm1359_vm13, %v1530_v15  ;;  %2092 = vst [vmem:[%s2945_s27 + $0x20] sm:$0x1] %v1836_v18  ;;  %v1892_v51 = vsel %vm3178_vm4, %v1667_v55, %v2131_v47  ;;  %v1507_v58 = vshrl.u32 %v2166_v37, 16  ;;  %v1645_v38 = vrot.slane %v1643_v4, 7 }
 0x1a7   : > { %v1646_v25 = vshll.u32 %v2182_v16, 16  ;;  %v1641_v31 = vrot.slane %v3159_v35, 4  ;;  %v1666_v48 = vsel %vm3169_vm3, %v1658_v22, %v1665_v26  ;;  %2132 = vst [vmem:[%s2945_s27 + $0x80] sm:$0x1] %v1892_v51  ;;  %v1510_v63 = vshll.u32 %v2166_v37, 16 }
 0x1a8   : > { %2130 = vst.msk [vmem:[%s2945_s27 + $0x7c] sm:$0xf] %vm1359_vm13, %v1666_v48  ;;  %v1509_v34 = vrot.slane %v1507_v58, 7  ;;  %v1650_v12 = vrot.slane %v1645_v38, 4  ;;  %v1505_v23 = vrot.slane %v1501_v21, 4 }
 0x1a9   : > { %v1648_v39 = vor.u32 %v1646_v25, %v1645_v38  ;;  %v2098_v3 = vld [vmem:[%s2945_s27 + $0x30] sm:$0xf]  ;;  %v2093_v37 = vld [vmem:[%s2945_s27 + $0x24] sm:$0xf]  ;;  %v2101_v51 = vld [vmem:[%s2945_s27 + $0x38] sm:$0x1] }
 0x1aa   : > { %v1512_v60 = vor.u32 %v1510_v63, %v1509_v34  ;;  %v1514_v33 = vrot.slane %v1509_v34, 4  ;;  %v1885_v19 = vsel %vm3178_vm4, %v1650_v12, %v2126_v14  ;;  %v2141_v14 = vld [vmem:[%s2945_s27 + $0x98] sm:$0x1] }
 0x1ab   : > { %v1649_v28 = vsel %vm3169_vm3, %v1641_v31, %v1648_v39  ;;  %2127 = vst [vmem:[%s2945_s27 + $0x74] sm:$0x1] %v1885_v19 }
 0x1ac   : > { %2125 = vst.msk [vmem:[%s2945_s27 + $0x70] sm:$0xf] %vm1359_vm13, %v1649_v28  ;;  %v1513_v46 = vsel %vm3169_vm3, %v1505_v23, %v1512_v60  ;;  %v1829_v20 = vsel %vm3178_vm4, %v1514_v33, %v2086_v1 }
 0x1ad   : > { %2085 = vst.msk [vmem:[%s2945_s27 + $0x10] sm:$0xf] %vm1359_vm13, %v1513_v46  ;;  %2087 = vst [vmem:[%s2945_s27 + $0x14] sm:$0x1] %v1829_v20 }
 0x1d9   : > { %v2238_v36 = vpop.f32.mrb[4].mxu1 }
 0x1da   : > { %v2187_v30 = vpack.c.bf16 %v2238_v36, %v2238_v36  ;;  %v1296_v61 = vpop.f32.mrb[5].mxu1  ;;  %v2222_v41 = vpop.f32.mrb[4].mxu0 }
 0x1db   : > { %v2185_v7 = vpack.c.bf16 %v1296_v61, %v1296_v61  ;;  %v2239_v54 = vpop.f32.mrb[6].mxu1  ;;  %v2171_v35 = vpack.c.bf16 %v2222_v41, %v2222_v41  ;;  %v1232_v52 = vpop.f32.mrb[5].mxu0  ;;  %v2136_v61 = vld [vmem:[%s2945_s27 + $0x8c] sm:$0x1] }
 0x1dc   : > { %v1686_v53 = vshrl.u32 %v2187_v30, 16  ;;  %v2188_v8 = vpack.c.bf16 %v2239_v54, %v2239_v54  ;;  %v1299_v2 = vpop.f32.mrb[7].mxu1  ;;  %v2169_v49 = vpack.c.bf16 %v1232_v52, %v1232_v52  ;;  %v2223_v44 = vpop.f32.mrb[6].mxu0  ;;  %v1689_v10 = vshll.u32 %v2187_v30, 16  ;;  %v2096_v52 = vld [vmem:[%s2945_s27 + $0x2c] sm:$0x1] }
 0x1dd   : > { %v1669_v40 = vshrl.u32 %v2185_v7, 16  ;;  %v1550_v9 = vshrl.u32 %v2171_v35, 16  ;;  %v2172_v45 = vpack.c.bf16 %v2223_v44, %v2223_v44  ;;  %v1235_v16 = vpop.f32.mrb[7].mxu0  ;;  %v1672_v59 = vshll.u32 %v2185_v7, 16 }
 0x1de   : > { %v1688_v21 = vrot.slane %v1686_v53, 7  ;;  %v1533_v43 = vshrl.u32 %v2169_v49, 16  ;;  %v1694_v56 = vshrl.u32 %v2188_v8, 16  ;;  %v1553_v62 = vshll.u32 %v2171_v35, 16 }
 0x1df   : > { %v1671_v50 = vrot.slane %v1669_v40, 7  ;;  %v1552_v13 = vrot.slane %v1550_v9, 7  ;;  %v1558_v42 = vshrl.u32 %v2172_v45, 16  ;;  %v1536_v11 = vshll.u32 %v2169_v49, 16 }
 0x1e0   : > { %v1691_v5 = vor.u32 %v1689_v10, %v1688_v21  ;;  %v1535_v32 = vrot.slane %v1533_v43, 7  ;;  %v2186_v47 = vpack.c.bf16 %v1299_v2, %v1299_v2  ;;  %v1561_v22 = vshll.u32 %v2172_v45, 16 }
 0x1e1   : > { %v1674_v29 = vor.u32 %v1672_v59, %v1671_v50  ;;  %v1555_v17 = vor.u32 %v1553_v62, %v1552_v13  ;;  %v1560_v4 = vrot.slane %v1558_v42, 7  ;;  %v1556_v15 = vrot.slane %v1552_v13, 4 }
 0x1e2   : > { %v1902_v55 = vsel %vm3154_vm2, %v1691_v5, %v2138_v57  ;;  %v1538_v18 = vor.u32 %v1536_v11, %v1535_v32  ;;  %v1696_v58 = vrot.slane %v1694_v56, 7  ;;  %v1697_v48 = vshll.u32 %v2188_v8, 16 }
 0x1e3   : > { %2139 = vst [vmem:[%s2945_s27 + $0x90] sm:$0xf] %v1902_v55  ;;  %v1895_v26 = vsel %vm3154_vm2, %v1674_v29, %v2133_v6  ;;  %v1846_v38 = vsel %vm3154_vm2, %v1555_v17, %v2098_v3  ;;  %v1563_v25 = vor.u32 %v1561_v22, %v1560_v4  ;;  %v1565_v31 = vrot.slane %v1560_v4, 4  ;;  %v2148_v17 = vld [vmem:[%s2945_s27 + $0xa8] sm:$0xf] }
 0x1e4   : > { %2134 = vst [vmem:[%s2945_s27 + $0x84] sm:$0xf] %v1895_v26  ;;  %2099 = vst [vmem:[%s2945_s27 + $0x30] sm:$0xf] %v1846_v38  ;;  %v1839_v34 = vsel %vm3154_vm2, %v1538_v18, %v2093_v37  ;;  %v1701_v63 = vrot.slane %v1696_v58, 4  ;;  %v2170_v39 = vpack.c.bf16 %v1235_v16, %v1235_v16  ;;  %v1677_v12 = vshrl.u32 %v2186_v47, 16 }
 0x1e5   : > { %v1692_v23 = vrot.slane %v1688_v21, 4  ;;  %2094 = vst [vmem:[%s2945_s27 + $0x24] sm:$0xf] %v1839_v34  ;;  %v1564_v1 = vsel %vm3169_vm3, %v1556_v15, %v1563_v25  ;;  %v1850_v60 = vsel %vm3178_vm4, %v1565_v31, %v2101_v51  ;;  %v1699_v33 = vor.u32 %v1697_v48, %v1696_v58  ;;  %v2143_v51 = vld [vmem:[%s2945_s27 + $0x9c] sm:$0xf] }
 0x1e6   : > { %2100 = vst.msk [vmem:[%s2945_s27 + $0x34] sm:$0xf] %vm1359_vm13, %v1564_v1  ;;  %2102 = vst [vmem:[%s2945_s27 + $0x38] sm:$0x1] %v1850_v60  ;;  %v1906_v28 = vsel %vm3178_vm4, %v1701_v63, %v2141_v14  ;;  %v1541_v19 = vshrl.u32 %v2170_v39, 16  ;;  %v1679_v46 = vrot.slane %v1677_v12, 7 }
 0x1e7   : > { %v1680_v20 = vshll.u32 %v2186_v47, 16  ;;  %v1675_v36 = vrot.slane %v1671_v50, 4  ;;  %v1700_v30 = vsel %vm3169_vm3, %v1692_v23, %v1699_v33  ;;  %2142 = vst [vmem:[%s2945_s27 + $0x98] sm:$0x1] %v1906_v28  ;;  %v1544_v7 = vshll.u32 %v2170_v39, 16 }
 0x1e8   : > { %2140 = vst.msk [vmem:[%s2945_s27 + $0x94] sm:$0xf] %vm1359_vm13, %v1700_v30  ;;  %v1543_v41 = vrot.slane %v1541_v19, 7  ;;  %v1684_v35 = vrot.slane %v1679_v46, 4  ;;  %v1539_v53 = vrot.slane %v1535_v32, 4 }
 0x1e9   : > { %v1682_v54 = vor.u32 %v1680_v20, %v1679_v46  ;;  %v2108_v38 = vld [vmem:[%s2945_s27 + $0x48] sm:$0xf]  ;;  %v2103_v39 = vld [vmem:[%s2945_s27 + $0x3c] sm:$0xf]  ;;  %v2111_v28 = vld [vmem:[%s2945_s27 + $0x50] sm:$0x1] }
 0x1ea   : > { %v1546_v8 = vor.u32 %v1544_v7, %v1543_v41  ;;  %v1548_v2 = vrot.slane %v1543_v41, 4  ;;  %v1899_v40 = vsel %vm3178_vm4, %v1684_v35, %v2136_v61  ;;  %v2151_v61 = vld [vmem:[%s2945_s27 + $0xb0] sm:$0x1] }
 0x1eb   : > { %v1683_v49 = vsel %vm3169_vm3, %v1675_v36, %v1682_v54  ;;  %2137 = vst [vmem:[%s2945_s27 + $0x8c] sm:$0x1] %v1899_v40 }
 0x1ec   : > { %2135 = vst.msk [vmem:[%s2945_s27 + $0x88] sm:$0xf] %vm1359_vm13, %v1683_v49  ;;  %v1547_v44 = vsel %vm3169_vm3, %v1539_v53, %v1546_v8  ;;  %v1843_v9 = vsel %vm3178_vm4, %v1548_v2, %v2096_v52 }
 0x1ed   : > { %2095 = vst.msk [vmem:[%s2945_s27 + $0x28] sm:$0xf] %vm1359_vm13, %v1547_v44  ;;  %2097 = vst [vmem:[%s2945_s27 + $0x2c] sm:$0x1] %v1843_v9 }
 0x219   : > { %v2242_v21 = vpop.f32.mrb[8].mxu1 }
 0x21a   : > { %v2191_v10 = vpack.c.bf16 %v2242_v21, %v2242_v21  ;;  %v1312_v45 = vpop.f32.mrb[9].mxu1  ;;  %v2226_v16 = vpop.f32.mrb[8].mxu0 }
 0x21b   : > { %v2189_v57 = vpack.c.bf16 %v1312_v45, %v1312_v45  ;;  %v2243_v43 = vpop.f32.mrb[10].mxu1  ;;  %v2175_v50 = vpack.c.bf16 %v2226_v16, %v2226_v16  ;;  %v1248_v56 = vpop.f32.mrb[9].mxu0  ;;  %v2146_v45 = vld [vmem:[%s2945_s27 + $0xa4] sm:$0x1] }
 0x21c   : > { %v1720_v59 = vshrl.u32 %v2191_v10, 16  ;;  %v2192_v13 = vpack.c.bf16 %v2243_v43, %v2243_v43  ;;  %v1315_v62 = vpop.f32.mrb[11].mxu1  ;;  %v2173_v5 = vpack.c.bf16 %v1248_v56, %v1248_v56  ;;  %v2227_v42 = vpop.f32.mrb[10].mxu0  ;;  %v1723_v11 = vshll.u32 %v2191_v10, 16  ;;  %v2106_v56 = vld [vmem:[%s2945_s27 + $0x44] sm:$0x1] }
 0x21d   : > { %v1703_v6 = vshrl.u32 %v2189_v57, 16  ;;  %v1584_v3 = vshrl.u32 %v2175_v50, 16  ;;  %v2176_v29 = vpack.c.bf16 %v2227_v42, %v2227_v42  ;;  %v1251_v47 = vpop.f32.mrb[11].mxu0  ;;  %v1706_v4 = vshll.u32 %v2189_v57, 16 }
 0x21e   : > { %v1722_v32 = vrot.slane %v1720_v59, 7  ;;  %v1567_v55 = vshrl.u32 %v2173_v5, 16  ;;  %v1728_v22 = vshrl.u32 %v2192_v13, 16  ;;  %v1587_v18 = vshll.u32 %v2175_v50, 16 }
 0x21f   : > { %v1705_v37 = vrot.slane %v1703_v6, 7  ;;  %v1586_v15 = vrot.slane %v1584_v3, 7  ;;  %v1592_v58 = vshrl.u32 %v2176_v29, 16  ;;  %v1570_v31 = vshll.u32 %v2173_v5, 16 }
 0x220   : > { %v1725_v26 = vor.u32 %v1723_v11, %v1722_v32  ;;  %v1569_v25 = vrot.slane %v1567_v55, 7  ;;  %v2190_v14 = vpack.c.bf16 %v1315_v62, %v1315_v62  ;;  %v1595_v23 = vshll.u32 %v2176_v29, 16 }
 0x221   : > { %v1708_v48 = vor.u32 %v1706_v4, %v1705_v37  ;;  %v1589_v34 = vor.u32 %v1587_v18, %v1586_v15  ;;  %v1594_v12 = vrot.slane %v1592_v58, 7  ;;  %v1590_v1 = vrot.slane %v1586_v15, 4 }
 0x222   : > { %v1916_v63 = vsel %vm3154_vm2, %v1725_v26, %v2148_v17  ;;  %v1572_v60 = vor.u32 %v1570_v31, %v1569_v25  ;;  %v1730_v19 = vrot.slane %v1728_v22, 7  ;;  %v1731_v30 = vshll.u32 %v2192_v13, 16 }
 0x223   : > { %2149 = vst [vmem:[%s2945_s27 + $0xa8] sm:$0xf] %v1916_v63  ;;  %v1909_v33 = vsel %vm3154_vm2, %v1708_v48, %v2143_v51  ;;  %v1860_v46 = vsel %vm3154_vm2, %v1589_v34, %v2108_v38  ;;  %v1597_v20 = vor.u32 %v1595_v23, %v1594_v12  ;;  %v1599_v36 = vrot.slane %v1594_v12, 4  ;;  %v2158_v34 = vld [vmem:[%s2945_s27 + $0xc0] sm:$0xf] }
 0x224   : > { %2144 = vst [vmem:[%s2945_s27 + $0x9c] sm:$0xf] %v1909_v33  ;;  %2109 = vst [vmem:[%s2945_s27 + $0x48] sm:$0xf] %v1860_v46  ;;  %v1853_v41 = vsel %vm3154_vm2, %v1572_v60, %v2103_v39  ;;  %v1735_v7 = vrot.slane %v1730_v19, 4  ;;  %v2174_v54 = vpack.c.bf16 %v1251_v47, %v1251_v47  ;;  %v1711_v35 = vshrl.u32 %v2190_v14, 16 }
 0x225   : > { %v1726_v53 = vrot.slane %v1722_v32, 4  ;;  %2104 = vst [vmem:[%s2945_s27 + $0x3c] sm:$0xf] %v1853_v41  ;;  %v1598_v52 = vsel %vm3169_vm3, %v1590_v1, %v1597_v20  ;;  %v1864_v8 = vsel %vm3178_vm4, %v1599_v36, %v2111_v28  ;;  %v1733_v2 = vor.u32 %v1731_v30, %v1730_v19  ;;  %v2153_v28 = vld [vmem:[%s2945_s27 + $0xb4] sm:$0xf] }
 0x226   : > { %2110 = vst.msk [vmem:[%s2945_s27 + $0x4c] sm:$0xf] %vm1359_vm13, %v1598_v52  ;;  %2112 = vst [vmem:[%s2945_s27 + $0x50] sm:$0x1] %v1864_v8  ;;  %v1920_v49 = vsel %vm3178_vm4, %v1735_v7, %v2151_v61  ;;  %v1575_v40 = vshrl.u32 %v2174_v54, 16  ;;  %v1713_v44 = vrot.slane %v1711_v35, 7 }
 0x227   : > { %v1714_v9 = vshll.u32 %v2190_v14, 16  ;;  %v1709_v21 = vrot.slane %v1705_v37, 4  ;;  %v1734_v10 = vsel %vm3169_vm3, %v1726_v53, %v1733_v2  ;;  %2152 = vst [vmem:[%s2945_s27 + $0xb0] sm:$0x1] %v1920_v49  ;;  %v1578_v57 = vshll.u32 %v2174_v54, 16 }
 0x228   : > { %2150 = vst.msk [vmem:[%s2945_s27 + $0xac] sm:$0xf] %vm1359_vm13, %v1734_v10  ;;  %v1577_v16 = vrot.slane %v1575_v40, 7  ;;  %v1718_v50 = vrot.slane %v1713_v44, 4  ;;  %v1573_v59 = vrot.slane %v1569_v25, 4 }
 0x229   : > { %v1716_v43 = vor.u32 %v1714_v9, %v1713_v44  ;;  %v2118_v46 = vld [vmem:[%s2945_s27 + $0x60] sm:$0xf]  ;;  %v2113_v54 = vld [vmem:[%s2945_s27 + $0x54] sm:$0xf]  ;;  %v2121_v49 = vld [vmem:[%s2945_s27 + $0x68] sm:$0x1] }
 0x22a   : > { %v1580_v13 = vor.u32 %v1578_v57, %v1577_v16  ;;  %v1582_v62 = vrot.slane %v1577_v16, 4  ;;  %v1913_v6 = vsel %vm3178_vm4, %v1718_v50, %v2146_v45  ;;  %v2161_v45 = vld [vmem:[%s2945_s27 + $0xc8] sm:$0x1] }
 0x22b   : > { %v1717_v5 = vsel %vm3169_vm3, %v1709_v21, %v1716_v43  ;;  %2147 = vst [vmem:[%s2945_s27 + $0xa4] sm:$0x1] %v1913_v6 }
 0x22c   : > { %2145 = vst.msk [vmem:[%s2945_s27 + $0xa0] sm:$0xf] %vm1359_vm13, %v1717_v5  ;;  %v1581_v42 = vsel %vm3169_vm3, %v1573_v59, %v1580_v13  ;;  %v1857_v3 = vsel %vm3178_vm4, %v1582_v62, %v2106_v56 }
 0x22d   : > { %2105 = vst.msk [vmem:[%s2945_s27 + $0x40] sm:$0xf] %vm1359_vm13, %v1581_v42  ;;  %2107 = vst [vmem:[%s2945_s27 + $0x44] sm:$0x1] %v1857_v3 }
 0x255   : > { %v2246_v32 = vpop.f32.mrb[12].mxu1 }
 0x256   : > { %v2195_v11 = vpack.c.bf16 %v2246_v32, %v2246_v32  ;;  %v1328_v29 = vpop.f32.mrb[13].mxu1  ;;  %v2230_v47 = vpop.f32.mrb[12].mxu0 }
 0x257   : > { %v2193_v17 = vpack.c.bf16 %v1328_v29, %v1328_v29  ;;  %v2247_v55 = vpop.f32.mrb[14].mxu1  ;;  %v2179_v37 = vpack.c.bf16 %v2230_v47, %v2230_v47  ;;  %v1264_v22 = vpop.f32.mrb[13].mxu0 }
 0x258   : > { %v1754_v4 = vshrl.u32 %v2195_v11, 16  ;;  %v2196_v15 = vpack.c.bf16 %v2247_v55, %v2247_v55  ;;  %v1331_v18 = vpop.f32.mrb[15].mxu1  ;;  %v2177_v26 = vpack.c.bf16 %v1264_v22, %v1264_v22  ;;  %v2231_v58 = vpop.f32.mrb[14].mxu0  ;;  %v1757_v31 = vshll.u32 %v2195_v11, 16  ;;  %v2156_v11 = vld [vmem:[%s2945_s27 + $0xbc] sm:$0x1] }
 0x259   : > { %v1737_v51 = vshrl.u32 %v2193_v17, 16  ;;  %v1618_v38 = vshrl.u32 %v2179_v37, 16  ;;  %v2180_v48 = vpack.c.bf16 %v2231_v58, %v2231_v58  ;;  %v1267_v14 = vpop.f32.mrb[15].mxu0  ;;  %v1740_v12 = vshll.u32 %v2193_v17, 16 }
 0x25a   : > { %v1756_v25 = vrot.slane %v1754_v4, 7  ;;  %v1601_v63 = vshrl.u32 %v2177_v26, 16  ;;  %v1762_v23 = vshrl.u32 %v2196_v15, 16  ;;  %v1621_v60 = vshll.u32 %v2179_v37, 16  ;;  %v2116_v4 = vld [vmem:[%s2945_s27 + $0x5c] sm:$0x1] }
 0x25b   : > { %v1739_v39 = vrot.slane %v1737_v51, 7  ;;  %v1620_v1 = vrot.slane %v1618_v38, 7  ;;  %v1626_v19 = vshrl.u32 %v2180_v48, 16  ;;  %v1604_v36 = vshll.u32 %v2177_v26, 16 }
 0x25c   : > { %v1759_v33 = vor.u32 %v1757_v31, %v1756_v25  ;;  %v1603_v20 = vrot.slane %v1601_v63, 7  ;;  %v2194_v61 = vpack.c.bf16 %v1331_v18, %v1331_v18  ;;  %v1629_v53 = vshll.u32 %v2180_v48, 16 }
 0x25d   : > { %v1742_v30 = vor.u32 %v1740_v12, %v1739_v39  ;;  %v1623_v41 = vor.u32 %v1621_v60, %v1620_v1  ;;  %v1628_v35 = vrot.slane %v1626_v19, 7  ;;  %v1624_v52 = vrot.slane %v1620_v1, 4 }
 0x25e   : > { %v1930_v7 = vsel %vm3154_vm2, %v1759_v33, %v2158_v34  ;;  %v1606_v8 = vor.u32 %v1604_v36, %v1603_v20  ;;  %v1764_v40 = vrot.slane %v1762_v23, 7  ;;  %v1765_v10 = vshll.u32 %v2196_v15, 16 }
 0x25f   : > { %2159 = vst [vmem:[%s2945_s27 + $0xc0] sm:$0xf] %v1930_v7  ;;  %v1923_v2 = vsel %vm3154_vm2, %v1742_v30, %v2153_v28  ;;  %v1874_v44 = vsel %vm3154_vm2, %v1623_v41, %v2118_v46  ;;  %v1631_v9 = vor.u32 %v1629_v53, %v1628_v35  ;;  %v1633_v21 = vrot.slane %v1628_v35, 4 }
 0x260   : > { %2154 = vst [vmem:[%s2945_s27 + $0xb4] sm:$0xf] %v1923_v2  ;;  %2119 = vst [vmem:[%s2945_s27 + $0x60] sm:$0xf] %v1874_v44  ;;  %v1867_v16 = vsel %vm3154_vm2, %v1606_v8, %v2113_v54  ;;  %v1769_v57 = vrot.slane %v1764_v40, 4  ;;  %v2178_v43 = vpack.c.bf16 %v1267_v14, %v1267_v14  ;;  %v1745_v50 = vshrl.u32 %v2194_v61, 16 }
 0x261   : > { %v1760_v59 = vrot.slane %v1756_v25, 4  ;;  %2114 = vst [vmem:[%s2945_s27 + $0x54] sm:$0xf] %v1867_v16  ;;  %v1632_v56 = vsel %vm3169_vm3, %v1624_v52, %v1631_v9  ;;  %v1878_v13 = vsel %vm3178_vm4, %v1633_v21, %v2121_v49  ;;  %v1767_v62 = vor.u32 %v1765_v10, %v1764_v40 }
 0x262   : > { %2120 = vst.msk [vmem:[%s2945_s27 + $0x64] sm:$0xf] %vm1359_vm13, %v1632_v56  ;;  %2122 = vst [vmem:[%s2945_s27 + $0x68] sm:$0x1] %v1878_v13  ;;  %v1934_v0 = vsel %vm3178_vm4, %v1769_v57, %v2161_v45  ;;  %v1609_v5 = vshrl.u32 %v2178_v43, 16  ;;  %v1747_v6 = vrot.slane %v1745_v50, 7 }
 0x263   : > { %v1748_v42 = vshll.u32 %v2194_v61, 16  ;;  %v1743_v3 = vrot.slane %v1739_v39, 4  ;;  %v1768_v32 = vsel %vm3169_vm3, %v1760_v59, %v1767_v62  ;;  %2162 = vst [vmem:[%s2945_s27 + $0xc8] sm:$0x1] %v1934_v0  ;;  %v1612_v47 = vshll.u32 %v2178_v43, 16 }
 0x264   : > { %2160 = vst.msk [vmem:[%s2945_s27 + $0xc4] sm:$0xf] %vm1359_vm13, %v1768_v32  ;;  %v1611_v29 = vrot.slane %v1609_v5, 7  ;;  %v1752_v55 = vrot.slane %v1747_v6, 4  ;;  %v1607_v37 = vrot.slane %v1603_v20, 4 }
 0x265   : > { %v1750_v17 = vor.u32 %v1748_v42, %v1747_v6 }
 0x266   : > { %v1614_v22 = vor.u32 %v1612_v47, %v1611_v29  ;;  %v1616_v15 = vrot.slane %v1611_v29, 4  ;;  %v1927_v26 = vsel %vm3178_vm4, %v1752_v55, %v2156_v11 }
 0x267   : > { %v1751_v18 = vsel %vm3169_vm3, %v1743_v3, %v1750_v17  ;;  %2157 = vst [vmem:[%s2945_s27 + $0xbc] sm:$0x1] %v1927_v26 }
 0x268   : > { %2155 = vst.msk [vmem:[%s2945_s27 + $0xb8] sm:$0xf] %vm1359_vm13, %v1751_v18  ;;  %v1615_v51 = vsel %vm3169_vm3, %v1607_v37, %v1614_v22  ;;  %v1871_v58 = vsel %vm3178_vm4, %v1616_v15, %v2116_v4 }
 0x269   : > { %2115 = vst.msk [vmem:[%s2945_s27 + $0x58] sm:$0xf] %vm1359_vm13, %v1615_v51  ;;  %2117 = vst [vmem:[%s2945_s27 + $0x5c] sm:$0x1] %v1871_v58 }
 0x26a PF: > { %s12_s9 = sadd.s32 1, %s2313_s9  }
 0x26b   : > { %p9_p4 = scmp.ge.s32.totalorder %s12_s9, 4  }
 0x26d   :  { %11 = sbr.rel (!%p9_p4) target bundleno = 1 (0x1), region = 59 }

// kernel: generator_forward.5
= control target key start
LH: loop header
LB: loop body
LE: loop exit
PB: predicated region body
PF: predicated region fallthrough
CT: control target
= control target key end

     0   :  { %s3286_s21 = smov 0   ;;  %s4832_s0 = inlined_call_operand.vmem [shape: bf16[2,18,18,32], index: 0, kind: input, shape index: {}]   ;;  %s4833_s1 = inlined_call_operand.vmem [shape: bf16[288,32], index: 1, kind: input, shape index: {}]   ;;  %s4834_s2 = inlined_call_operand.vmem [shape: f32[1,1,32], index: 2, kind: input, shape index: {}]   ;;  %s4835_s3 = inlined_call_operand.vmem [shape: f32[1,1,32], index: 3, kind: input, shape index: {}]   ;;  %s4836_s4 = inlined_call_operand.vmem [shape: bf16[2,18,18,32], index: 4, kind: output, shape index: {0}]   ;;  %s4837_s5 = inlined_call_operand.vmem [shape: f32[2,1,32], index: 5, kind: output, shape index: {1}]   ;;  %s4838_s6 = inlined_call_operand.vmem [shape: f32[2,1,32], index: 6, kind: output, shape index: {2}]  }
   0x1 LB: > { %s2793_s22 = sadd.s32 4294967295, %s3244_s21   ;;  %p2797_p0 = scmp.ge.s32.totalorder %s3244_s21, 1  ;;  %s3244_s21 = sphi %s3286_s21, %s17_s21  }
   0x2   : > { %p217_p1 = scmp.lt.s32.totalorder %s3244_s21, 3 }
   0x4   : > { %p218_p2 = pnand %p2797_p0, %p217_p1 }
   0x6   : > { %221 = sbr.rel (%p218_p2) target bundleno = 610 (0x262), region = 36 }
   0xd   : > { %v554_v0 = vlaneseq  ;;  %v3246_v1 = vmov 0.0|0.0   ;;  %v4839_v3 = vmov 0   ;;  %p253_p3 = scmp.lt.s32.totalorder %s2793_s22, 1  ;;  %s3248_s23 = smov 64   ;;  %v3218_v6 = vld [vmem:[%s4833_s1 + $0x40] sm:$0xff]   ;;  %v3220_v10 = vld [vmem:[%s4833_s1 + $0x48] sm:$0xff]  }
   0xe   : > { %v3295_v2 = vrot.slane %v3246_v1, 1  ;;  %v3298_v4 = vrot.slane %v4839_v3, 1  ;;  %s3249_s24 = smov 32   ;;  %3022 = vmatprep.subr.bf16.mxu0 %v3218_v6  ;;  %v3219_v8 = vld [vmem:[%s4833_s1] sm:$0xff]   ;;  %3188 = vmatprep.subr.bf16.mxu1 %v3218_v6  ;;  %v3221_v11 = vld [vmem:[%s4833_s1 + $0x8] sm:$0xff]   ;;  %vm923_vm2 = vcmask 1046528  }
   0xf   : > { %v3300_v5 = vshrl.u32 %v554_v0, 7  ;;  %s4876_s22 = smov (!%p253_p3, %s2793_s22), 1  ;;  %v3321_v9 = vld [vmem:[%s4834_s2] ss:$0 sm:$0xff]  ;;  %3023 = vmatpush3.bf16.msra.mxu0 %v3219_v8  ;;  %3196 = vmatpush3.bf16.msra.mxu1 %v3219_v8  ;;  %v3222_v52 = vld [vmem:[%s4833_s1 + $0x50] sm:$0xff]   ;;  %v3224_v62 = vld [vmem:[%s4833_s1 + $0x58] sm:$0xff]  }
  0x10   : > { %4850 = vst [vmem:[#allocation2_spill] sm:$0xff] %v3295_v2  ;;  %972 = vrot.lane.b32.xlu1 %v3295_v2, %s3248_s23  ;;  %859 = vrot.lane.b32.xlu0 %v3298_v4, %s3249_s24  ;;  %s3204_s27 = smul.u32 216, %s4876_s22  ;;  %v3346_v21 = vld [vmem:[%s4835_s3] ss:$0 sm:$0xff]  ;;  %v3223_v61 = vld [vmem:[%s4833_s1 + $0x10] sm:$0xff]   ;;  %s3250_s8 = smov 96  }
  0x11   : > { %v3312_v7 = vadd.s32 16, %v3300_v5  ;;  %vm558_vm0 = vcmp.ge.s32.totalorder %v3300_v5, 1  ;;  %3024 = vmatprep.subr.bf16.mxu0 %v3220_v10  ;;  %3189 = vmatprep.subr.bf16.mxu1 %v3220_v10  ;;  %v3225_v10 = vld [vmem:[%s4833_s1 + $0x18] sm:$0xff]   ;;  %vm666_vm3 = vsmask.f32 7424  ;;  %vm1166_vm4 = vcmask 261120   ;;  %s265_s15 = scalar_lea.vmem %s4837_s5, %s4876_s22  ;;  %s268_s18 = scalar_lea.vmem %s4838_s6, %s4876_s22 }
  0x12   : > { %s3331_s12 = scalar_lea.vmem %s4832_s0, %s3204_s27  ;;  %vm1199_vm5 = vcmask 523264   ;;  %vm1232_vm6 = vcmask 785408   ;;  %vm2112_vm7 = vcmask 257024   ;;  %vm1992_vm8 = vcmask 253952  }
  0x13   : > { %v279_v12 = vld [vmem:[%s3331_s12 + $0x24] sm:$0xff]   ;;  %v3014_v13 = vld [vmem:[%s3331_s12 + $0x18] sm:$0xff]   ;;  %v273_v14 = vld [vmem:[%s3331_s12 + $0xc] sm:$0xff]   ;;  %vm569_vm1 = vcmp.le.s32.totalorder %v3312_v7, 16  ;;  %3025 = vmatpush3.bf16.msra.mxu0 %v3221_v11  ;;  %3197 = vmatpush3.bf16.msra.mxu1 %v3221_v11  ;;  %vm2572_vm9 = vsmask.f32 7938 }
  0x14   : > { %v333_v15 = vunpack.c.l.bf16 %v279_v12  ;;  %v334_v16 = vunpack.c.h.bf16 %v279_v12  ;;  %v2984_v17 = vunpack.c.l.bf16 %v3014_v13  ;;  %v2985_v18 = vunpack.c.h.bf16 %v3014_v13  ;;  %v275_v19 = vld [vmem:[%s3331_s12 + $0x14] sm:$0x1]  ;;  %v278_v20 = vld [vmem:[%s3331_s12 + $0x20] sm:$0x1]  ;;  %v311_v47 = vld [vmem:[%s3331_s12 + $0xa4] sm:$0x1]  ;;  %3026 = vmatprep.subr.bf16.mxu0 %v3222_v52  ;;  %3190 = vmatprep.subr.bf16.mxu1 %v3222_v52 }
  0x15   : > { %v327_v22 = vunpack.c.l.bf16 %v273_v14  ;;  %v328_v23 = vunpack.c.h.bf16 %v273_v14  ;;  %v329_v24 = vunpack.c.l.bf16 %v275_v19  ;;  %v332_v25 = vunpack.c.l.bf16 %v278_v20  ;;  %v309_v42 = vld [vmem:[%s3331_s12 + $0x9c] sm:$0xff]   ;;  %vm4349_vm12 = vmand %vm2112_vm7, %vm2572_vm9 }
  0x16   : > { %v395_v26 = vmul.f32 %v3321_v9, %v333_v15  ;;  %v396_v27 = vmul.f32 %v3321_v9, %v334_v16  ;;  %v392_v28 = vmul.f32 %v2984_v17, %v3321_v9  ;;  %v393_v29 = vmul.f32 %v2985_v18, %v3321_v9  ;;  %v3226_v19 = vld [vmem:[%s4833_s1 + $0x60] sm:$0xff]  }
  0x17   : > { %v389_v30 = vmul.f32 %v3321_v9, %v327_v22  ;;  %v390_v31 = vmul.f32 %v3321_v9, %v328_v23  ;;  %v391_v32 = vmul.f32 %v3321_v9, %v329_v24  ;;  %v394_v33 = vmul.f32 %v3321_v9, %v332_v25  ;;  %3027 = vmatpush3.bf16.msra.mxu0 %v3223_v61 }
  0x18   : > { %v455_v34 = vadd.f32 %v3346_v21, %v395_v26  ;;  %v456_v35 = vadd.f32 %v3346_v21, %v396_v27  ;;  %v452_v36 = vadd.f32 %v3346_v21, %v392_v28  ;;  %v453_v37 = vadd.f32 %v3346_v21, %v393_v29  ;;  %3198 = vmatpush3.bf16.msra.mxu1 %v3223_v61  ;;  %v281_v29 = vld [vmem:[%s3331_s12 + $0x2c] sm:$0x1] }
  0x19   : > { %v449_v38 = vadd.f32 %v3346_v21, %v389_v30  ;;  %v450_v39 = vadd.f32 %v3346_v21, %v390_v31  ;;  %v451_v40 = vadd.f32 %v3346_v21, %v391_v32  ;;  %v454_v41 = vadd.f32 %v3346_v21, %v394_v33  ;;  %3028 = vmatprep.subr.bf16.mxu0 %v3224_v62  ;;  %v3019_v33 = vld [vmem:[%s3331_s12 + $0x90] sm:$0xff]   ;;  %v3229_v61 = vld [vmem:[%s4833_s1 + $0x28] sm:$0xff]  }
  0x1a   : > { %v509_v43 = vmax.f32 %v455_v34, 0.0  ;;  %v510_v44 = vmax.f32 %v456_v35, 0.0  ;;  %v506_v45 = vmax.f32 %v452_v36, 0.0  ;;  %v507_v46 = vmax.f32 %v453_v37, 0.0  ;;  %3191 = vmatprep.subr.bf16.mxu1 %v3224_v62  ;;  %v3227_v34 = vld [vmem:[%s4833_s1 + $0x20] sm:$0xff]  }
  0x1b   : > { %v503_v48 = vmax.f32 %v449_v38, 0.0  ;;  %v504_v49 = vmax.f32 %v450_v39, 0.0  ;;  %v505_v50 = vmax.f32 %v451_v40, 0.0  ;;  %v508_v51 = vmax.f32 %v454_v41, 0.0  ;;  %3029 = vmatpush3.bf16.msra.mxu0 %v3225_v10  ;;  %v3228_v39 = vld [vmem:[%s4833_s1 + $0x68] sm:$0xff]  }
  0x1c   : > { %v585_v53 = vsel %vm558_vm0, %v509_v43, 0.0  ;;  %v582_v54 = vsel %vm558_vm0, %v506_v45, 0.0  ;;  %v363_v55 = vunpack.c.l.bf16 %v309_v42  ;;  %v364_v56 = vunpack.c.h.bf16 %v309_v42  ;;  %3199 = vmatpush3.bf16.msra.mxu1 %v3225_v10  ;;  %3030 = vmatprep.subr.bf16.mxu0 %v3226_v19  ;;  %v3230_v10 = vld [vmem:[%s4833_s1 + $0x70] sm:$0xff]  }
  0x1d   : > { %v3373_v57 = vpack.c.bf16 %v510_v44, %v585_v53  ;;  %v3375_v58 = vpack.c.bf16 %v507_v46, %v582_v54  ;;  %v579_v59 = vsel %vm558_vm0, %v503_v48, 0.0  ;;  %v581_v60 = vsel %vm569_vm1, %v505_v50, 0.0  ;;  %3192 = vmatprep.subr.bf16.mxu1 %v3226_v19  ;;  %v308_v48 = vld [vmem:[%s3331_s12 + $0x98] sm:$0x1] }
  0x1e   : > { %v3387_v63 = vpack.c.bf16 %v504_v49, %v579_v59  ;;  %v633_v0 = vpack.c.bf16 %v581_v60, %v581_v60  ;;  %v584_v6 = vsel %vm569_vm1, %v508_v51, 0.0  ;;  %v365_v8 = vunpack.c.l.bf16 %v311_v47  ;;  %v3020_v49 = vld [vmem:[%s3331_s12 + $0xa8] sm:$0xff]   ;;  %v314_v60 = vld [vmem:[%s3331_s12 + $0xb0] sm:$0x1] }
  0x1f   : > { %1088 = vrot.lane.b32.xlu0 %v3373_v57, %s3248_s23  ;;  %1086 = vrot.lane.b32.xlu1 %v3375_v58, %s3248_s23  ;;  %v635_v11 = vpack.c.bf16 %v584_v6, %v584_v6  ;;  %v930_v12 = vrot.slane %v3375_v58, 1  ;;  %v425_v13 = vmul.f32 %v3321_v9, %v363_v55  ;;  %v426_v14 = vmul.f32 %v3321_v9, %v364_v56 }
  0x20   : > { %v927_v15 = vrot.slane %v3387_v63, 1  ;;  %v928_v16 = vrot.slane %v633_v0, 1  ;;  %v427_v17 = vmul.f32 %v3321_v9, %v365_v8  ;;  %v692_v18 = vshrl.u32 %v3375_v58, 16  ;;  %3031 = vmatpush3.bf16.msra.mxu0 %v3227_v34  ;;  %3200 = vmatpush3.bf16.msra.mxu1 %v3227_v34 }
  0x21   : > { %v931_v20 = vrot.slane %v635_v11, 1  ;;  %v485_v22 = vadd.f32 %v3346_v21, %v425_v13  ;;  %v486_v23 = vadd.f32 %v3346_v21, %v426_v14  ;;  %v694_v24 = vshll.u32 %v3375_v58, 16  ;;  %3032 = vmatprep.subr.bf16.mxu0 %v3228_v39  ;;  %3193 = vmatprep.subr.bf16.mxu1 %v3228_v39 }
  0x22   : > { %v929_v25 = vsel %vm923_vm2, %v927_v15, %v928_v16  ;;  %v487_v26 = vadd.f32 %v3346_v21, %v427_v17  ;;  %v699_v27 = vshll.u32 %v635_v11, 16  ;;  %v680_v28 = vshrl.u32 %v3387_v63, 16 }
  0x23   : > { %1005 = vrot.lane.b32.xlu1 %v3387_v63, %s3250_s8  ;;  %1053 = vrot.lane.b32.xlu0 %v929_v25, %s3249_s24  ;;  %v539_v30 = vmax.f32 %v485_v22, 0.0  ;;  %v540_v31 = vmax.f32 %v486_v23, 0.0  ;;  %v696_v32 = vrot.slane %v694_v24, 1  ;;  %v3422_v35 = vsel %vm923_vm2, %v930_v12, %v931_v20  ;;  %v3015_v23 = vld [vmem:[%s3331_s12 + $0x30] sm:$0xff]  }
  0x24   : > { %v541_v36 = vmax.f32 %v487_v26, 0.0  ;;  %v682_v37 = vshll.u32 %v3387_v63, 16  ;;  %v687_v38 = vshll.u32 %v633_v0, 16  ;;  %v701_v42 = vrot.slane %v699_v27, 1  ;;  %3033 = vmatpush3.bf16.msra.mxu0 %v3229_v61  ;;  %v3231_v24 = vld [vmem:[%s4833_s1 + $0x30] sm:$0xff]   ;;  %3201 = vmatpush3.bf16.msra.mxu1 %v3229_v61 }
  0x25   : > { %v615_v40 = vsel %vm558_vm0, %v539_v30, 0.0  ;;  %v697_v41 = vor.u32 %v696_v32, %v692_v18  ;;  %v335_v43 = vunpack.c.l.bf16 %v281_v29  ;;  %v704_v47 = vshrl.u32 %v3373_v57, 16  ;;  %3034 = vmatprep.subr.bf16.mxu0 %v3230_v10  ;;  %v3232_v29 = vld [vmem:[%s4833_s1 + $0x78] sm:$0xff]   ;;  %3194 = vmatprep.subr.bf16.mxu1 %v3230_v10 }
  0x26   : > { %v617_v44 = vsel %vm569_vm1, %v541_v36, 0.0  ;;  %v3432_v45 = vpack.c.bf16 %v540_v31, %v615_v40  ;;  %v684_v46 = vrot.slane %v682_v37, 1  ;;  %v689_v51 = vrot.slane %v687_v38, 1 }
  0x27   : > { %1007 = vrot.lane.b32.xlu1 %v3375_v58, %s3250_s8  ;;  %1055 = vrot.lane.b32.xlu0 %v3422_v35, %s3249_s24  ;;  %v3441_v50 = vpack.c.bf16 %v617_v44, %v617_v44  ;;  %v397_v52 = vmul.f32 %v3321_v9, %v335_v43  ;;  %v706_v53 = vshll.u32 %v3373_v57, 16  ;;  %v3004_v56 = vunpack.c.l.bf16 %v3019_v33  ;;  %v3233_v43 = vld [vmem:[%s4833_s1 + $0x38] sm:$0xff]  }
  0x28   : > { %v963_v54 = vrot.slane %v3432_v45, 1  ;;  %v685_v55 = vor.u32 %v684_v46, %v680_v28  ;;  %v3005_v59 = vunpack.c.h.bf16 %v3019_v33  ;;  %v362_v8 = vunpack.c.l.bf16 %v308_v48  ;;  %3035 = vmatpush3.bf16.msra.mxu0 %v3231_v24  ;;  %3202 = vmatpush3.bf16.msra.mxu1 %v3231_v24 }
  0x29   : > { %v964_v62 = vrot.slane %v3441_v50, 1  ;;  %v457_v0 = vadd.f32 %v3346_v21, %v397_v52  ;;  %v708_v6 = vrot.slane %v706_v53, 1  ;;  %v422_v11 = vmul.f32 %v3004_v56, %v3321_v9  ;;  %3036 = vmatprep.subr.bf16.mxu0 %v3232_v29  ;;  %3195 = vmatprep.subr.bf16.mxu1 %v3232_v29 }
  0x2a   : > { %v423_v12 = vmul.f32 %v3005_v59, %v3321_v9  ;;  %v3008_v13 = vunpack.c.l.bf16 %v3020_v49  ;;  %v3462_v15 = vsel %vm666_vm3, %v685_v55, %v689_v51  ;;  %v424_v17 = vmul.f32 %v3321_v9, %v362_v8 }
  0x2b   : > { %974 = vrot.lane.b32.xlu1 %v929_v25, %s3248_s23  ;;  %v3459_v14 = vsel %vm923_vm2, %v963_v54, %v964_v62  ;;  %v511_v16 = vmax.f32 %v457_v0, 0.0  ;;  %v482_v18 = vadd.f32 %v3346_v21, %v422_v11  ;;  %v3009_v20 = vunpack.c.h.bf16 %v3020_v49 }
  0x2c   : > { %4851 = vst [vmem:[#allocation3_spill] sm:$0xff] %v3459_v14  ;;  %1077 = vrot.lane.b32.xlu0 %v3459_v14, %s3249_s24  ;;  %v483_v19 = vadd.f32 %v3346_v21, %v423_v12  ;;  %v428_v22 = vmul.f32 %v3008_v13, %v3321_v9  ;;  %v3475_v25 = vsel %vm666_vm3, %v697_v41, %v701_v42  ;;  %v368_v28 = vunpack.c.l.bf16 %v314_v60  ;;  %v284_v12 = vld [vmem:[%s3331_s12 + $0x38] sm:$0x1] }
  0x2d   : > { %v587_v26 = vsel %vm569_vm1, %v511_v16, 0.0  ;;  %v484_v27 = vadd.f32 %v3346_v21, %v424_v17  ;;  %v536_v31 = vmax.f32 %v482_v18, 0.0  ;;  %v429_v33 = vmul.f32 %v3009_v20, %v3321_v9  ;;  %3037 = vmatpush3.bf16.msra.mxu0 %v3233_v43  ;;  %3203 = vmatpush3.bf16.msra.mxu1 %v3233_v43 }
  0x2e   : > { %v3483_v30 = vpack.c.bf16 %v587_v26, %v587_v26  ;;  %v537_v32 = vmax.f32 %v483_v19, 0.0  ;;  %v709_v34 = vor.u32 %v708_v6, %v704_v47  ;;  %v488_v37 = vadd.f32 %v3346_v21, %v428_v22 }
  0x2f   : > { %861 = vrot.lane.b32.xlu1 %v3462_v15, %s3249_s24  ;;  %v538_v36 = vmax.f32 %v484_v27, 0.0  ;;  %v430_v38 = vmul.f32 %v3321_v9, %v368_v28  ;;  %v612_v40 = vsel %vm558_vm0, %v536_v31, 0.0  ;;  %v489_v41 = vadd.f32 %v3346_v21, %v429_v33  ;;  %v315_v31 = vld [vmem:[%s3331_s12 + $0xb4] sm:$0xff]  }
  0x30   : > { %1130 = vrot.lane.b32.xlu0 %v3475_v25, %s3250_s8  ;;  %v711_v39 = vshll.u32 %v3483_v30, 16  ;;  %v2988_v42 = vunpack.c.l.bf16 %v3015_v23  ;;  %v3501_v46 = vpack.c.bf16 %v537_v32, %v612_v40  ;;  %v542_v47 = vmax.f32 %v488_v37, 0.0  ;;  %v317_v40 = vld [vmem:[%s3331_s12 + $0xbc] sm:$0x1] }
  0x31   : > { %v614_v44 = vsel %vm569_vm1, %v538_v36, 0.0  ;;  %v490_v48 = vadd.f32 %v3346_v21, %v430_v38  ;;  %v543_v52 = vmax.f32 %v489_v41, 0.0  ;;  %v933_v53 = vrot.slane %v3373_v57, 1 }
  0x32   : > { %v713_v49 = vrot.slane %v711_v39, 1  ;;  %v655_v51 = vpack.c.bf16 %v614_v44, %v614_v44  ;;  %v812_v54 = vshrl.u32 %v3501_v46, 16  ;;  %v814_v55 = vshll.u32 %v3501_v46, 16 }
  0x33   : > { %v618_v56 = vsel %vm558_vm0, %v542_v47, 0.0  ;;  %v934_v59 = vrot.slane %v3483_v30, 1  ;;  %v960_v0 = vrot.slane %v3501_v46, 1  ;;  %v544_v8 = vmax.f32 %v490_v48, 0.0 }
  0x34   : > { %v3511_v60 = vsel %vm666_vm3, %v709_v34, %v713_v49  ;;  %v819_v61 = vshll.u32 %v655_v51, 16  ;;  %v3513_v62 = vpack.c.bf16 %v543_v52, %v618_v56  ;;  %v816_v6 = vrot.slane %v814_v55, 1  ;;  %v285_v56 = vld [vmem:[%s3331_s12 + $0x3c] sm:$0xff]  }
  0x35   : > { %1132 = vrot.lane.b32.xlu0 %v3511_v60, %s3250_s8  ;;  %v2989_v10 = vunpack.c.h.bf16 %v3015_v23  ;;  %v398_v11 = vmul.f32 %v2988_v42, %v3321_v9  ;;  %v961_v16 = vrot.slane %v655_v51, 1  ;;  %v620_v20 = vsel %vm569_vm1, %v544_v8, 0.0 }
  0x36   : > { %v821_v13 = vrot.slane %v819_v61, 1  ;;  %v836_v17 = vshrl.u32 %v3513_v62, 16  ;;  %v838_v18 = vshll.u32 %v3513_v62, 16  ;;  %v817_v19 = vor.u32 %v816_v6, %v812_v54 }
  0x37   : > { %v399_v22 = vmul.f32 %v2989_v10, %v3321_v9  ;;  %v458_v24 = vadd.f32 %v3346_v21, %v398_v11  ;;  %v3526_v23 = vpack.c.bf16 %v620_v20, %v620_v20  ;;  %v338_v27 = vunpack.c.l.bf16 %v284_v12 }
  0x38   : > { %v840_v26 = vrot.slane %v838_v18, 1  ;;  %v3529_v28 = vsel %vm666_vm3, %v817_v19, %v821_v13  ;;  %v3538_v32 = vsel %vm923_vm2, %v933_v53, %v934_v59  ;;  %v3543_v36 = vsel %vm923_vm2, %v960_v0, %v961_v16  ;;  %v287_v18 = vld [vmem:[%s3331_s12 + $0x44] sm:$0x1] }
  0x39   : > { %1110 = vrot.lane.b32.xlu0 %v3513_v62, %s3248_s23  ;;  %v459_v29 = vadd.f32 %v3346_v21, %v399_v22  ;;  %v512_v30 = vmax.f32 %v458_v24, 0.0  ;;  %883 = vrot.lane.b32.xlu1 %v3529_v28, %s3249_s24  ;;  %4852 = vst [vmem:[#allocation4_spill] sm:$0xff] %v3538_v32  ;;  %v843_v33 = vshll.u32 %v3526_v23, 16  ;;  %v400_v34 = vmul.f32 %v3321_v9, %v338_v27 }
  0x3a   : > { %v841_v37 = vor.u32 %v840_v26, %v836_v17  ;;  %v369_v43 = vunpack.c.l.bf16 %v315_v31  ;;  %v370_v47 = vunpack.c.h.bf16 %v315_v31  ;;  %v371_v51 = vunpack.c.l.bf16 %v317_v40 }
  0x3b   : > { %v513_v38 = vmax.f32 %v459_v29, 0.0  ;;  %v588_v39 = vsel %vm558_vm0, %v512_v30, 0.0  ;;  %v845_v41 = vrot.slane %v843_v33, 1  ;;  %v460_v42 = vadd.f32 %v3346_v21, %v400_v34 }
  0x3c   : > { %v431_v49 = vmul.f32 %v3321_v9, %v369_v43  ;;  %v432_v55 = vmul.f32 %v3321_v9, %v370_v47  ;;  %v433_v0 = vmul.f32 %v3321_v9, %v371_v51  ;;  %v826_v10 = vshll.u32 %v3432_v45, 16 }
  0x3d   : > { %1057 = vrot.lane.b32.xlu0 %v3538_v32, %s3249_s24  ;;  %v3551_v44 = vpack.c.bf16 %v513_v38, %v588_v39  ;;  %996 = vrot.lane.b32.xlu1 %v3543_v36, %s3248_s23  ;;  %v514_v48 = vmax.f32 %v460_v42, 0.0  ;;  %v3557_v52 = vsel %vm666_vm3, %v841_v37, %v845_v41  ;;  %v339_v16 = vunpack.c.l.bf16 %v285_v56 }
  0x3e   : > { %v491_v61 = vadd.f32 %v3346_v21, %v431_v49  ;;  %v492_v11 = vadd.f32 %v3346_v21, %v432_v55  ;;  %v493_v13 = vadd.f32 %v3346_v21, %v433_v0  ;;  %v340_v17 = vunpack.c.h.bf16 %v285_v56  ;;  %v3021_v49 = vld [vmem:[%s3331_s12 + $0xc0] sm:$0xff]  }
  0x3f   : > { %v716_v53 = vshrl.u32 %v3551_v44, 16  ;;  %v718_v54 = vshll.u32 %v3551_v44, 16  ;;  %v590_v59 = vsel %vm569_vm1, %v514_v48, 0.0  ;;  %v966_v22 = vrot.slane %v3513_v62, 1 }
  0x40   : > { %v3569_v6 = vpack.c.bf16 %v590_v59, %v590_v59  ;;  %v545_v12 = vmax.f32 %v491_v61, 0.0  ;;  %v546_v24 = vmax.f32 %v492_v11, 0.0  ;;  %v547_v27 = vmax.f32 %v493_v13, 0.0  ;;  %v320_v11 = vld [vmem:[%s3331_s12 + $0xc8] sm:$0x1] }
  0x41   : > { %863 = vrot.lane.b32.xlu0 %v3475_v25, %s3249_s24  ;;  %v720_v8 = vrot.slane %v718_v54, 1  ;;  %1154 = vrot.lane.b32.xlu1 %v3557_v52, %s3250_s8  ;;  %v401_v29 = vmul.f32 %v3321_v9, %v339_v16  ;;  %v402_v30 = vmul.f32 %v3321_v9, %v340_v17  ;;  %v967_v33 = vrot.slane %v3526_v23, 1 }
  0x42   : > { %v723_v20 = vshll.u32 %v3569_v6, 16  ;;  %v621_v26 = vsel %vm558_vm0, %v545_v12, 0.0  ;;  %v824_v34 = vshrl.u32 %v3432_v45, 16  ;;  %v341_v37 = vunpack.c.l.bf16 %v287_v18 }
  0x43   : > { %v721_v19 = vor.u32 %v720_v8, %v716_v53  ;;  %v828_v38 = vrot.slane %v826_v10, 1  ;;  %v831_v39 = vshll.u32 %v3441_v50, 16  ;;  %v461_v40 = vadd.f32 %v3346_v21, %v401_v29 }
  0x44   : > { %v725_v31 = vrot.slane %v723_v20, 1  ;;  %v462_v41 = vadd.f32 %v3346_v21, %v402_v30  ;;  %v3595_v43 = vpack.c.bf16 %v546_v24, %v621_v26  ;;  %v623_v23 = vsel %vm569_vm1, %v547_v27, 0.0  ;;  %v3016_v27 = vld [vmem:[%s3331_s12 + $0x48] sm:$0xff]  }
  0x45   : > { %1090 = vrot.lane.b32.xlu0 %v3551_v44, %s3248_s23  ;;  %1029 = vrot.lane.b32.xlu1 %v3432_v45, %s3250_s8  ;;  %v515_v47 = vmax.f32 %v461_v40, 0.0  ;;  %v403_v48 = vmul.f32 %v3321_v9, %v341_v37  ;;  %v3603_v50 = vsel %vm923_vm2, %v966_v22, %v967_v33  ;;  %v829_v51 = vor.u32 %v828_v38, %v824_v34  ;;  %v290_v40 = vld [vmem:[%s3331_s12 + $0x50] sm:$0x1] }
  0x46   : > { %v3593_v42 = vsel %vm666_vm3, %v721_v19, %v725_v31  ;;  %4853 = vst [vmem:[#allocation5_spill] sm:$0xff] %v3603_v50  ;;  %v833_v53 = vrot.slane %v831_v39, 1  ;;  %v516_v54 = vmax.f32 %v462_v41, 0.0  ;;  %v3609_v56 = vpack.c.bf16 %v623_v23, %v623_v23 }
  0x47   : > { %v463_v55 = vadd.f32 %v3346_v21, %v403_v48  ;;  %v850_v59 = vshll.u32 %v3595_v43, 16  ;;  %v591_v61 = vsel %vm558_vm0, %v515_v47, 0.0  ;;  %v3012_v8 = vunpack.c.l.bf16 %v3021_v49 }
  0x48   : > { %v936_v10 = vrot.slane %v3551_v44, 1  ;;  %v3621_v12 = vsel %vm666_vm3, %v829_v51, %v833_v53  ;;  %v937_v13 = vrot.slane %v3569_v6, 1  ;;  %v848_v16 = vshrl.u32 %v3595_v43, 16 }
  0x49   : > { %1134 = vrot.lane.b32.xlu0 %v3593_v42, %s3250_s8  ;;  %976 = vrot.lane.b32.xlu1 %v3422_v35, %s3248_s23  ;;  %v517_v0 = vmax.f32 %v463_v55, 0.0  ;;  %v3625_v17 = vpack.c.bf16 %v516_v54, %v591_v61  ;;  %v852_v18 = vrot.slane %v850_v59, 1  ;;  %v855_v19 = vshll.u32 %v3609_v56, 16 }
  0x4a   : > { %v3013_v22 = vunpack.c.h.bf16 %v3021_v49  ;;  %v434_v24 = vmul.f32 %v3012_v8, %v3321_v9  ;;  %v374_v26 = vunpack.c.l.bf16 %v320_v11  ;;  %v3637_v6 = vsel %vm923_vm2, %v936_v10, %v937_v13 }
  0x4b   : > { %v593_v20 = vsel %vm569_vm1, %v517_v0, 0.0  ;;  %4854 = vst [vmem:[#allocation6_spill] sm:$0xff] %v3637_v6  ;;  %v730_v30 = vshll.u32 %v3625_v17, 16  ;;  %v853_v31 = vor.u32 %v852_v18, %v848_v16  ;;  %v857_v33 = vrot.slane %v855_v19, 1 }
  0x4c   : > { %v3639_v29 = vpack.c.bf16 %v593_v20, %v593_v20  ;;  %v435_v34 = vmul.f32 %v3013_v22, %v3321_v9  ;;  %v2992_v37 = vunpack.c.l.bf16 %v3016_v27  ;;  %v494_v38 = vadd.f32 %v3346_v21, %v434_v24 }
  0x4d   : > { %1079 = vrot.lane.b32.xlu0 %v3603_v50, %s3249_s24  ;;  %1009 = vrot.lane.b32.xlu1 %v3373_v57, %s3250_s8  ;;  %v436_v39 = vmul.f32 %v3321_v9, %v374_v26  ;;  %v728_v41 = vshrl.u32 %v3625_v17, 16  ;;  %v732_v23 = vrot.slane %v730_v30, 1  ;;  %v2993_v48 = vunpack.c.h.bf16 %v3016_v27 }
  0x4e   : > { %v735_v47 = vshll.u32 %v3639_v29, 16  ;;  %v3653_v49 = vsel %vm666_vm3, %v853_v31, %v857_v33  ;;  %v495_v51 = vadd.f32 %v3346_v21, %v435_v34  ;;  %v404_v53 = vmul.f32 %v2992_v37, %v3321_v9 }
  0x4f   : > { %v344_v54 = vunpack.c.l.bf16 %v290_v40  ;;  %v548_v55 = vmax.f32 %v494_v38, 0.0  ;;  %v496_v59 = vadd.f32 %v3346_v21, %v436_v39  ;;  %v733_v61 = vor.u32 %v732_v23, %v728_v41 }
  0x50   : > { %v737_v0 = vrot.slane %v735_v47, 1  ;;  %v405_v8 = vmul.f32 %v2993_v48, %v3321_v9  ;;  %v549_v10 = vmax.f32 %v495_v51, 0.0  ;;  %v464_v11 = vadd.f32 %v3346_v21, %v404_v53 }
  0x51   : > { %1112 = vrot.lane.b32.xlu0 %v3595_v43, %s3248_s23  ;;  %885 = vrot.lane.b32.xlu1 %v3621_v12, %s3249_s24  ;;  %v406_v13 = vmul.f32 %v3321_v9, %v344_v54  ;;  %v624_v16 = vsel %vm558_vm0, %v548_v55, 0.0  ;;  %v550_v18 = vmax.f32 %v496_v59, 0.0  ;;  %v969_v20 = vrot.slane %v3595_v43, 1  ;;  %v291_v54 = vld [vmem:[%s3331_s12 + $0x54] sm:$0xff]  }
  0x52   : > { %v3672_v19 = vsel %vm666_vm3, %v733_v61, %v737_v0  ;;  %v970_v22 = vrot.slane %v3609_v56, 1  ;;  %v465_v24 = vadd.f32 %v3346_v21, %v405_v8  ;;  %v3677_v26 = vpack.c.bf16 %v549_v10, %v624_v16  ;;  %v293_v10 = vld [vmem:[%s3331_s12 + $0x5c] sm:$0x1] }
  0x53   : > { %v518_v27 = vmax.f32 %v464_v11, 0.0  ;;  %v466_v30 = vadd.f32 %v3346_v21, %v406_v13  ;;  %v626_v31 = vsel %vm569_vm1, %v550_v18, 0.0  ;;  %v939_v40 = vrot.slane %v3625_v17, 1 }
  0x54   : > { %v3687_v33 = vsel %vm923_vm2, %v969_v20, %v970_v22  ;;  %v519_v56 = vmax.f32 %v465_v24, 0.0  ;;  %v663_v34 = vpack.c.bf16 %v626_v31, %v626_v31  ;;  %v1040_v37 = vshll.u32 %v3677_v26, 16 }
  0x55   : > { %1059 = vrot.lane.b32.xlu0 %v3637_v6, %s3249_s24  ;;  %998 = vrot.lane.b32.xlu1 %v3459_v14, %s3248_s23  ;;  %4855 = vst [vmem:[#allocation7_spill] sm:$0xff] %v3687_v33  ;;  %v594_v38 = vsel %vm558_vm0, %v518_v27, 0.0  ;;  %v520_v39 = vmax.f32 %v466_v30, 0.0  ;;  %v940_v41 = vrot.slane %v3639_v29, 1  ;;  %v1038_v47 = vshrl.u32 %v3677_v26, 16 }
  0x56   : > { %v3698_v23 = vpack.c.bf16 %v519_v56, %v594_v38  ;;  %v1042_v48 = vrot.slane %v1040_v37, 1  ;;  %v1045_v51 = vshll.u32 %v663_v34, 16  ;;  %v345_v8 = vunpack.c.l.bf16 %v291_v54  ;;  %v3017_v38 = vld [vmem:[%s3331_s12 + $0x60] sm:$0xff]  }
  0x57   : > { %v596_v53 = vsel %vm569_vm1, %v520_v39, 0.0  ;;  %v3709_v55 = vsel %vm923_vm2, %v939_v40, %v940_v41  ;;  %v346_v18 = vunpack.c.h.bf16 %v291_v54  ;;  %v347_v24 = vunpack.c.l.bf16 %v293_v10  ;;  %v296_v54 = vld [vmem:[%s3331_s12 + $0x68] sm:$0x1] }
  0x58   : > { %4856 = vst [vmem:[#allocation8_spill] sm:$0xff] %v3698_v23  ;;  %4857 = vst [vmem:[#allocation9_spill] sm:$0xff] %v3709_v55  ;;  %v643_v29 = vpack.c.bf16 %v596_v53, %v596_v53  ;;  %v742_v59 = vshll.u32 %v3698_v23, 16  ;;  %v1043_v61 = vor.u32 %v1042_v48, %v1038_v47  ;;  %v1047_v0 = vrot.slane %v1045_v51, 1 }
  0x59   : > { %865 = vrot.lane.b32.xlu0 %v3511_v60, %s3249_s24  ;;  %1156 = vrot.lane.b32.xlu1 %v3653_v49, %s3250_s8  ;;  %v740_v11 = vshrl.u32 %v3698_v23, 16  ;;  %v407_v22 = vmul.f32 %v3321_v9, %v345_v8  ;;  %v408_v31 = vmul.f32 %v3321_v9, %v346_v18  ;;  %v409_v37 = vmul.f32 %v3321_v9, %v347_v24  ;;  %v297_v24 = vld [vmem:[%s3331_s12 + $0x6c] sm:$0xff]  }
  0x5a   : > { %v744_v13 = vrot.slane %v742_v59, 1  ;;  %v747_v16 = vshll.u32 %v643_v29, 16  ;;  %v3719_v20 = vsel %vm666_vm3, %v1043_v61, %v1047_v0  ;;  %v1050_v40 = vrot.slane %v3677_v26, 1 }
  0x5b   : > { %v467_v56 = vadd.f32 %v3346_v21, %v407_v22  ;;  %v1051_v41 = vrot.slane %v663_v34, 1  ;;  %v468_v47 = vadd.f32 %v3346_v21, %v408_v31  ;;  %v469_v51 = vadd.f32 %v3346_v21, %v409_v37 }
  0x5c   : > { %v745_v27 = vor.u32 %v744_v13, %v740_v11  ;;  %v749_v30 = vrot.slane %v747_v16, 1  ;;  %v2996_v53 = vunpack.c.l.bf16 %v3017_v38  ;;  %v2997_v0 = vunpack.c.h.bf16 %v3017_v38 }
  0x5d   : > { %1092 = vrot.lane.b32.xlu0 %v3625_v17, %s3248_s23  ;;  %1031 = vrot.lane.b32.xlu1 %v3513_v62, %s3250_s8  ;;  %v521_v48 = vmax.f32 %v467_v56, 0.0  ;;  %v3746_v59 = vsel %vm923_vm2, %v1050_v40, %v1051_v41  ;;  %v522_v61 = vmax.f32 %v468_v47, 0.0  ;;  %v523_v8 = vmax.f32 %v469_v51, 0.0  ;;  %v3767_v56 = vld [vmem:[%s4833_s1 + $0x80] sm:$0xff]   ;;  %v299_v51 = vld [vmem:[%s3331_s12 + $0x74] sm:$0x1] }
  0x5e   : > { %v3735_v39 = vsel %vm666_vm3, %v745_v27, %v749_v30  ;;  %4858 = vst [vmem:[#allocation10_spill] sm:$0xff] %v3746_v59  ;;  %v410_v10 = vmul.f32 %v2996_v53, %v3321_v9  ;;  %v350_v11 = vunpack.c.l.bf16 %v296_v54  ;;  %v942_v13 = vrot.slane %v3698_v23, 1  ;;  %3152 = vmatprep.subr.bf16.mxu1 %v3767_v56 }
  0x5f   : > { %v597_v34 = vsel %vm558_vm0, %v521_v48, 0.0  ;;  %v943_v16 = vrot.slane %v643_v29, 1  ;;  %v411_v22 = vmul.f32 %v2997_v0, %v3321_v9  ;;  %v599_v27 = vsel %vm569_vm1, %v523_v8, 0.0 }
  0x60   : > { %v3756_v18 = vpack.c.bf16 %v522_v61, %v597_v34  ;;  %v470_v30 = vadd.f32 %v3346_v21, %v410_v10  ;;  %v412_v31 = vmul.f32 %v3321_v9, %v350_v11  ;;  %v351_v29 = vunpack.c.l.bf16 %v297_v24 }
  0x61   : > { %1136 = vrot.lane.b32.xlu0 %v3672_v19, %s3250_s8  ;;  %978 = vrot.lane.b32.xlu1 %v3538_v32, %s3248_s23  ;;  %v3774_v37 = vsel %vm923_vm2, %v942_v13, %v943_v16  ;;  %v645_v38 = vpack.c.bf16 %v599_v27, %v599_v27  ;;  %v471_v41 = vadd.f32 %v3346_v21, %v411_v22  ;;  %v353_v11 = vunpack.c.l.bf16 %v299_v51 }
  0x62   : > { %v754_v40 = vshll.u32 %v3756_v18, 16  ;;  %v524_v47 = vmax.f32 %v470_v30, 0.0  ;;  %v472_v48 = vadd.f32 %v3346_v21, %v412_v31  ;;  %v413_v53 = vmul.f32 %v3321_v9, %v351_v29 }
  0x63   : > { %v752_v54 = vshrl.u32 %v3756_v18, 16  ;;  %v759_v0 = vshll.u32 %v645_v38, 16  ;;  %v525_v34 = vmax.f32 %v471_v41, 0.0  ;;  %v3018_v41 = vld [vmem:[%s3331_s12 + $0x78] sm:$0xff]   ;;  %vm2247_vm10 = vsmask.f32 256 }
  0x64   : > { %v756_v61 = vrot.slane %v754_v40, 1  ;;  %v600_v8 = vsel %vm558_vm0, %v524_v47, 0.0  ;;  %v526_v10 = vmax.f32 %v472_v48, 0.0  ;;  %v473_v27 = vadd.f32 %v3346_v21, %v413_v53  ;;  %vm4370_vm14 = vmand %vm1992_vm8, %vm2247_vm10 }
  0x65   : > { %1081 = vrot.lane.b32.xlu0 %v3687_v33, %s3249_s24  ;;  %1011 = vrot.lane.b32.xlu1 %v3551_v44, %s3250_s8  ;;  %v761_v22 = vrot.slane %v759_v0, 1  ;;  %v415_v40 = vmul.f32 %v3321_v9, %v353_v11  ;;  %v946_v47 = vrot.slane %v645_v38, 1  ;;  %v302_v0 = vld [vmem:[%s3331_s12 + $0x80] sm:$0x1]  ;;  %vm2248_vm11 = vsmask.f32 4368 }
  0x66   : > { %v757_v16 = vor.u32 %v756_v61, %v752_v54  ;;  %v602_v29 = vsel %vm569_vm1, %v526_v10, 0.0  ;;  %v527_v54 = vmax.f32 %v473_v27, 0.0  ;;  %v3000_v61 = vunpack.c.l.bf16 %v3018_v41  ;;  %vm4361_vm13 = vmor %vm2247_vm10, %vm2248_vm11 }
  0x68   : > { %v3812_v51 = vsel %vm666_vm3, %v757_v16, %v761_v22  ;;  %v603_v16 = vsel %vm558_vm0, %v527_v54, 0.0  ;;  %v3001_v22 = vunpack.c.h.bf16 %v3018_v41 }
  0x69   : > { %1114 = vrot.lane.b32.xlu0 %v3677_v26, %s3248_s23  ;;  %887 = vrot.lane.b32.xlu1 %v3557_v52, %s3249_s24 }
  0x6d   : > { %1061 = vrot.lane.b32.xlu0 %v3709_v55, %s3249_s24  ;;  %1000 = vrot.lane.b32.xlu1 %v3603_v50, %s3248_s23  ;;  %v305_v50 = vld [vmem:[%s3331_s12 + $0x8c] sm:$0x1] }
  0x71   : > { %867 = vrot.lane.b32.xlu0 %v3593_v42, %s3249_s24  ;;  %1158 = vrot.lane.b32.xlu1 %v3719_v20, %s3250_s8 }
  0x75   : > { %1094 = vrot.lane.b32.xlu0 %v3698_v23, %s3248_s23  ;;  %1033 = vrot.lane.b32.xlu1 %v3595_v43, %s3250_s8 }
  0x79   : > { %1138 = vrot.lane.b32.xlu0 %v3735_v39, %s3250_s8  ;;  %980 = vrot.lane.b32.xlu1 %v3637_v6, %s3248_s23 }
  0x7d   : > { %1083 = vrot.lane.b32.xlu0 %v3746_v59, %s3249_s24  ;;  %1013 = vrot.lane.b32.xlu1 %v3625_v17, %s3250_s8 }
  0x81   : > { %1116 = vrot.lane.b32.xlu0 %v3246_v1, %s3248_s23  ;;  %889 = vrot.lane.b32.xlu1 %v3653_v49, %s3249_s24  ;;  %v352_v1 = vunpack.c.h.bf16 %v297_v24  ;;  %v3794_v24 = vpack.c.bf16 %v525_v34, %v600_v8 }
  0x82   : > { %v3797_v30 = vpop.permute.xlu1 %972  ;;  %v3799_v31 = vpop.permute.xlu0 %859 }
  0x83   : > { %v414_v13 = vmul.f32 %v3321_v9, %v352_v1  ;;  %v647_v1 = vpack.c.bf16 %v602_v29, %v602_v29  ;;  %v766_v53 = vshll.u32 %v3794_v24, 16  ;;  %v475_v9 = vadd.f32 %v3346_v21, %v415_v40  ;;  %v3236_v29 = vld [vmem:[%s4834_s2] ss:$0 sm:$0xff] }
  0x84   : > { %v764_v8 = vshrl.u32 %v3794_v24, 16  ;;  %v416_v40 = vmul.f32 %v3236_v29, %v3000_v61  ;;  %v417_v54 = vmul.f32 %v3236_v29, %v3001_v22 }
  0x85   : > { %1063 = vrot.lane.b32.xlu0 %v3774_v37, %s3249_s24  ;;  %1002 = vrot.lane.b32.xlu1 %v3687_v33, %s3248_s23  ;;  %v474_v48 = vadd.f32 %v3346_v21, %v414_v13  ;;  %v768_v11 = vrot.slane %v766_v53, 1  ;;  %v771_v13 = vshll.u32 %v647_v1, 16  ;;  %v529_v27 = vmax.f32 %v475_v9, 0.0 }
  0x86   : > { %v476_v2 = vadd.f32 %v3346_v21, %v416_v40  ;;  %v949_v33 = vrot.slane %v647_v1, 1 }
  0x87   : > { %v528_v10 = vmax.f32 %v474_v48, 0.0  ;;  %v769_v53 = vor.u32 %v768_v11, %v764_v8  ;;  %v773_v41 = vrot.slane %v771_v13, 1  ;;  %v605_v9 = vsel %vm569_vm1, %v529_v27, 0.0  ;;  %v3237_v13 = vld [vmem:[%s4835_s3] ss:$0 sm:$0xff] }
  0x88   : > { %v649_v21 = vpack.c.bf16 %v605_v9, %v605_v9  ;;  %v477_v22 = vadd.f32 %v3237_v13, %v417_v54  ;;  %v530_v40 = vmax.f32 %v476_v2, 0.0 }
  0x89   : > { %869 = vrot.lane.b32.xlu0 %v3672_v19, %s3249_s24  ;;  %1160 = vrot.lane.b32.xlu1 %v3298_v4, %s3250_s8  ;;  %v945_v4 = vrot.slane %v3756_v18, 1  ;;  %v3836_v3 = vpack.c.bf16 %v528_v10, %v603_v16  ;;  %v948_v16 = vrot.slane %v3794_v24, 1  ;;  %v3853_v11 = vsel %vm666_vm3, %v769_v53, %v773_v41 }
  0x8a   : > { %v783_v2 = vshll.u32 %v649_v21, 16  ;;  %v531_v9 = vmax.f32 %v477_v22, 0.0  ;;  %v606_v6 = vsel %vm558_vm0, %v530_v40, 0.0 }
  0x8b   : > { %v778_v8 = vshll.u32 %v3836_v3, 16  ;;  %v776_v14 = vshrl.u32 %v3836_v3, 16  ;;  %v3867_v54 = vsel %vm923_vm2, %v948_v16, %v949_v33 }
  0x8d   : > { %1096 = vrot.lane.b32.xlu0 %v3756_v18, %s3248_s23  ;;  %1035 = vrot.lane.b32.xlu1 %v3677_v26, %s3250_s8  ;;  %v3824_v26 = vsel %vm923_vm2, %v945_v4, %v946_v47  ;;  %v356_v4 = vunpack.c.l.bf16 %v302_v0  ;;  %v303_v0 = vld [vmem:[%s3331_s12 + $0x84] sm:$0xff]  }
  0x8e   : > { %v357_v27 = vunpack.c.l.bf16 %v303_v0  ;;  %v358_v53 = vunpack.c.h.bf16 %v303_v0  ;;  %v1168_v0 = vsel %vm1166_vm4, 0.0|0.0, %v3799_v31 }
  0x8f   : > { %v418_v61 = vmul.f32 %v3236_v29, %v356_v4  ;;  %v1201_v31 = vsel %vm1199_vm5, %v1168_v0, %v3797_v30  ;;  %v952_v30 = vrot.slane %v649_v21, 1 }
  0x90   : > { %v420_v16 = vmul.f32 %v3236_v29, %v358_v53 }
  0x91   : > { %1140 = vrot.lane.b32.xlu0 %v3812_v51, %s3250_s8  ;;  %v3819_v38 = vpop.permute.xlu0 %1088  ;;  %v3821_v34 = vpop.permute.xlu1 %1086  ;;  %982 = vrot.lane.b32.xlu1 %v3709_v55, %s3248_s23  ;;  %v478_v4 = vadd.f32 %v3237_v13, %v418_v61  ;;  %v419_v61 = vmul.f32 %v3236_v29, %v357_v27  ;;  %v3881_v27 = vpack.c.bf16 %v531_v9, %v606_v6  ;;  %v951_v6 = vrot.slane %v3836_v3, 1 }
  0x93   : > { %v532_v32 = vmax.f32 %v478_v4, 0.0  ;;  %v788_v0 = vshrl.u32 %v3881_v27, 16 }
  0x95   : > { %1065 = vrot.lane.b32.xlu0 %v3824_v26, %s3249_s24  ;;  %v1006_v47 = vpop.permute.xlu1 %1005  ;;  %v1054_v48 = vpop.permute.xlu0 %1053  ;;  %1015 = vrot.lane.b32.xlu1 %v3698_v23, %s3250_s8  ;;  %v780_v23 = vrot.slane %v778_v8, 1  ;;  %v359_v8 = vunpack.c.l.bf16 %v305_v50  ;;  %v479_v50 = vadd.f32 %v3237_v13, %v419_v61 }
  0x96   : > { %v1283_v55 = vsel %vm1166_vm4, %v3462_v15, %v1054_v48  ;;  %v785_v48 = vrot.slane %v783_v2, 1 }
  0x97   : > { %v781_v33 = vor.u32 %v780_v23, %v776_v14  ;;  %v1330_v15 = vsel %vm1199_vm5, %v1283_v55, %v3821_v34  ;;  %v608_v14 = vsel %vm569_vm1, %v532_v32, 0.0  ;;  %v421_v23 = vmul.f32 %v3236_v29, %v359_v8 }
  0x98   : > { %v1234_v55 = vsel %vm1232_vm6, %v1201_v31, %v1006_v47  ;;  %v480_v34 = vadd.f32 %v3237_v13, %v420_v16  ;;  %v790_v47 = vshll.u32 %v3881_v27, 16  ;;  %v533_v9 = vmax.f32 %v479_v50, 0.0 }
  0x99   : > { %1098 = vrot.lane.b32.xlu0 %v3794_v24, %s3248_s23  ;;  %v3846_v59 = vpop.permute.xlu1 %1007  ;;  %v1056_v10 = vpop.permute.xlu0 %1055  ;;  %871 = vrot.lane.b32.xlu1 %v3735_v39, %s3249_s24  ;;  %v3899_v29 = vsel %vm666_vm3, %v781_v33, %v785_v48  ;;  %v481_v61 = vadd.f32 %v3237_v13, %v421_v23 }
  0x9a   : > { %v1286_v53 = vsel %vm1166_vm4, %v3475_v25, %v1056_v10  ;;  %v651_v25 = vpack.c.bf16 %v608_v14, %v608_v14  ;;  %v792_v33 = vrot.slane %v790_v47, 1  ;;  %v534_v16 = vmax.f32 %v480_v34, 0.0 }
  0x9b   : > { %v1332_v2 = vsel %vm1199_vm5, %v1286_v53, %v3819_v38 }
  0x9c   : > { %v795_v38 = vshll.u32 %v651_v25, 16  ;;  %v955_v53 = vrot.slane %v651_v25, 1 }
  0x9d   : > { %1142 = vrot.lane.b32.xlu0 %v3853_v11, %s3250_s8  ;;  %v975_v1 = vpop.permute.xlu1 %974  ;;  %984 = vrot.lane.b32.xlu1 %v3774_v37, %s3248_s23 }
  0x9e   : > { %v3864_v41 = vpop.permute.xlu0 %1077  ;;  %v797_v31 = vrot.slane %v795_v38, 1 }
  0x9f   : > { %v1319_v7 = vsel %vm1166_vm4, %v3621_v12, %v3864_v41 }
  0xa1   : > { %1067 = vrot.lane.b32.xlu0 %v3867_v54, %s3249_s24  ;;  %1017 = vrot.lane.b32.xlu1 %v3756_v18, %s3250_s8  ;;  %v862_v40 = vpop.permute.xlu1 %861 }
  0xa2   : > { %v1131_v22 = vpop.permute.xlu0 %1130  ;;  %v1170_v32 = vsel %vm1166_vm4, %v3387_v63, %v862_v40  ;;  %v3908_v63 = vsel %vm923_vm2, %v951_v6, %v952_v30 }
  0xa3   : > { %v1362_v4 = vsel %vm1232_vm6, %v1330_v15, %v1131_v22  ;;  %v1203_v8 = vsel %vm1199_vm5, %v1170_v32, %v975_v1  ;;  %v609_v22 = vsel %vm558_vm0, %v533_v9, 0.0  ;;  %v535_v15 = vmax.f32 %v481_v61, 0.0 }
  0xa4   : > { %1633 = vmatprep.mubr.bf16.mxu0 %v1362_v4  ;;  %v1237_v50 = vsel %vm1232_vm6, %v1203_v8, %v3846_v59  ;;  %v793_v1 = vor.u32 %v792_v33, %v788_v0  ;;  %v3922_v40 = vpack.c.bf16 %v534_v16, %v609_v22  ;;  %v954_v59 = vrot.slane %v3881_v27, 1  ;;  %v3235_v0 = vld [vmem:[%s4833_s1 + $0x88] sm:$0xff]  }
  0xa5   : > { %1100 = vrot.lane.b32.xlu0 %v3836_v3, %s3248_s23  ;;  %1634 = vmatmul.mubr.bf16.vlgmr.msra.gmra.mrb[0].mxu0 %v1234_v55  ;;  %v611_v5 = vsel %vm569_vm1, %v535_v15, 0.0 }
  0xa6   : > { %873 = vrot.lane.b32.xlu1 %v3812_v51, %s3249_s24  ;;  %v3932_v23 = vsel %vm666_vm3, %v793_v1, %v797_v31  ;;  %v653_v55 = vpack.c.bf16 %v611_v5, %v611_v5  ;;  %v802_v6 = vshll.u32 %v3922_v40, 16  ;;  %v3945_v25 = vsel %vm923_vm2, %v954_v59, %v955_v53 }
  0xa7   : > { %v1133_v10 = vpop.permute.xlu0 %1132  ;;  %v957_v1 = vrot.slane %v3922_v40, 1 }
  0xa8   : > { %v1365_v21 = vsel %vm1232_vm6, %v1332_v2, %v1133_v10  ;;  %v800_v10 = vshrl.u32 %v3922_v40, 16  ;;  %v804_v2 = vrot.slane %v802_v6, 1  ;;  %v807_v41 = vshll.u32 %v653_v55, 16 }
  0xa9   : > { %1144 = vrot.lane.b32.xlu0 %v3899_v29, %s3250_s8  ;;  %1641 = vmatprep.mubr.bf16.mxu0 %v1365_v21  ;;  %v958_v31 = vrot.slane %v653_v55, 1 }
  0xaa   : > { %986 = vrot.lane.b32.xlu1 %v3824_v26, %s3248_s23  ;;  %v805_v16 = vor.u32 %v804_v2, %v800_v10 }
  0xab   : > { %v1111_v13 = vpop.permute.xlu0 %1110  ;;  %v884_v48 = vpop.permute.xlu1 %883  ;;  %v3981_v53 = vsel %vm923_vm2, %v957_v1, %v958_v31 }
  0xac   : > { %v1354_v34 = vsel %vm1199_vm5, %v1319_v7, %v1111_v13  ;;  %v1192_v9 = vsel %vm1166_vm4, %v3501_v46, %v884_v48  ;;  %v809_v13 = vrot.slane %v807_v41, 1 }
  0xad   : > { %1069 = vrot.lane.b32.xlu0 %v3908_v63, %s3249_s24  ;;  %1642 = vmatmul.mubr.bf16.gmra.mrb[4].mxu0 %v1237_v50 }
  0xae   : > { %1019 = vrot.lane.b32.xlu1 %v3794_v24, %s3250_s8 }
  0xaf   : > { %v1058_v4 = vpop.permute.xlu0 %1057  ;;  %v997_v14 = vpop.permute.xlu1 %996 }
  0xb0   : > { %v1225_v21 = vsel %vm1199_vm5, %v1192_v9, %v997_v14  ;;  %v1289_v38 = vsel %vm1166_vm4, %v3511_v60, %v1058_v4  ;;  %v3969_v60 = vsel %vm666_vm3, %v805_v16, %v809_v13 }
  0xb1   : > { %1102 = vrot.lane.b32.xlu0 %v3881_v27, %s3248_s23 }
  0xb2   : > { %875 = vrot.lane.b32.xlu1 %v3853_v11, %s3249_s24 }
  0xb3   : > { %v864_v30 = vpop.permute.xlu0 %863  ;;  %v1155_v32 = vpop.permute.xlu1 %1154 }
  0xb4   : > { %v1398_v47 = vsel %vm1232_vm6, %v1354_v34, %v1155_v32 }
  0xb5   : > { %1146 = vrot.lane.b32.xlu0 %v3932_v23, %s3250_s8  ;;  %1729 = vmatprep.mubr.bf16.mxu1 %v1398_v47 }
  0xb6   : > { %988 = vrot.lane.b32.xlu1 %v3867_v54, %s3248_s23 }
  0xb7   : > { %v1091_v61 = vpop.permute.xlu0 %1090  ;;  %v1030_v8 = vpop.permute.xlu1 %1029 }
  0xb8   : > { %v1270_v33 = vsel %vm1232_vm6, %v1225_v21, %v1030_v8  ;;  %v1334_v22 = vsel %vm1199_vm5, %v1289_v38, %v1091_v61 }
  0xb9   : > { %1071 = vrot.lane.b32.xlu0 %v3945_v25, %s3249_s24  ;;  %1730 = vmatmul.mubr.bf16.vlgmr.msra.gmra.mrb[0].mxu1 %v1270_v33 }
  0xba   : > { %1021 = vrot.lane.b32.xlu1 %v3836_v3, %s3250_s8  ;;  %3153 = vmatpush3.bf16.msra.mxu1 %v3767_v56  ;;  %v1172_v56 = vsel %vm1166_vm4, %v3375_v58, %v864_v30 }
  0xbb   : > { %v1135_v15 = vpop.permute.xlu0 %1134  ;;  %v977_v48 = vpop.permute.xlu1 %976  ;;  %3154 = vmatprep.subr.bf16.mxu1 %v3235_v0 }
  0xbc   : > { %v1368_v50 = vsel %vm1232_vm6, %v1334_v22, %v1135_v15  ;;  %v1205_v5 = vsel %vm1199_vm5, %v1172_v56, %v977_v48 }
  0xbd   : > { %1104 = vrot.lane.b32.xlu0 %v3922_v40, %s3248_s23  ;;  %1649 = vmatprep.mubr.bf16.mxu0 %v1368_v50 }
  0xbe   : > { %877 = vrot.lane.b32.xlu1 %v3899_v29, %s3249_s24  ;;  %3155 = vmatpush3.bf16.msra.mxu1 %v3235_v0 }
  0xbf   : > { %v1080_v4 = vpop.permute.xlu0 %1079  ;;  %v1010_v14 = vpop.permute.xlu1 %1009 }
  0xc0   : > { %v1240_v59 = vsel %vm1232_vm6, %v1205_v5, %v1010_v14  ;;  %v1322_v30 = vsel %vm1166_vm4, %v3557_v52, %v1080_v4 }
  0xc1   : > { %1148 = vrot.lane.b32.xlu0 %v3969_v60, %s3250_s8  ;;  %1650 = vmatmul.mubr.bf16.gmra.mrb[8].mxu0 %v1240_v59 }
  0xc2   : > { %990 = vrot.lane.b32.xlu1 %v3908_v63, %s3248_s23 }
  0xc3   : > { %v1113_v55 = vpop.permute.xlu0 %1112  ;;  %v886_v6 = vpop.permute.xlu1 %885 }
  0xc4   : > { %v1356_v32 = vsel %vm1199_vm5, %v1322_v30, %v1113_v55  ;;  %v1194_v2 = vsel %vm1166_vm4, %v3432_v45, %v886_v6 }
  0xc5   : > { %1073 = vrot.lane.b32.xlu0 %v3981_v53, %s3249_s24 }
  0xc6   : > { %1023 = vrot.lane.b32.xlu1 %v3881_v27, %s3250_s8 }
  0xc7   : > { %v1060_v58 = vpop.permute.xlu0 %1059  ;;  %v999_v7 = vpop.permute.xlu1 %998 }
  0xc8   : > { %v1227_v9 = vsel %vm1199_vm5, %v1194_v2, %v999_v7  ;;  %v1292_v21 = vsel %vm1166_vm4, %v3593_v42, %v1060_v58 }
  0xc9   : > { %1106 = vrot.lane.b32.xlu0 %v3501_v46, %s3248_s23 }
  0xca   : > { %879 = vrot.lane.b32.xlu1 %v3932_v23, %s3249_s24 }
  0xcb   : > { %v866_v34 = vpop.permute.xlu0 %865  ;;  %v1157_v47 = vpop.permute.xlu1 %1156 }
  0xcc   : > { %v1401_v10 = vsel %vm1232_vm6, %v1356_v32, %v1157_v47  ;;  %v1174_v42 = vsel %vm1166_vm4, %v3373_v57, %v866_v34 }
  0xcd   : > { %1150 = vrot.lane.b32.xlu0 %v3529_v28, %s3250_s8  ;;  %1737 = vmatprep.mubr.bf16.mxu1 %v1401_v10 }
  0xce   : > { %992 = vrot.lane.b32.xlu1 %v3945_v25, %s3248_s23 }
  0xcf   : > { %v1093_v41 = vpop.permute.xlu0 %1092  ;;  %v1032_v52 = vpop.permute.xlu1 %1031 }
  0xd0   : > { %v1273_v61 = vsel %vm1232_vm6, %v1227_v9, %v1032_v52  ;;  %v1336_v8 = vsel %vm1199_vm5, %v1292_v21, %v1093_v41 }
  0xd1   : > { %1075 = vrot.lane.b32.xlu0 %v3543_v36, %s3249_s24  ;;  %1738 = vmatmul.mubr.bf16.gmra.mrb[4].mxu1 %v1273_v61 }
  0xd2   : > { %1025 = vrot.lane.b32.xlu1 %v3922_v40, %s3250_s8 }
  0xd3   : > { %v1137_v0 = vpop.permute.xlu0 %1136  ;;  %v979_v33 = vpop.permute.xlu1 %978 }
  0xd4   : > { %v1371_v38 = vsel %vm1232_vm6, %v1336_v8, %v1137_v0  ;;  %v1207_v13 = vsel %vm1199_vm5, %v1174_v42, %v979_v33 }
  0xd5   : > { %1108 = vrot.lane.b32.xlu0 %v3432_v45, %s3248_s23  ;;  %1657 = vmatprep.mubr.bf16.mxu0 %v1371_v38 }
  0xd6   : > { %881 = vrot.lane.b32.xlu1 %v3969_v60, %s3249_s24 }
  0xd7   : > { %v1082_v16 = vpop.permute.xlu0 %1081  ;;  %v1012_v22 = vpop.permute.xlu1 %1011 }
  0xd8   : > { %v1243_v15 = vsel %vm1232_vm6, %v1207_v13, %v1012_v22  ;;  %v1325_v1 = vsel %vm1166_vm4, %v3653_v49, %v1082_v16 }
  0xd9   : > { %1152 = vrot.lane.b32.xlu0 %v3621_v12, %s3250_s8  ;;  %1658 = vmatmul.mubr.bf16.gmra.mrb[12].mxu0 %v1243_v15 }
  0xda   : > { %994 = vrot.lane.b32.xlu1 %v3981_v53, %s3248_s23 }
  0xdb   : > { %v1115_v45 = vpop.permute.xlu0 %1114  ;;  %v888_v48 = vpop.permute.xlu1 %887 }
  0xdc   : > { %v1358_v56 = vsel %vm1199_vm5, %v1325_v1, %v1115_v45  ;;  %v1196_v5 = vsel %vm1166_vm4, %v3513_v62, %v888_v48  ;;  %v4859_v1 = vld [vmem:[#allocation4_spill] sm:$0xff] }
  0xde   : > { %1027 = vrot.lane.b32.xlu1 %v3501_v46, %s3250_s8  ;;  %s4142_s8 = scalar_lea.vmem %s4836_s4, %s3204_s27 }
  0xdf   : > { %v1062_v50 = vpop.permute.xlu0 %1061  ;;  %v1001_v57 = vpop.permute.xlu1 %1000 }
  0xe0   : > { %v1229_v59 = vsel %vm1199_vm5, %v1196_v5, %v1001_v57  ;;  %v1295_v6 = vsel %vm1166_vm4, %v3672_v19, %v1062_v50 }
  0xe3   : > { %v868_v31 = vpop.permute.xlu0 %867  ;;  %v1159_v4 = vpop.permute.xlu1 %1158 }
  0xe4   : > { %v1404_v12 = vsel %vm1232_vm6, %v1358_v56, %v1159_v4  ;;  %v1176_v62 = vsel %vm1166_vm4, %v3551_v44, %v868_v31  ;;  %v4860_v56 = vld [vmem:[#allocation6_spill] sm:$0xff] }
  0xe5   : > { %1745 = vmatprep.mubr.bf16.mxu1 %v1404_v12 }
  0xe7   : > { %v1095_v14 = vpop.permute.xlu0 %1094  ;;  %v1034_v55 = vpop.permute.xlu1 %1033 }
  0xe8   : > { %v1276_v46 = vsel %vm1232_vm6, %v1229_v59, %v1034_v55  ;;  %v1338_v49 = vsel %vm1199_vm5, %v1295_v6, %v1095_v14  ;;  %v4861_v59 = vld [vmem:[#allocation9_spill] sm:$0xff]  ;;  %v4862_v55 = vld [vmem:[#allocation8_spill] sm:$0xff] }
  0xe9   : > { %1746 = vmatmul.mubr.bf16.gmra.mrb[8].mxu1 %v1276_v46 }
  0xeb   : > { %v1139_v58 = vpop.permute.xlu0 %1138  ;;  %v981_v7 = vpop.permute.xlu1 %980 }
  0xec   : > { %v1374_v30 = vsel %vm1232_vm6, %v1338_v49, %v1139_v58  ;;  %v1209_v32 = vsel %vm1199_vm5, %v1176_v62, %v981_v7 }
  0xed   : > { %1665 = vmatprep.mubr.bf16.mxu0 %v1374_v30 }
  0xef   : > { %v1084_v34 = vpop.permute.xlu0 %1083  ;;  %v1014_v47 = vpop.permute.xlu1 %1013 }
  0xf0   : > { %v1246_v10 = vsel %vm1232_vm6, %v1209_v32, %v1014_v47  ;;  %v1328_v52 = vsel %vm1166_vm4, %v3719_v20, %v1084_v34 }
  0xf1   : > { %1666 = vmatmul.mubr.bf16.gmra.mrb[16].mxu0 %v1246_v10 }
  0xf3   : > { %v1117_v2 = vpop.permute.xlu0 %1116  ;;  %v890_v19 = vpop.permute.xlu1 %889 }
  0xf4   : > { %v1360_v21 = vsel %vm1199_vm5, %v1328_v52, %v1117_v2  ;;  %v1198_v0 = vsel %vm1166_vm4, %v3595_v43, %v890_v19 }
  0xf7   : > { %v1064_v41 = vpop.permute.xlu0 %1063  ;;  %v1003_v9 = vpop.permute.xlu1 %1002 }
  0xf8   : > { %v1231_v38 = vsel %vm1199_vm5, %v1198_v0, %v1003_v9  ;;  %v1298_v13 = vsel %vm1166_vm4, %v3735_v39, %v1064_v41 }
  0xfb   : > { %v870_v61 = vpop.permute.xlu0 %869  ;;  %v1161_v8 = vpop.permute.xlu1 %1160 }
  0xfc   : > { %v1407_v44 = vsel %vm1232_vm6, %v1360_v21, %v1161_v8  ;;  %v1178_v43 = vsel %vm1166_vm4, %v3625_v17, %v870_v61 }
  0xfd   : > { %1753 = vmatprep.mubr.bf16.mxu1 %v1407_v44 }
  0xff   : > { %v1097_v33 = vpop.permute.xlu0 %1096  ;;  %v1036_v42 = vpop.permute.xlu1 %1035 }
 0x100   : > { %v1279_v16 = vsel %vm1232_vm6, %v1231_v38, %v1036_v42  ;;  %v1340_v20 = vsel %vm1199_vm5, %v1298_v13, %v1097_v33  ;;  %v4863_v42 = vld [vmem:[#allocation3_spill] sm:$0xff] }
 0x101   : > { %1754 = vmatmul.mubr.bf16.gmra.mrb[12].mxu1 %v1279_v16  ;;  %v4864_v16 = vld [vmem:[#allocation5_spill] sm:$0xff] }
 0x102   : > { %3156 = vmatprep.mubr.msk.bf16.mxu1 %vm1166_vm4, %v3422_v35 }
 0x103   : > { %v1141_v22 = vpop.permute.xlu0 %1140  ;;  %v983_v15 = vpop.permute.xlu1 %982 }
 0x104   : > { %v1377_v45 = vsel %vm1232_vm6, %v1340_v20, %v1141_v22  ;;  %v1211_v50 = vsel %vm1199_vm5, %v1178_v43, %v983_v15  ;;  %v4865_v43 = vld [vmem:[#allocation7_spill] sm:$0xff] }
 0x105   : > { %1673 = vmatprep.mubr.bf16.mxu0 %v1377_v45 }
 0x107   : > { %v1066_v48 = vpop.permute.xlu0 %1065  ;;  %v1016_v57 = vpop.permute.xlu1 %1015 }
 0x108   : > { %v1249_v39 = vsel %vm1232_vm6, %v1211_v50, %v1016_v57  ;;  %v1301_v4 = vsel %vm1166_vm4, %v3812_v51, %v1066_v48  ;;  %v4866_v50 = vld [vmem:[#allocation10_spill] sm:$0xff] }
 0x109   : > { %3157 = vmatmul.mubr.msk.bf16.vlgmr.msra.gmra.mrb[16].mxu1 %vm1166_vm4, %v4859_v1  ;;  %1674 = vmatmul.mubr.bf16.gmra.mrb[20].mxu0 %v1249_v39 }
 0x10a   : > { %3160 = vmatprep.mubr.msk.bf16.mxu1 %vm1166_vm4, %v4860_v56 }
 0x10b   : > { %v1099_v31 = vpop.permute.xlu0 %1098  ;;  %v872_v35 = vpop.permute.xlu1 %871 }
 0x10c   : > { %v1342_v17 = vsel %vm1199_vm5, %v1301_v4, %v1099_v31  ;;  %v1180_v46 = vsel %vm1166_vm4, %v4862_v55, %v872_v35  ;;  %v4867_v35 = vld [vmem:[#allocation2_spill] sm:$0xff] }
 0x10f   : > { %v1143_v12 = vpop.permute.xlu0 %1142  ;;  %v985_v5 = vpop.permute.xlu1 %984 }
 0x110   : > { %v1380_v14 = vsel %vm1232_vm6, %v1342_v17, %v1143_v12  ;;  %v1213_v49 = vsel %vm1199_vm5, %v1180_v46, %v985_v5 }
 0x111   : > { %1681 = vmatprep.mubr.bf16.mxu0 %v1380_v14  ;;  %3161 = vmatmul.mubr.msk.bf16.gmra.mrb[20].mxu1 %vm1166_vm4, %v4861_v59 }
 0x112   : > { %3164 = vmatprep.mubr.msk.bf16.mxu1 %vm1166_vm4, %v3774_v37 }
 0x113   : > { %v1068_v6 = vpop.permute.xlu0 %1067  ;;  %v1018_v51 = vpop.permute.xlu1 %1017 }
 0x114   : > { %v1252_v58 = vsel %vm1232_vm6, %v1213_v49, %v1018_v51  ;;  %v1304_v62 = vsel %vm1166_vm4, %v3853_v11, %v1068_v6 }
 0x115   : > { %1682 = vmatmul.mubr.bf16.gmra.mrb[24].mxu0 %v1252_v58 }
 0x117   : > { %v1101_v7 = vpop.permute.xlu0 %1100 }
 0x118   : > { %v874_v30 = vpop.permute.xlu1 %873  ;;  %v1344_v34 = vsel %vm1199_vm5, %v1304_v62, %v1101_v7 }
 0x119   : > { %3165 = vmatmul.mubr.msk.bf16.gmra.mrb[24].mxu1 %vm1166_vm4, %v3824_v26  ;;  %v1182_v10 = vsel %vm1166_vm4, %v3756_v18, %v874_v30 }
 0x11a   : > { %3168 = vmatprep.mubr.msk.bf16.mxu1 %vm1166_vm4, %v3867_v54 }
 0x11b   : > { %v1145_v32 = vpop.permute.xlu0 %1144 }
 0x11c   : > { %v987_v37 = vpop.permute.xlu1 %986  ;;  %v1383_v47 = vsel %vm1232_vm6, %v1344_v34, %v1145_v32 }
 0x11d   : > { %1689 = vmatprep.mubr.bf16.mxu0 %v1383_v47  ;;  %v1215_v19 = vsel %vm1199_vm5, %v1182_v10, %v987_v37 }
 0x11f   : > { %v1070_v2 = vpop.permute.xlu0 %1069 }
 0x120   : > { %v1020_v11 = vpop.permute.xlu1 %1019  ;;  %v1307_v9 = vsel %vm1166_vm4, %v3899_v29, %v1070_v2 }
 0x121   : > { %v1255_v41 = vsel %vm1232_vm6, %v1215_v19, %v1020_v11  ;;  %3169 = vmatmul.mubr.msk.bf16.gmra.mrb[28].mxu1 %vm1166_vm4, %v3908_v63 }
 0x122   : > { %1690 = vmatmul.mubr.bf16.gmra.mrb[28].mxu0 %v1255_v41  ;;  %3172 = vmatprep.mubr.msk.bf16.mxu1 %vm1166_vm4, %v3945_v25 }
 0x123   : > { %v1103_v26 = vpop.permute.xlu0 %1102 }
 0x124   : > { %v876_v54 = vpop.permute.xlu1 %875  ;;  %v1346_v18 = vsel %vm1199_vm5, %v1307_v9, %v1103_v26 }
 0x125   : > { %v1184_v63 = vsel %vm1166_vm4, %v3794_v24, %v876_v54 }
 0x127   : > { %v1147_v52 = vpop.permute.xlu0 %1146 }
 0x128   : > { %v989_v61 = vpop.permute.xlu1 %988  ;;  %v1386_v21 = vsel %vm1232_vm6, %v1346_v18, %v1147_v52 }
 0x129   : > { %1697 = vmatprep.mubr.bf16.mxu0 %v1386_v21  ;;  %3173 = vmatmul.mubr.msk.bf16.gmra.mrb[32].mxu1 %vm1166_vm4, %v3981_v53  ;;  %v1217_v25 = vsel %vm1199_vm5, %v1184_v63, %v989_v61 }
 0x12a   : > { %3176 = vmatprep.mubr.msk.bf16.mxu1 %vm1166_vm4, %v3543_v36 }
 0x12b   : > { %v1072_v8 = vpop.permute.xlu0 %1071 }
 0x12c   : > { %v1022_v29 = vpop.permute.xlu1 %1021  ;;  %v1310_v38 = vsel %vm1166_vm4, %v3932_v23, %v1072_v8 }
 0x12d   : > { %v1258_v44 = vsel %vm1232_vm6, %v1217_v25, %v1022_v29 }
 0x12e   : > { %1698 = vmatmul.mubr.bf16.gmra.mrb[32].mxu0 %v1258_v44 }
 0x12f   : > { %v1105_v0 = vpop.permute.xlu0 %1104 }
 0x130   : > { %v878_v33 = vpop.permute.xlu1 %877  ;;  %v1348_v24 = vsel %vm1199_vm5, %v1310_v38, %v1105_v0 }
 0x131   : > { %3177 = vmatmul.mubr.msk.bf16.gmra.mrb[36].mxu1 %vm1166_vm4, %v4863_v42  ;;  %v1186_v20 = vsel %vm1166_vm4, %v3836_v3, %v878_v33 }
 0x132   : > { %3180 = vmatprep.mubr.msk.bf16.mxu1 %vm1166_vm4, %v4864_v16 }
 0x133   : > { %v1149_v53 = vpop.permute.xlu0 %1148 }
 0x134   : > { %v991_v36 = vpop.permute.xlu1 %990  ;;  %v1389_v13 = vsel %vm1232_vm6, %v1348_v24, %v1149_v53 }
 0x135   : > { %1705 = vmatprep.mubr.bf16.mxu0 %v1389_v13  ;;  %v1219_v15 = vsel %vm1199_vm5, %v1186_v20, %v991_v36 }
 0x137   : > { %v1074_v22 = vpop.permute.xlu0 %1073 }
 0x138   : > { %v1024_v23 = vpop.permute.xlu1 %1023  ;;  %v1313_v39 = vsel %vm1166_vm4, %v3969_v60, %v1074_v22 }
 0x139   : > { %v1261_v45 = vsel %vm1232_vm6, %v1219_v15, %v1024_v23  ;;  %3181 = vmatmul.mubr.msk.bf16.gmra.mrb[40].mxu1 %vm1166_vm4, %v4865_v43 }
 0x13a   : > { %1706 = vmatmul.mubr.bf16.gmra.mrb[36].mxu0 %v1261_v45  ;;  %3184 = vmatprep.mubr.msk.bf16.mxu1 %vm1166_vm4, %v4866_v50 }
 0x13b   : > { %v1107_v48 = vpop.permute.xlu0 %1106 }
 0x13c   : > { %v880_v57 = vpop.permute.xlu1 %879  ;;  %v1350_v3 = vsel %vm1199_vm5, %v1313_v39, %v1107_v48 }
 0x13d   : > { %v1188_v4 = vsel %vm1166_vm4, %v3881_v27, %v880_v57 }
 0x13f   : > { %v1151_v1 = vpop.permute.xlu0 %1150 }
 0x140   : > { %v993_v31 = vpop.permute.xlu1 %992  ;;  %v1392_v56 = vsel %vm1232_vm6, %v1350_v3, %v1151_v1 }
 0x141   : > { %1713 = vmatprep.mubr.bf16.mxu0 %v1392_v56  ;;  %3185 = vmatmul.mubr.msk.bf16.gmra.mrb[44].mxu1 %vm1166_vm4, %v4867_v35  ;;  %v1221_v12 = vsel %vm1199_vm5, %v1188_v4, %v993_v31 }
 0x143   : > { %v1076_v17 = vpop.permute.xlu0 %1075 }
 0x144   : > { %v1026_v5 = vpop.permute.xlu1 %1025  ;;  %v1316_v55 = vsel %vm1166_vm4, %v3529_v28, %v1076_v17  ;;  %v4868_v28 = vmov 0  }
 0x145   : > { %v1264_v60 = vsel %vm1232_vm6, %v1221_v12, %v1026_v5  ;;  %2119 = vst.msk [vmem:[%s4142_s8 + $0x18] sm:$0xf] %vm2112_vm7, %v4868_v28  ;;  %2113 = vst.msk [vmem:[%s4142_s8] sm:$0xf] %vm2112_vm7, %v4868_v28 }
 0x146   : > { %1714 = vmatmul.mubr.bf16.gmra.mrb[40].mxu0 %v1264_v60  ;;  %2114 = vst.msk [vmem:[%s4142_s8 + $0x4] sm:$0xf] %vm2112_vm7, %v4868_v28  ;;  %2116 = vst.msk [vmem:[%s4142_s8 + $0xc] sm:$0xf] %vm2112_vm7, %v4868_v28 }
 0x147   : > { %v1109_v14 = vpop.permute.xlu0 %1108  ;;  %2117 = vst.msk [vmem:[%s4142_s8 + $0x10] sm:$0xf] %vm2112_vm7, %v4868_v28  ;;  %2120 = vst.msk [vmem:[%s4142_s8 + $0x1c] sm:$0xf] %vm2112_vm7, %v4868_v28 }
 0x148   : > { %v882_v59 = vpop.permute.xlu1 %881  ;;  %v1352_v46 = vsel %vm1199_vm5, %v1316_v55, %v1109_v14  ;;  %2122 = vst.msk [vmem:[%s4142_s8 + $0x24] sm:$0xf] %vm2112_vm7, %v4868_v28  ;;  %2123 = vst.msk [vmem:[%s4142_s8 + $0x28] sm:$0xf] %vm2112_vm7, %v4868_v28 }
 0x149   : > { %v1190_v27 = vsel %vm1166_vm4, %v3922_v40, %v882_v59  ;;  %2125 = vst.msk [vmem:[%s4142_s8 + $0x30] sm:$0xf] %vm2112_vm7, %v4868_v28  ;;  %2126 = vst.msk [vmem:[%s4142_s8 + $0x34] sm:$0xf] %vm2112_vm7, %v4868_v28 }
 0x14a   : > { %2128 = vst.msk [vmem:[%s4142_s8 + $0x3c] sm:$0xf] %vm2112_vm7, %v4868_v28  ;;  %2129 = vst.msk [vmem:[%s4142_s8 + $0x40] sm:$0xf] %vm2112_vm7, %v4868_v28 }
 0x14b   : > { %v1153_v6 = vpop.permute.xlu0 %1152  ;;  %2131 = vst.msk [vmem:[%s4142_s8 + $0x48] sm:$0xf] %vm2112_vm7, %v4868_v28  ;;  %2132 = vst.msk [vmem:[%s4142_s8 + $0x4c] sm:$0xf] %vm2112_vm7, %v4868_v28 }
 0x14c   : > { %v995_v49 = vpop.permute.xlu1 %994  ;;  %v1395_v51 = vsel %vm1232_vm6, %v1352_v46, %v1153_v6  ;;  %2134 = vst.msk [vmem:[%s4142_s8 + $0x54] sm:$0xf] %vm2112_vm7, %v4868_v28  ;;  %2135 = vst.msk [vmem:[%s4142_s8 + $0x58] sm:$0xf] %vm2112_vm7, %v4868_v28 }
 0x14d   : > { %1721 = vmatprep.mubr.bf16.mxu0 %v1395_v51  ;;  %v1223_v58 = vsel %vm1199_vm5, %v1190_v27, %v995_v49  ;;  %2137 = vst.msk [vmem:[%s4142_s8 + $0x60] sm:$0xf] %vm2112_vm7, %v4868_v28  ;;  %2138 = vst.msk [vmem:[%s4142_s8 + $0x64] sm:$0xf] %vm2112_vm7, %v4868_v28 }
 0x14e   : > { %2140 = vst.msk [vmem:[%s4142_s8 + $0x6c] sm:$0xf] %vm2112_vm7, %v4868_v28  ;;  %2141 = vst.msk [vmem:[%s4142_s8 + $0x70] sm:$0xf] %vm2112_vm7, %v4868_v28 }
 0x14f   : > { %2143 = vst.msk [vmem:[%s4142_s8 + $0x78] sm:$0xf] %vm2112_vm7, %v4868_v28  ;;  %2144 = vst.msk [vmem:[%s4142_s8 + $0x7c] sm:$0xf] %vm2112_vm7, %v4868_v28 }
 0x150   : > { %v1028_v7 = vpop.permute.xlu1 %1027  ;;  %2146 = vst.msk [vmem:[%s4142_s8 + $0x84] sm:$0xf] %vm2112_vm7, %v4868_v28  ;;  %2147 = vst.msk [vmem:[%s4142_s8 + $0x88] sm:$0xf] %vm2112_vm7, %v4868_v28 }
 0x151   : > { %v1267_v30 = vsel %vm1232_vm6, %v1223_v58, %v1028_v7  ;;  %2149 = vst.msk [vmem:[%s4142_s8 + $0x90] sm:$0xf] %vm2112_vm7, %v4868_v28  ;;  %2150 = vst.msk [vmem:[%s4142_s8 + $0x94] sm:$0xf] %vm2112_vm7, %v4868_v28 }
 0x152   : > { %1722 = vmatmul.mubr.bf16.gmra.mrb[44].mxu0 %v1267_v30  ;;  %2152 = vst.msk [vmem:[%s4142_s8 + $0x9c] sm:$0xf] %vm2112_vm7, %v4868_v28  ;;  %2153 = vst.msk [vmem:[%s4142_s8 + $0xa0] sm:$0xf] %vm2112_vm7, %v4868_v28 }
 0x153   : > { %2155 = vst.msk [vmem:[%s4142_s8 + $0xa8] sm:$0xf] %vm2112_vm7, %v4868_v28  ;;  %2156 = vst.msk [vmem:[%s4142_s8 + $0xac] sm:$0xf] %vm2112_vm7, %v4868_v28 }
 0x154   : > { %2158 = vst.msk [vmem:[%s4142_s8 + $0xb4] sm:$0xf] %vm2112_vm7, %v4868_v28  ;;  %2159 = vst.msk [vmem:[%s4142_s8 + $0xb8] sm:$0xf] %vm2112_vm7, %v4868_v28 }
 0x155   : > { %2161 = vst.msk [vmem:[%s4142_s8 + $0xc0] sm:$0xf] %vm2112_vm7, %v4868_v28  ;;  %2162 = vst.msk [vmem:[%s4142_s8 + $0xc4] sm:$0xf] %vm2112_vm7, %v4868_v28 }
 0x156   : > { %2164 = vst.msk [vmem:[%s4142_s8 + $0xcc] sm:$0xf] %vm2112_vm7, %v4868_v28  ;;  %2165 = vst.msk [vmem:[%s4142_s8 + $0xd0] sm:$0xf] %vm2112_vm7, %v4868_v28 }
 0x157   : > { %2121 = vst.msk [vmem:[%s4142_s8 + $0x20] sm:$0x1] %vm1992_vm8, %v4868_v28  ;;  %2115 = vst.msk [vmem:[%s4142_s8 + $0x8] sm:$0x1] %vm1992_vm8, %v4868_v28 }
 0x158   : > { %2118 = vst.msk [vmem:[%s4142_s8 + $0x14] sm:$0x1] %vm1992_vm8, %v4868_v28  ;;  %2124 = vst.msk [vmem:[%s4142_s8 + $0x2c] sm:$0x1] %vm1992_vm8, %v4868_v28 }
 0x159   : > { %2127 = vst.msk [vmem:[%s4142_s8 + $0x38] sm:$0x1] %vm1992_vm8, %v4868_v28  ;;  %2130 = vst.msk [vmem:[%s4142_s8 + $0x44] sm:$0x1] %vm1992_vm8, %v4868_v28 }
 0x15a   : > { %2133 = vst.msk [vmem:[%s4142_s8 + $0x50] sm:$0x1] %vm1992_vm8, %v4868_v28  ;;  %2136 = vst.msk [vmem:[%s4142_s8 + $0x5c] sm:$0x1] %vm1992_vm8, %v4868_v28 }
 0x15b   : > { %2139 = vst.msk [vmem:[%s4142_s8 + $0x68] sm:$0x1] %vm1992_vm8, %v4868_v28  ;;  %2142 = vst.msk [vmem:[%s4142_s8 + $0x74] sm:$0x1] %vm1992_vm8, %v4868_v28 }
 0x15c   : > { %2145 = vst.msk [vmem:[%s4142_s8 + $0x80] sm:$0x1] %vm1992_vm8, %v4868_v28  ;;  %2148 = vst.msk [vmem:[%s4142_s8 + $0x8c] sm:$0x1] %vm1992_vm8, %v4868_v28 }
 0x15d   : > { %2151 = vst.msk [vmem:[%s4142_s8 + $0x98] sm:$0x1] %vm1992_vm8, %v4868_v28  ;;  %2154 = vst.msk [vmem:[%s4142_s8 + $0xa4] sm:$0x1] %vm1992_vm8, %v4868_v28 }
 0x15e   : > { %2157 = vst.msk [vmem:[%s4142_s8 + $0xb0] sm:$0x1] %vm1992_vm8, %v4868_v28  ;;  %2160 = vst.msk [vmem:[%s4142_s8 + $0xbc] sm:$0x1] %vm1992_vm8, %v4868_v28 }
 0x15f   : > { %2163 = vst.msk [vmem:[%s4142_s8 + $0xc8] sm:$0x1] %vm1992_vm8, %v4868_v28  ;;  %2166 = vst.msk [vmem:[%s4142_s8 + $0xd4] sm:$0x1] %vm1992_vm8, %v4868_v28 }
 0x178   : > { %v3038_v40 = vpop.f32.mrb[0].mxu0 }
 0x179   : > { %v3039_v62 = vpop.f32.mrb[1].mxu0 }
 0x17a   : > { %v3040_v34 = vadd.f32 %v3039_v62, %v3038_v40  ;;  %v3041_v32 = vpop.f32.mrb[2].mxu0 }
 0x17b   : > { %v3042_v37 = vpop.f32.mrb[3].mxu0 }
 0x17c   : > { %v4306_v47 = vadd.f32 %v3042_v37, %v3041_v32 }
 0x180   : > { %v3044_v10 = vpop.f32.mrb[4].mxu0 }
 0x181   : > { %v3045_v2 = vpop.f32.mrb[5].mxu0 }
 0x182   : > { %v3046_v19 = vadd.f32 %v3045_v2, %v3044_v10  ;;  %v3047_v11 = vpop.f32.mrb[6].mxu0 }
 0x183   : > { %v3048_v41 = vpop.f32.mrb[7].mxu0 }
 0x184   : > { %v3049_v26 = vadd.f32 %v3048_v41, %v3047_v11 }
 0x18c   : > { %v3110_v54 = vpop.f32.mrb[0].mxu1 }
 0x18d   : > { %v3111_v9 = vpop.f32.mrb[1].mxu1 }
 0x18e   : > { %v4308_v18 = vadd.f32 %v3111_v9, %v3110_v54  ;;  %v3113_v52 = vpop.f32.mrb[2].mxu1 }
 0x18f   : > { %v3114_v61 = vpop.f32.mrb[3].mxu1 }
 0x190   : > { %v4310_v21 = vadd.f32 %v3114_v61, %v3113_v52 }
 0x194   : > { %v3050_v63 = vpop.f32.mrb[8].mxu0 }
 0x195   : > { %v3051_v8 = vpop.f32.mrb[9].mxu0 }
 0x196   : > { %v4312_v25 = vadd.f32 %v3051_v8, %v3050_v63  ;;  %v3053_v29 = vpop.f32.mrb[10].mxu0 }
 0x197   : > { %v3054_v44 = vpop.f32.mrb[11].mxu0 }
 0x198   : > { %v4314_v0 = vadd.f32 %v3054_v44, %v3053_v29 }
 0x1a4   : > { %v3116_v33 = vpop.f32.mrb[4].mxu1 }
 0x1a5   : > { %v3117_v38 = vpop.f32.mrb[5].mxu1 }
 0x1a6   : > { %v4316_v42 = vadd.f32 %v3117_v38, %v3116_v33  ;;  %v3119_v24 = vpop.f32.mrb[6].mxu1 }
 0x1a7   : > { %v3120_v53 = vpop.f32.mrb[7].mxu1 }
 0x1a8   : > { %v4318_v16 = vadd.f32 %v3120_v53, %v3119_v24  ;;  %v2873_v24 = vld [vmem:[%s4142_s8 + $0x18] sm:$0xf] }
 0x1ac   : > { %v3056_v36 = vpop.f32.mrb[12].mxu0 }
 0x1ad   : > { %v3057_v13 = vpop.f32.mrb[13].mxu0 }
 0x1ae   : > { %v4320_v20 = vadd.f32 %v3057_v13, %v3056_v36  ;;  %v3059_v22 = vpop.f32.mrb[14].mxu0 }
 0x1af   : > { %v3060_v15 = vpop.f32.mrb[15].mxu0 }
 0x1b0   : > { %v4322_v23 = vadd.f32 %v3060_v15, %v3059_v22 }
 0x1bc   : > { %v3122_v45 = vpop.f32.mrb[8].mxu1 }
 0x1bd   : > { %v3123_v43 = vpop.f32.mrb[9].mxu1 }
 0x1be   : > { %v4324_v48 = vadd.f32 %v3123_v43, %v3122_v45  ;;  %v3125_v50 = vpop.f32.mrb[10].mxu1 }
 0x1bf   : > { %v3126_v57 = vpop.f32.mrb[11].mxu1 }
 0x1c0   : > { %v4326_v39 = vadd.f32 %v3126_v57, %v3125_v50  ;;  %v2868_v50 = vld [vmem:[%s4142_s8 + $0xc] sm:$0xf] }
 0x1c4   : > { %v3062_v3 = vpop.f32.mrb[16].mxu0 }
 0x1c5   : > { %v3063_v1 = vpop.f32.mrb[17].mxu0 }
 0x1c6   : > { %v4328_v31 = vadd.f32 %v3063_v1, %v3062_v3  ;;  %v3065_v56 = vpop.f32.mrb[18].mxu0 }
 0x1c7   : > { %v3066_v35 = vpop.f32.mrb[19].mxu0 }
 0x1c8   : > { %v4330_v4 = vadd.f32 %v3066_v35, %v3065_v56 }
 0x1d4   : > { %v3128_v17 = vpop.f32.mrb[12].mxu1 }
 0x1d5   : > { %v3129_v12 = vpop.f32.mrb[13].mxu1 }
 0x1d6   : > { %v4332_v5 = vadd.f32 %v3129_v12, %v3128_v17  ;;  %v3131_v60 = vpop.f32.mrb[14].mxu1 }
 0x1d7   : > { %v3132_v14 = vpop.f32.mrb[15].mxu1 }
 0x1d8   : > { %v4334_v59 = vadd.f32 %v3132_v14, %v3131_v60 }
 0x1dc   : > { %v3158_v55 = vpop.f32.mrb[16].mxu1  ;;  %v3068_v46 = vpop.f32.mrb[20].mxu0 }
 0x1dd   : > { %v1805_v6 = vadd.f32 %v3158_v55, %v3046_v19  ;;  %v1796_v49 = vpop.f32.mrb[17].mxu1  ;;  %v3069_v51 = vpop.f32.mrb[21].mxu0 }
 0x1de   : > { %v1797_v27 = vadd.f32 %v3040_v34, %v1796_v49  ;;  %v4336_v58 = vadd.f32 %v3069_v51, %v3068_v46  ;;  %v3159_v7 = vpop.f32.mrb[18].mxu1  ;;  %v3071_v30 = vpop.f32.mrb[22].mxu0 }
 0x1df   : > { %v1926_v28 = vsel %vm1166_vm4, %v1805_v6, 0.0  ;;  %v1996_v40 = vmul.f32 %v1805_v6, %v1805_v6  ;;  %v2952_v62 = vpack.c.bf16 %v1805_v6, %v1805_v6  ;;  %v1808_v32 = vadd.f32 %v3159_v7, %v3049_v26  ;;  %v1799_v37 = vpop.f32.mrb[19].mxu1  ;;  %v3072_v10 = vpop.f32.mrb[23].mxu0 }
 0x1e0   : > { %v1923_v2 = vsel %vm1166_vm4, %v1797_v27, 0.0  ;;  %v1994_v19 = vmul.f32 %v1797_v27, %v1797_v27  ;;  %v2950_v11 = vpack.c.bf16 %v1797_v27, %v1797_v27  ;;  %v1800_v34 = vadd.f32 %v4306_v47, %v1799_v37 }
 0x1e1   : > { %v2029_v41 = vsel %vm1166_vm4, %v1996_v40, 0.0  ;;  %v2268_v54 = vshrl.u32 %v2952_v62, 16  ;;  %v2271_v9 = vshll.u32 %v2952_v62, 16  ;;  %v4343_v52 = vsel %vm1166_vm4, %v1808_v32, 0.0 }
 0x1e2   : > { %v2026_v61 = vsel %vm1166_vm4, %v1994_v19, 0.0  ;;  %v2251_v63 = vshrl.u32 %v2950_v11, 16  ;;  %v2254_v26 = vshll.u32 %v2950_v11, 16  ;;  %v1997_v8 = vmul.f32 %v1808_v32, %v1808_v32 }
 0x1e3   : > { %v2270_v29 = vrot.slane %v2268_v54, 7  ;;  %v2953_v44 = vpack.c.bf16 %v1808_v32, %v1808_v32  ;;  %v1924_v33 = vsel %vm1166_vm4, %v1800_v34, 0.0  ;;  %v1995_v38 = vmul.f32 %v1800_v34, %v1800_v34 }
 0x1e4   : > { %v2253_v53 = vrot.slane %v2251_v63, 7  ;;  %v2031_v36 = vsel %vm1166_vm4, %v1997_v8, 0.0  ;;  %v1925_v13 = vadd.f32 %v1924_v33, %v1923_v2  ;;  %v2951_v22 = vpack.c.bf16 %v1800_v34, %v1800_v34  ;;  %v3162_v15 = vpop.f32.mrb[20].mxu1 }
 0x1e5   : > { %v2273_v45 = vor.u32 %v2271_v9, %v2270_v29  ;;  %v2274_v43 = vrot.slane %v2270_v29, 4  ;;  %v2276_v57 = vshrl.u32 %v2953_v44, 16  ;;  %v2279_v3 = vshll.u32 %v2953_v44, 16  ;;  %v1812_v1 = vpop.f32.mrb[21].mxu1  ;;  %v2871_v9 = vld [vmem:[%s4142_s8 + $0x14] sm:$0x1] }
 0x1e6   : > { %v2256_v56 = vor.u32 %v2254_v26, %v2253_v53  ;;  %v2257_v35 = vrot.slane %v2253_v53, 4  ;;  %v1927_v17 = vadd.f32 %v1926_v28, %v1925_v13  ;;  %v2027_v12 = vsel %vm1166_vm4, %v1995_v38, 0.0  ;;  %v3163_v60 = vpop.f32.mrb[22].mxu1  ;;  %v2876_v28 = vld [vmem:[%s4142_s8 + $0x20] sm:$0x1] }
 0x1e7   : > { %v2584_v14 = vsel %vm4349_vm12, %v2273_v45, %v2873_v24  ;;  %v2278_v46 = vrot.slane %v2276_v57, 7  ;;  %v2028_v6 = vadd.f32 %v2027_v12, %v2026_v61  ;;  %v2259_v49 = vshrl.u32 %v2951_v22, 16  ;;  %v1815_v51 = vpop.f32.mrb[23].mxu1 }
 0x1e8   : > { %2874 = vst [vmem:[%s4142_s8 + $0x18] sm:$0xf] %v2584_v14  ;;  %v2575_v27 = vsel %vm4349_vm12, %v2256_v56, %v2868_v50  ;;  %v2262_v40 = vshll.u32 %v2951_v22, 16  ;;  %v4375_v62 = vadd.f32 %v3072_v10, %v3071_v30  ;;  %v1821_v32 = vadd.f32 %v3162_v15, %v4320_v20  ;;  %v3074_v37 = vpop.f32.mrb[24].mxu0 }
 0x1e9   : > { %2869 = vst [vmem:[%s4142_s8 + $0xc] sm:$0xf] %v2575_v27  ;;  %v2281_v2 = vor.u32 %v2279_v3, %v2278_v46  ;;  %v2283_v19 = vrot.slane %v2278_v46, 4  ;;  %v2030_v11 = vadd.f32 %v2029_v41, %v2028_v6  ;;  %v2261_v34 = vrot.slane %v2259_v49, 7  ;;  %v3075_v54 = vpop.f32.mrb[25].mxu0 }
 0x1ea   : > { %v1934_v61 = vsel %vm1166_vm4, %v1821_v32, 0.0  ;;  %v2000_v63 = vmul.f32 %v1821_v32, %v1821_v32  ;;  %v2956_v26 = vpack.c.bf16 %v1821_v32, %v1821_v32  ;;  %v1813_v8 = vadd.f32 %v4312_v25, %v1812_v1  ;;  %v3077_v30 = vpop.f32.mrb[26].mxu0 }
 0x1eb   : > { %v2282_v20 = vsel %vm4361_vm13, %v2274_v43, %v2281_v2  ;;  %v2588_v10 = vsel %vm4370_vm14, %v2283_v19, %v2876_v28  ;;  %v2264_v29 = vor.u32 %v2262_v40, %v2261_v34  ;;  %v2266_v41 = vrot.slane %v2261_v34, 4  ;;  %v3078_v44 = vpop.f32.mrb[27].mxu0 }
 0x1ec   : > { %2875 = vst.msk [vmem:[%s4142_s8 + $0x1c] sm:$0xf] %vm2112_vm7, %v2282_v20  ;;  %2877 = vst [vmem:[%s4142_s8 + $0x20] sm:$0x1] %v2588_v10  ;;  %v4390_v33 = vsel %vm1166_vm4, %v2000_v63, 0.0  ;;  %v2302_v38 = vshrl.u32 %v2956_v26, 16  ;;  %v1929_v24 = vadd.f32 %v4343_v52, %v1927_v17  ;;  %v1998_v45 = vmul.f32 %v1813_v8, %v1813_v8 }
 0x1ed   : > { %v2305_v25 = vshll.u32 %v2956_v26, 16  ;;  %v3166_v53 = vpop.f32.mrb[24].mxu1  ;;  %v2265_v13 = vsel %vm4361_vm13, %v2257_v35, %v2264_v29  ;;  %v2581_v22 = vsel %vm4370_vm14, %v2266_v41, %v2871_v9  ;;  %v1930_v15 = vsel %vm1166_vm4, %v1813_v8, 0.0  ;;  %v2883_v52 = vld [vmem:[%s4142_s8 + $0x30] sm:$0xf] }
 0x1ee   : > { %v1828_v43 = vpop.f32.mrb[25].mxu1  ;;  %2870 = vst.msk [vmem:[%s4142_s8 + $0x10] sm:$0xf] %vm2112_vm7, %v2265_v13  ;;  %2872 = vst [vmem:[%s4142_s8 + $0x14] sm:$0x1] %v2581_v22  ;;  %v2304_v50 = vrot.slane %v2302_v38, 7  ;;  %v1931_v57 = vadd.f32 %v1930_v15, %v1929_v24  ;;  %v2032_v3 = vadd.f32 %v2031_v36, %v2030_v11  ;;  %v2954_v1 = vpack.c.bf16 %v1813_v8, %v1813_v8 }
 0x1ef   : > { %v4401_v56 = vpop.f32.mrb[26].mxu1  ;;  %v2033_v17 = vsel %vm1166_vm4, %v1998_v45, 0.0  ;;  %v1824_v35 = vadd.f32 %v3163_v60, %v4322_v23  ;;  %v1816_v12 = vadd.f32 %v4314_v0, %v1815_v51  ;;  %v4407_v14 = vadd.f32 %v3075_v54, %v3074_v37  ;;  %v2878_v37 = vld [vmem:[%s4142_s8 + $0x24] sm:$0xf]  ;;  %v2886_v15 = vld [vmem:[%s4142_s8 + $0x38] sm:$0x1] }
 0x1f0   : > { %v4409_v46 = vpop.f32.mrb[27].mxu1  ;;  %v2307_v6 = vor.u32 %v2305_v25, %v2304_v50  ;;  %v2308_v49 = vrot.slane %v2304_v50, 4  ;;  %v2034_v27 = vadd.f32 %v2033_v17, %v2032_v3  ;;  %v2285_v36 = vshrl.u32 %v2954_v1, 16 }
 0x1f1   : > { %v2288_v28 = vshll.u32 %v2954_v1, 16  ;;  %v1936_v40 = vsel %vm1166_vm4, %v1824_v35, 0.0  ;;  %v2001_v32 = vmul.f32 %v1824_v35, %v1824_v35  ;;  %v2957_v2 = vpack.c.bf16 %v1824_v35, %v1824_v35 }
 0x1f2   : > { %v2598_v23 = vsel %vm4349_vm12, %v2307_v6, %v2883_v52  ;;  %v2287_v60 = vrot.slane %v2285_v36, 7  ;;  %v1932_v0 = vsel %vm1166_vm4, %v1816_v12, 0.0  ;;  %v1999_v51 = vmul.f32 %v1816_v12, %v1816_v12 }
 0x1f3   : > { %2884 = vst [vmem:[%s4142_s8 + $0x30] sm:$0xf] %v2598_v23  ;;  %v2039_v19 = vsel %vm1166_vm4, %v2001_v32, 0.0  ;;  %v2310_v11 = vshrl.u32 %v2957_v2, 16  ;;  %v2313_v34 = vshll.u32 %v2957_v2, 16  ;;  %v1933_v54 = vadd.f32 %v1932_v0, %v1931_v57 }
 0x1f4   : > { %v2290_v9 = vor.u32 %v2288_v28, %v2287_v60  ;;  %v2291_v63 = vrot.slane %v2287_v60, 4  ;;  %v2035_v26 = vsel %vm1166_vm4, %v1999_v51, 0.0  ;;  %v2955_v8 = vpack.c.bf16 %v1816_v12, %v1816_v12  ;;  %v4419_v20 = vpop.f32.mrb[28].mxu1  ;;  %v2881_v28 = vld [vmem:[%s4142_s8 + $0x2c] sm:$0x1] }
 0x1f5   : > { %v4421_v10 = vpop.f32.mrb[28].mxu0  ;;  %v2312_v29 = vrot.slane %v2310_v11, 7  ;;  %v1935_v41 = vadd.f32 %v1934_v61, %v1933_v54  ;;  %v2036_v38 = vadd.f32 %v2035_v26, %v2034_v27  ;;  %v4423_v25 = vadd.f32 %v3078_v44, %v3077_v30  ;;  %v1844_v24 = vpop.f32.mrb[29].mxu1 }
 0x1f6   : > { %v4425_v13 = vpop.f32.mrb[29].mxu0  ;;  %v2591_v22 = vsel %vm4349_vm12, %v2290_v9, %v2878_v37  ;;  %v2293_v45 = vshrl.u32 %v2955_v8, 16  ;;  %v2296_v50 = vshll.u32 %v2955_v8, 16  ;;  %v1837_v57 = vadd.f32 %v3166_v53, %v4336_v58  ;;  %v4431_v3 = vpop.f32.mrb[30].mxu1  ;;  %v2893_v9 = vld [vmem:[%s4142_s8 + $0x48] sm:$0xf] }
 0x1f7   : > { %v4433_v1 = vpop.f32.mrb[30].mxu0  ;;  %2879 = vst [vmem:[%s4142_s8 + $0x24] sm:$0xf] %v2591_v22  ;;  %v2315_v61 = vor.u32 %v2313_v34, %v2312_v29  ;;  %v2317_v30 = vrot.slane %v2312_v29, 4  ;;  %v2038_v44 = vadd.f32 %v4390_v33, %v2036_v38  ;;  %v1829_v52 = vadd.f32 %v4328_v31, %v1828_v43  ;;  %v4438_v17 = vpop.f32.mrb[31].mxu1 }
 0x1f8   : > { %v4440_v35 = vpop.f32.mrb[31].mxu0  ;;  %v2295_v12 = vrot.slane %v2293_v45, 7  ;;  %v1942_v58 = vsel %vm1166_vm4, %v1837_v57, 0.0  ;;  %v2004_v53 = vmul.f32 %v1837_v57, %v1837_v57  ;;  %v2960_v6 = vpack.c.bf16 %v1837_v57, %v1837_v57 }
 0x1f9   : > { %v2316_v27 = vsel %vm4361_vm13, %v2308_v49, %v2315_v61  ;;  %v2602_v36 = vsel %vm4370_vm14, %v2317_v30, %v2886_v15  ;;  %v1937_v32 = vadd.f32 %v1936_v40, %v1935_v41  ;;  %v1938_v33 = vsel %vm1166_vm4, %v1829_v52, 0.0 }
 0x1fa   : > { %2885 = vst.msk [vmem:[%s4142_s8 + $0x34] sm:$0xf] %vm2112_vm7, %v2316_v27  ;;  %2887 = vst [vmem:[%s4142_s8 + $0x38] sm:$0x1] %v2602_v36  ;;  %v2298_v31 = vor.u32 %v2296_v50, %v2295_v12  ;;  %v2300_v43 = vrot.slane %v2295_v12, 4  ;;  %v2045_v2 = vsel %vm1166_vm4, %v2004_v53, 0.0  ;;  %v2002_v0 = vmul.f32 %v1829_v52, %v1829_v52 }
 0x1fb   : > { %v2336_v23 = vshrl.u32 %v2960_v6, 16  ;;  %v2339_v60 = vshll.u32 %v2960_v6, 16  ;;  %v1939_v49 = vadd.f32 %v1938_v33, %v1937_v32  ;;  %v2040_v51 = vadd.f32 %v2039_v19, %v2038_v44  ;;  %v2888_v44 = vld [vmem:[%s4142_s8 + $0x3c] sm:$0xf] }
 0x1fc   : > { %v2299_v40 = vsel %vm4361_vm13, %v2291_v63, %v2298_v31  ;;  %v2595_v37 = vsel %vm4370_vm14, %v2300_v43, %v2881_v28  ;;  %v2958_v34 = vpack.c.bf16 %v1829_v52, %v1829_v52  ;;  %v4457_v54 = vpop.f32.mrb[32].mxu1  ;;  %v2041_v26 = vsel %vm1166_vm4, %v2002_v0, 0.0 }
 0x1fd   : > { %v2338_v11 = vrot.slane %v2336_v23, 7  ;;  %2880 = vst.msk [vmem:[%s4142_s8 + $0x28] sm:$0xf] %vm2112_vm7, %v2299_v40  ;;  %2882 = vst [vmem:[%s4142_s8 + $0x2c] sm:$0x1] %v2595_v37  ;;  %v1840_v8 = vadd.f32 %v4401_v56, %v4375_v62  ;;  %v1832_v19 = vadd.f32 %v4330_v4, %v4409_v46  ;;  %v1845_v63 = vadd.f32 %v4407_v14, %v1844_v24  ;;  %v4469_v29 = vpop.f32.mrb[33].mxu1 }
 0x1fe   : > { %v2042_v22 = vadd.f32 %v2041_v26, %v2040_v51  ;;  %v2319_v15 = vshrl.u32 %v2958_v34, 16  ;;  %v4471_v45 = vpop.f32.mrb[34].mxu1  ;;  %v2322_v50 = vshll.u32 %v2958_v34, 16 }
 0x1ff   : > { %v2341_v41 = vor.u32 %v2339_v60, %v2338_v11  ;;  %v2342_v38 = vrot.slane %v2338_v11, 4  ;;  %v1944_v57 = vsel %vm1166_vm4, %v1840_v8, 0.0  ;;  %v2005_v61 = vmul.f32 %v1840_v8, %v1840_v8  ;;  %v4474_v56 = vpop.f32.mrb[35].mxu1 }
 0x200   : > { %v2961_v62 = vpack.c.bf16 %v1840_v8, %v1840_v8  ;;  %v2321_v14 = vrot.slane %v2319_v15, 7  ;;  %v1940_v46 = vsel %vm1166_vm4, %v1832_v19, 0.0  ;;  %v2003_v24 = vmul.f32 %v1832_v19, %v1832_v19 }
 0x201   : > { %v2612_v4 = vsel %vm4349_vm12, %v2341_v41, %v2893_v9  ;;  %v3086_v30 = vpop.f32.mrb[32].mxu0  ;;  %v2047_v52 = vsel %vm1166_vm4, %v2005_v61, 0.0  ;;  %v1941_v6 = vadd.f32 %v1940_v46, %v1939_v49  ;;  %v2959_v33 = vpack.c.bf16 %v1832_v19, %v1832_v19  ;;  %v2896_v49 = vld [vmem:[%s4142_s8 + $0x50] sm:$0x1]  ;;  %v2891_v46 = vld [vmem:[%s4142_s8 + $0x44] sm:$0x1] }
 0x202   : > { %2894 = vst [vmem:[%s4142_s8 + $0x48] sm:$0xf] %v2612_v4  ;;  %v2344_v12 = vshrl.u32 %v2961_v62, 16  ;;  %v2347_v53 = vshll.u32 %v2961_v62, 16  ;;  %v3087_v27 = vpop.f32.mrb[33].mxu0  ;;  %v2324_v36 = vor.u32 %v2322_v50, %v2321_v14  ;;  %v2325_v28 = vrot.slane %v2321_v14, 4 }
 0x203   : > { %v2043_v32 = vsel %vm1166_vm4, %v2003_v24, 0.0  ;;  %v4483_v31 = vpop.f32.mrb[34].mxu0  ;;  %v1943_v23 = vadd.f32 %v1942_v58, %v1941_v6  ;;  %v1946_v0 = vsel %vm1166_vm4, %v1845_v63, 0.0  ;;  %v2327_v37 = vshrl.u32 %v2959_v33, 16 }
 0x204   : > { %v2346_v43 = vrot.slane %v2344_v12, 7  ;;  %v2044_v60 = vadd.f32 %v2043_v32, %v2042_v22  ;;  %v4486_v51 = vpop.f32.mrb[35].mxu0  ;;  %v2605_v40 = vsel %vm4349_vm12, %v2324_v36, %v2888_v44  ;;  %v2330_v11 = vshll.u32 %v2959_v33, 16  ;;  %v4491_v9 = vpop.f32.mrb[36].mxu1 }
 0x205   : > { %v2006_v34 = vmul.f32 %v1845_v63, %v1845_v63  ;;  %2889 = vst [vmem:[%s4142_s8 + $0x3c] sm:$0xf] %v2605_v40  ;;  %v1945_v19 = vadd.f32 %v1944_v57, %v1943_v23  ;;  %v4494_v41 = vpop.f32.mrb[37].mxu1  ;;  %v2329_v22 = vrot.slane %v2327_v37, 7  ;;  %v2962_v50 = vpack.c.bf16 %v1845_v63, %v1845_v63 }
 0x206   : > { %v2349_v26 = vor.u32 %v2347_v53, %v2346_v43  ;;  %v2351_v8 = vrot.slane %v2346_v43, 4  ;;  %v2046_v58 = vadd.f32 %v2045_v2, %v2044_v60  ;;  %v3082_v61 = vadd.f32 %v4425_v13, %v4421_v10  ;;  %v4499_v62 = vpop.f32.mrb[38].mxu1  ;;  %v2898_v43 = vld [vmem:[%s4142_s8 + $0x54] sm:$0xf] }
 0x207   : > { %v2049_v15 = vsel %vm1166_vm4, %v2006_v34, 0.0  ;;  %v1947_v2 = vadd.f32 %v1946_v0, %v1945_v19  ;;  %v4506_v24 = vpop.f32.mrb[39].mxu1  ;;  %v2332_v10 = vor.u32 %v2330_v11, %v2329_v22  ;;  %v2334_v13 = vrot.slane %v2329_v22, 4 }
 0x208   : > { %v2350_v4 = vsel %vm4361_vm13, %v2342_v38, %v2349_v26  ;;  %v2616_v14 = vsel %vm4370_vm14, %v2351_v8, %v2896_v49  ;;  %v2048_v57 = vadd.f32 %v2047_v52, %v2046_v58  ;;  %v2353_v63 = vshrl.u32 %v2962_v50, 16 }
 0x209   : > { %2895 = vst.msk [vmem:[%s4142_s8 + $0x4c] sm:$0xf] %vm2112_vm7, %v2350_v4  ;;  %2897 = vst [vmem:[%s4142_s8 + $0x50] sm:$0x1] %v2616_v14  ;;  %v2356_v44 = vshll.u32 %v2962_v50, 16  ;;  %v1853_v38 = vadd.f32 %v4419_v20, %v3082_v61  ;;  %v1848_v53 = vadd.f32 %v4423_v25, %v4438_v17  ;;  %v3085_v52 = vadd.f32 %v4440_v35, %v4433_v1 }
 0x20a   : > { %v2050_v12 = vadd.f32 %v2049_v15, %v2048_v57  ;;  %v2333_v6 = vsel %vm4361_vm13, %v2325_v28, %v2332_v10  ;;  %v2609_v36 = vsel %vm4370_vm14, %v2334_v13, %v2891_v46  ;;  %v2355_v32 = vrot.slane %v2353_v63, 7  ;;  %v2903_v57 = vld [vmem:[%s4142_s8 + $0x60] sm:$0xf] }
 0x20b   : > { %v3088_v33 = vadd.f32 %v3087_v27, %v3086_v30  ;;  %2890 = vst.msk [vmem:[%s4142_s8 + $0x40] sm:$0xf] %vm2112_vm7, %v2333_v6  ;;  %2892 = vst [vmem:[%s4142_s8 + $0x44] sm:$0x1] %v2609_v36  ;;  %v1950_v20 = vsel %vm1166_vm4, %v1853_v38, 0.0  ;;  %v2008_v23 = vmul.f32 %v1853_v38, %v1853_v38  ;;  %v2964_v60 = vpack.c.bf16 %v1853_v38, %v1853_v38 }
 0x20c   : > { %v1948_v25 = vsel %vm1166_vm4, %v1848_v53, 0.0  ;;  %v2358_v17 = vor.u32 %v2356_v44, %v2355_v32  ;;  %v2359_v1 = vrot.slane %v2355_v32, 4  ;;  %v2007_v28 = vmul.f32 %v1848_v53, %v1848_v53  ;;  %v3182_v0 = vpop.f32.mrb[40].mxu1 }
 0x20d   : > { %v1949_v35 = vadd.f32 %v1948_v25, %v1947_v2  ;;  %v4526_v40 = vpop.f32.mrb[36].mxu0  ;;  %v2053_v30 = vsel %vm1166_vm4, %v2008_v23, 0.0  ;;  %v2370_v27 = vshrl.u32 %v2964_v60, 16  ;;  %v2373_v49 = vshll.u32 %v2964_v60, 16  ;;  %v4529_v11 = vpop.f32.mrb[41].mxu1 }
 0x20e   : > { %v2963_v37 = vpack.c.bf16 %v1848_v53, %v1848_v53  ;;  %v4531_v34 = vpop.f32.mrb[37].mxu0  ;;  %v2619_v26 = vsel %vm4349_vm12, %v2358_v17, %v2898_v43  ;;  %v2051_v58 = vsel %vm1166_vm4, %v2007_v28, 0.0  ;;  %v1856_v19 = vadd.f32 %v4431_v3, %v3085_v52  ;;  %v4537_v22 = vpop.f32.mrb[42].mxu1 }
 0x20f   : > { %v1951_v8 = vadd.f32 %v1950_v20, %v1949_v35  ;;  %v4539_v15 = vpop.f32.mrb[38].mxu0  ;;  %2899 = vst [vmem:[%s4142_s8 + $0x54] sm:$0xf] %v2619_v26  ;;  %v2372_v50 = vrot.slane %v2370_v27, 7  ;;  %v2052_v61 = vadd.f32 %v2051_v58, %v2050_v12  ;;  %v4542_v46 = vpop.f32.mrb[43].mxu1  ;;  %v3091_v63 = vadd.f32 %v4486_v51, %v4483_v31 }
 0x210   : > { %v2361_v4 = vshrl.u32 %v2963_v37, 16  ;;  %v2364_v14 = vshll.u32 %v2963_v37, 16  ;;  %v4544_v2 = vpop.f32.mrb[39].mxu0  ;;  %v1952_v10 = vsel %vm1166_vm4, %v1856_v19, 0.0  ;;  %v2009_v13 = vmul.f32 %v1856_v19, %v1856_v19  ;;  %v2901_v12 = vld [vmem:[%s4142_s8 + $0x5c] sm:$0x1] }
 0x211   : > { %v2965_v3 = vpack.c.bf16 %v1856_v19, %v1856_v19  ;;  %v2375_v44 = vor.u32 %v2373_v49, %v2372_v50  ;;  %v2376_v38 = vrot.slane %v2372_v50, 4  ;;  %v2054_v53 = vadd.f32 %v2053_v30, %v2052_v61 }
 0x212   : > { %v2363_v52 = vrot.slane %v2361_v4, 7  ;;  %v2055_v6 = vsel %vm1166_vm4, %v2009_v13, 0.0  ;;  %v1861_v43 = vadd.f32 %v3088_v33, %v4469_v29  ;;  %v1953_v31 = vadd.f32 %v1952_v10, %v1951_v8  ;;  %v2906_v33 = vld [vmem:[%s4142_s8 + $0x68] sm:$0x1] }
 0x213   : > { %v2378_v36 = vshrl.u32 %v2965_v3, 16  ;;  %v2381_v32 = vshll.u32 %v2965_v3, 16  ;;  %v2626_v20 = vsel %vm4349_vm12, %v2375_v44, %v2903_v57  ;;  %v2056_v35 = vadd.f32 %v2055_v6, %v2054_v53 }
 0x214   : > { %v2366_v23 = vor.u32 %v2364_v14, %v2363_v52  ;;  %v2368_v60 = vrot.slane %v2363_v52, 4  ;;  %2904 = vst [vmem:[%s4142_s8 + $0x60] sm:$0xf] %v2626_v20  ;;  %v1954_v25 = vsel %vm1166_vm4, %v1861_v43, 0.0  ;;  %v2010_v17 = vmul.f32 %v1861_v43, %v1861_v43  ;;  %v4557_v28 = vpop.f32.mrb[44].mxu1 }
 0x215   : > { %v2380_v51 = vrot.slane %v2378_v36, 7  ;;  %v1955_v27 = vadd.f32 %v1954_v25, %v1953_v31  ;;  %v2966_v49 = vpack.c.bf16 %v1861_v43, %v1861_v43  ;;  %v4564_v37 = vpop.f32.mrb[45].mxu1  ;;  %v1864_v19 = vadd.f32 %v3091_v63, %v4474_v56 }
 0x216   : > { %v2367_v30 = vsel %vm4361_vm13, %v2359_v1, %v2366_v23  ;;  %v2623_v29 = vsel %vm4370_vm14, %v2368_v60, %v2901_v12  ;;  %v2057_v58 = vsel %vm1166_vm4, %v2010_v17, 0.0  ;;  %v4571_v1 = vpop.f32.mrb[46].mxu1  ;;  %v4574_v4 = vadd.f32 %v3182_v0, %v4316_v42 }
 0x217   : > { %2900 = vst.msk [vmem:[%s4142_s8 + $0x58] sm:$0xf] %vm2112_vm7, %v2367_v30  ;;  %2902 = vst [vmem:[%s4142_s8 + $0x5c] sm:$0x1] %v2623_v29  ;;  %v2383_v26 = vor.u32 %v2381_v32, %v2380_v51  ;;  %v2385_v8 = vrot.slane %v2380_v51, 4  ;;  %v2058_v50 = vadd.f32 %v2057_v58, %v2056_v35  ;;  %v2387_v61 = vshrl.u32 %v2966_v49, 16 }
 0x218   : > { %v4576_v14 = vpop.f32.mrb[47].mxu1  ;;  %v1956_v13 = vsel %vm1166_vm4, %v1864_v19, 0.0  ;;  %v2011_v3 = vmul.f32 %v1864_v19, %v1864_v19  ;;  %v2390_v44 = vshll.u32 %v2966_v49, 16  ;;  %v2967_v0 = vpack.c.bf16 %v1864_v19, %v1864_v19  ;;  %v2911_v35 = vld [vmem:[%s4142_s8 + $0x74] sm:$0x1] }
 0x219   : > { %v2384_v57 = vsel %vm4361_vm13, %v2376_v38, %v2383_v26  ;;  %v2630_v10 = vsel %vm4370_vm14, %v2385_v8, %v2906_v33  ;;  %v4583_v56 = vpop.f32.mrb[40].mxu0  ;;  %v2389_v63 = vrot.slane %v2387_v61, 7  ;;  %v1957_v42 = vadd.f32 %v1956_v13, %v1955_v27  ;;  %v2908_v38 = vld [vmem:[%s4142_s8 + $0x6c] sm:$0xf]  ;;  %v2933_v26 = vld [vmem:[%s4142_s8 + $0xa8] sm:$0xf] }
 0x21a   : > { %2905 = vst.msk [vmem:[%s4142_s8 + $0x64] sm:$0xf] %vm2112_vm7, %v2384_v57  ;;  %2907 = vst [vmem:[%s4142_s8 + $0x68] sm:$0x1] %v2630_v10  ;;  %v4588_v53 = vpop.f32.mrb[41].mxu0  ;;  %v2059_v52 = vsel %vm1166_vm4, %v2011_v3, 0.0  ;;  %v2976_v12 = vpack.c.bf16 %v4574_v4, %v4574_v4  ;;  %v4596_v6 = vadd.f32 %v4308_v18, %v4529_v11  ;;  %v3094_v30 = vadd.f32 %v4531_v34, %v4526_v40 }
 0x21b   : > { %v4598_v36 = vpop.f32.mrb[42].mxu0  ;;  %v2392_v32 = vor.u32 %v2390_v44, %v2389_v63  ;;  %v2060_v43 = vadd.f32 %v2059_v52, %v2058_v50  ;;  %v2395_v20 = vshrl.u32 %v2967_v0, 16  ;;  %v2398_v25 = vshll.u32 %v2967_v0, 16 }
 0x21c   : > { %v4600_v23 = vpop.f32.mrb[43].mxu0  ;;  %v2472_v60 = vshrl.u32 %v2976_v12, 16  ;;  %v2475_v17 = vshll.u32 %v2976_v12, 16  ;;  %v2974_v11 = vpack.c.bf16 %v4596_v6, %v4596_v6  ;;  %v4612_v29 = vadd.f32 %v4537_v22, %v4318_v16 }
 0x21d   : > { %v2633_v31 = vsel %vm4349_vm12, %v2392_v32, %v2908_v38  ;;  %v2397_v51 = vrot.slane %v2395_v20, 7  ;;  %v2393_v33 = vrot.slane %v2389_v63, 4  ;;  %v4617_v8 = vadd.f32 %v4310_v21, %v4542_v46  ;;  %v2928_v46 = vld [vmem:[%s4142_s8 + $0x9c] sm:$0xf] }
 0x21e   : > { %2909 = vst [vmem:[%s4142_s8 + $0x6c] sm:$0xf] %v2633_v31  ;;  %v2474_v18 = vrot.slane %v2472_v60, 7  ;;  %v2455_v19 = vshrl.u32 %v2974_v11, 16  ;;  %v1869_v16 = vadd.f32 %v4457_v54, %v3094_v30  ;;  %v2458_v61 = vshll.u32 %v2974_v11, 16 }
 0x21f   : > { %v2400_v27 = vor.u32 %v2398_v25, %v2397_v51  ;;  %v2402_v49 = vrot.slane %v2397_v51, 4  ;;  %v2977_v21 = vpack.c.bf16 %v4612_v29, %v4612_v29  ;;  %v2975_v25 = vpack.c.bf16 %v4617_v8, %v4617_v8  ;;  %v2913_v11 = vld [vmem:[%s4142_s8 + $0x78] sm:$0xf]  ;;  %v2936_v30 = vld [vmem:[%s4142_s8 + $0xb0] sm:$0x1] }
 0x220   : > { %v2477_v58 = vor.u32 %v2475_v17, %v2474_v18  ;;  %v2457_v22 = vrot.slane %v2455_v19, 7  ;;  %v1958_v57 = vsel %vm1166_vm4, %v1869_v16, 0.0  ;;  %v2012_v10 = vmul.f32 %v1869_v16, %v1869_v16 }
 0x221   : > { %v2401_v50 = vsel %vm4361_vm13, %v2393_v33, %v2400_v27  ;;  %v2637_v40 = vsel %vm4370_vm14, %v2402_v49, %v2911_v35  ;;  %v2968_v13 = vpack.c.bf16 %v1869_v16, %v1869_v16  ;;  %v1959_v54 = vadd.f32 %v1958_v57, %v1957_v42 }
 0x222   : > { %2910 = vst.msk [vmem:[%s4142_s8 + $0x70] sm:$0xf] %vm2112_vm7, %v2401_v50  ;;  %2912 = vst [vmem:[%s4142_s8 + $0x74] sm:$0x1] %v2637_v40  ;;  %v2668_v34 = vsel %vm4349_vm12, %v2477_v58, %v2933_v26  ;;  %v2460_v3 = vor.u32 %v2458_v61, %v2457_v22  ;;  %v2061_v44 = vsel %vm1166_vm4, %v2012_v10, 0.0  ;;  %v2480_v38 = vshrl.u32 %v2977_v21, 16 }
 0x223   : > { %2934 = vst [vmem:[%s4142_s8 + $0xa8] sm:$0xf] %v2668_v34  ;;  %v2404_v0 = vshrl.u32 %v2968_v13, 16  ;;  %v2062_v32 = vadd.f32 %v2061_v44, %v2060_v43  ;;  %v2407_v20 = vshll.u32 %v2968_v13, 16  ;;  %v2483_v60 = vshll.u32 %v2977_v21, 16 }
 0x224   : > { %v2661_v12 = vsel %vm4349_vm12, %v2460_v3, %v2928_v46  ;;  %v2482_v51 = vrot.slane %v2480_v38, 7  ;;  %v3097_v17 = vadd.f32 %v4544_v2, %v4539_v15  ;;  %v4654_v43 = vadd.f32 %v4557_v28, %v4332_v5  ;;  %v2931_v40 = vld [vmem:[%s4142_s8 + $0xa4] sm:$0x1] }
 0x225   : > { %v4634_v63 = vpop.f32.mrb[44].mxu0  ;;  %2929 = vst [vmem:[%s4142_s8 + $0x9c] sm:$0xf] %v2661_v12  ;;  %v2406_v42 = vrot.slane %v2404_v0, 7  ;;  %v4658_v33 = vadd.f32 %v4324_v48, %v4564_v37  ;;  %v4662_v27 = vadd.f32 %v4571_v1, %v4334_v59  ;;  %v2478_v15 = vrot.slane %v2474_v18, 4 }
 0x226   : > { %v4637_v52 = vpop.f32.mrb[45].mxu0  ;;  %v2485_v49 = vor.u32 %v2483_v60, %v2482_v51  ;;  %v2487_v26 = vrot.slane %v2482_v51, 4  ;;  %v2463_v58 = vshrl.u32 %v2975_v25, 16  ;;  %v1872_v19 = vadd.f32 %v4471_v45, %v3097_v17  ;;  %v2916_v0 = vld [vmem:[%s4142_s8 + $0x80] sm:$0x1] }
 0x227   : > { %v4641_v31 = vpop.f32.mrb[46].mxu0  ;;  %v2409_v2 = vor.u32 %v2407_v20, %v2406_v42  ;;  %v2466_v37 = vshll.u32 %v2975_v25, 16  ;;  %v2461_v50 = vrot.slane %v2457_v22, 4  ;;  %v2980_v34 = vpack.c.bf16 %v4654_v43, %v4654_v43  ;;  %v2943_v25 = vld [vmem:[%s4142_s8 + $0xc0] sm:$0xf] }
 0x228   : > { %v4648_v35 = vpop.f32.mrb[47].mxu0  ;;  %v2486_v28 = vsel %vm4361_vm13, %v2478_v15, %v2485_v49  ;;  %v2672_v48 = vsel %vm4370_vm14, %v2487_v26, %v2936_v30  ;;  %v2465_v59 = vrot.slane %v2463_v58, 7  ;;  %v1960_v1 = vsel %vm1166_vm4, %v1872_v19, 0.0 }
 0x229   : > { %v2640_v5 = vsel %vm4349_vm12, %v2409_v2, %v2913_v11  ;;  %2935 = vst.msk [vmem:[%s4142_s8 + $0xac] sm:$0xf] %vm2112_vm7, %v2486_v28  ;;  %2937 = vst [vmem:[%s4142_s8 + $0xb0] sm:$0x1] %v2672_v48  ;;  %v2013_v18 = vmul.f32 %v1872_v19, %v1872_v19  ;;  %v2969_v45 = vpack.c.bf16 %v1872_v19, %v1872_v19  ;;  %v2506_v13 = vshrl.u32 %v2980_v34, 16 }
 0x22a   : > { %2914 = vst [vmem:[%s4142_s8 + $0x78] sm:$0xf] %v2640_v5  ;;  %v4677_v16 = vadd.f32 %v1960_v1, %v1959_v54  ;;  %v2468_v61 = vor.u32 %v2466_v37, %v2465_v59  ;;  %v2470_v21 = vrot.slane %v2465_v59, 4  ;;  %v2509_v12 = vshll.u32 %v2980_v34, 16  ;;  %v2938_v28 = vld [vmem:[%s4142_s8 + $0xb4] sm:$0xf] }
 0x22b   : > { %v2063_v46 = vsel %vm1166_vm4, %v2013_v18, 0.0  ;;  %v2412_v57 = vshrl.u32 %v2969_v45, 16  ;;  %v2415_v44 = vshll.u32 %v2969_v45, 16  ;;  %v2508_v38 = vrot.slane %v2506_v13, 7 }
 0x22c   : > { %v4682_v10 = vadd.f32 %v2063_v46, %v2062_v32  ;;  %v2469_v3 = vsel %vm4361_vm13, %v2461_v50, %v2468_v61  ;;  %v2665_v22 = vsel %vm4370_vm14, %v2470_v21, %v2931_v40  ;;  %v2978_v32 = vpack.c.bf16 %v4658_v33, %v4658_v33  ;;  %v2946_v50 = vld [vmem:[%s4142_s8 + $0xc8] sm:$0x1] }
 0x22d   : > { %v2414_v54 = vrot.slane %v2412_v57, 7  ;;  %2930 = vst.msk [vmem:[%s4142_s8 + $0xa0] sm:$0xf] %vm2112_vm7, %v2469_v3  ;;  %2932 = vst [vmem:[%s4142_s8 + $0xa4] sm:$0x1] %v2665_v22  ;;  %v2410_v20 = vrot.slane %v2406_v42, 4  ;;  %v2981_v17 = vpack.c.bf16 %v4662_v27, %v4662_v27  ;;  %v2511_v11 = vor.u32 %v2509_v12, %v2508_v38 }
 0x22e   : > { %v2489_v30 = vshrl.u32 %v2978_v32, 16  ;;  %v2492_v49 = vshll.u32 %v2978_v32, 16  ;;  %v4708_v5 = vadd.f32 %v4326_v39, %v4576_v14  ;;  %v3100_v37 = vadd.f32 %v4588_v53, %v4583_v56 }
 0x22f   : > { %v2417_v60 = vor.u32 %v2415_v44, %v2414_v54  ;;  %v2419_v51 = vrot.slane %v2414_v54, 4  ;;  %v2514_v26 = vshrl.u32 %v2981_v17, 16  ;;  %v2682_v42 = vsel %vm4349_vm12, %v2511_v11, %v2943_v25  ;;  %v2941_v54 = vld [vmem:[%s4142_s8 + $0xbc] sm:$0x1] }
 0x230   : > { %v2491_v58 = vrot.slane %v2489_v30, 7  ;;  %v2517_v19 = vshll.u32 %v2981_v17, 16  ;;  %2944 = vst [vmem:[%s4142_s8 + $0xc0] sm:$0xf] %v2682_v42  ;;  %v3103_v59 = vadd.f32 %v4600_v23, %v4598_v36  ;;  %v3106_v1 = vadd.f32 %v4637_v52, %v4634_v63 }
 0x231   : > { %v2418_v15 = vsel %vm4361_vm13, %v2410_v20, %v2417_v60  ;;  %v2644_v2 = vsel %vm4370_vm14, %v2419_v51, %v2916_v0  ;;  %v2516_v48 = vrot.slane %v2514_v26, 7  ;;  %v2512_v18 = vrot.slane %v2508_v38, 4 }
 0x232   : > { %2915 = vst.msk [vmem:[%s4142_s8 + $0x7c] sm:$0xf] %vm2112_vm7, %v2418_v15  ;;  %2917 = vst [vmem:[%s4142_s8 + $0x80] sm:$0x1] %v2644_v2  ;;  %v2494_v45 = vor.u32 %v2492_v49, %v2491_v58  ;;  %v2979_v40 = vpack.c.bf16 %v4708_v5, %v4708_v5  ;;  %v1877_v34 = vadd.f32 %v3100_v37, %v4494_v41  ;;  %v2495_v22 = vrot.slane %v2491_v58, 4 }
 0x233   : > { %v2519_v39 = vor.u32 %v2517_v19, %v2516_v48  ;;  %v2521_v14 = vrot.slane %v2516_v48, 4  ;;  %v1880_v53 = vadd.f32 %v3103_v59, %v4506_v24  ;;  %v1885_v36 = vadd.f32 %v4491_v9, %v3106_v1  ;;  %v2918_v15 = vld [vmem:[%s4142_s8 + $0x84] sm:$0xf] }
 0x234   : > { %v2675_v56 = vsel %vm4349_vm12, %v2494_v45, %v2938_v28  ;;  %v2497_v52 = vshrl.u32 %v2979_v40, 16  ;;  %v2500_v61 = vshll.u32 %v2979_v40, 16  ;;  %v1962_v41 = vsel %vm1166_vm4, %v1877_v34, 0.0  ;;  %v2921_v28 = vld [vmem:[%s4142_s8 + $0x8c] sm:$0x1] }
 0x235   : > { %2939 = vst [vmem:[%s4142_s8 + $0xb4] sm:$0xf] %v2675_v56  ;;  %v2520_v23 = vsel %vm4361_vm13, %v2512_v18, %v2519_v39  ;;  %v2686_v63 = vsel %vm4370_vm14, %v2521_v14, %v2946_v50  ;;  %v2014_v21 = vmul.f32 %v1877_v34, %v1877_v34  ;;  %v2970_v46 = vpack.c.bf16 %v1877_v34, %v1877_v34 }
 0x236   : > { %2945 = vst.msk [vmem:[%s4142_s8 + $0xc4] sm:$0xf] %vm2112_vm7, %v2520_v23  ;;  %2947 = vst [vmem:[%s4142_s8 + $0xc8] sm:$0x1] %v2686_v63  ;;  %v1964_v24 = vsel %vm1166_vm4, %v1880_v53, 0.0  ;;  %v2499_v9 = vrot.slane %v2497_v52, 7  ;;  %v1963_v57 = vadd.f32 %v1962_v41, %v4677_v16  ;;  %v2015_v13 = vmul.f32 %v1880_v53, %v1880_v53 }
 0x237   : > { %v2971_v3 = vpack.c.bf16 %v1880_v53, %v1880_v53  ;;  %v2065_v44 = vsel %vm1166_vm4, %v2014_v21, 0.0  ;;  %v2421_v0 = vshrl.u32 %v2970_v46, 16  ;;  %v1966_v38 = vsel %vm1166_vm4, %v1885_v36, 0.0  ;;  %v2923_v63 = vld [vmem:[%s4142_s8 + $0x90] sm:$0xf] }
 0x238   : > { %v2502_v12 = vor.u32 %v2500_v61, %v2499_v9  ;;  %v2504_v32 = vrot.slane %v2499_v9, 4  ;;  %v2066_v20 = vadd.f32 %v2065_v44, %v4682_v10  ;;  %v1965_v60 = vadd.f32 %v1964_v24, %v1963_v57 }
 0x239   : > { %v2423_v51 = vrot.slane %v2421_v0, 7  ;;  %v2424_v16 = vshll.u32 %v2970_v46, 16  ;;  %v2067_v25 = vsel %vm1166_vm4, %v2015_v13, 0.0  ;;  %v2429_v17 = vshrl.u32 %v2971_v3, 16 }
 0x23a   : > { %v2503_v11 = vsel %vm4361_vm13, %v2495_v22, %v2502_v12  ;;  %v2679_v30 = vsel %vm4370_vm14, %v2504_v32, %v2941_v54  ;;  %v2068_v2 = vadd.f32 %v2067_v25, %v2066_v20  ;;  %v1967_v49 = vadd.f32 %v1966_v38, %v1965_v60  ;;  %v2926_v32 = vld [vmem:[%s4142_s8 + $0x98] sm:$0x1] }
 0x23b   : > { %2940 = vst.msk [vmem:[%s4142_s8 + $0xb8] sm:$0xf] %vm2112_vm7, %v2503_v11  ;;  %2942 = vst [vmem:[%s4142_s8 + $0xbc] sm:$0x1] %v2679_v30  ;;  %v2426_v10 = vor.u32 %v2424_v16, %v2423_v51  ;;  %v2431_v26 = vrot.slane %v2429_v17, 7  ;;  %v2432_v42 = vshll.u32 %v2971_v3, 16  ;;  %v2016_v58 = vmul.f32 %v1885_v36, %v1885_v36 }
 0x23c   : > { %v2427_v19 = vrot.slane %v2423_v51, 4  ;;  %v2972_v48 = vpack.c.bf16 %v1885_v36, %v1885_v36  ;;  %v3109_v37 = vadd.f32 %v4648_v35, %v4641_v31  ;;  %v2018_v40 = vmul.f32 %v4596_v6, %v4596_v6 }
 0x23d   : > { %v2647_v59 = vsel %vm4349_vm12, %v2426_v10, %v2918_v15  ;;  %v2434_v1 = vor.u32 %v2432_v42, %v2431_v26  ;;  %v2436_v18 = vrot.slane %v2431_v26, 4  ;;  %v2069_v45 = vsel %vm1166_vm4, %v2016_v58, 0.0 }
 0x23e   : > { %2919 = vst [vmem:[%s4142_s8 + $0x84] sm:$0xf] %v2647_v59  ;;  %v2070_v50 = vadd.f32 %v2069_v45, %v2068_v2  ;;  %v2438_v39 = vshrl.u32 %v2972_v48, 16  ;;  %v1888_v14 = vadd.f32 %v4499_v62, %v3109_v37  ;;  %v2441_v35 = vshll.u32 %v2972_v48, 16 }
 0x23f   : > { %v2435_v34 = vsel %vm4361_vm13, %v2427_v19, %v2434_v1  ;;  %v2651_v31 = vsel %vm4370_vm14, %v2436_v18, %v2921_v28  ;;  %v1970_v62 = vsel %vm1166_vm4, %v4596_v6, 0.0  ;;  %v2019_v61 = vmul.f32 %v4617_v8, %v4617_v8 }
 0x240   : > { %2920 = vst.msk [vmem:[%s4142_s8 + $0x88] sm:$0xf] %vm2112_vm7, %v2435_v34  ;;  %2922 = vst [vmem:[%s4142_s8 + $0x8c] sm:$0x1] %v2651_v31  ;;  %v2440_v56 = vrot.slane %v2438_v39, 7  ;;  %v1968_v53 = vsel %vm1166_vm4, %v1888_v14, 0.0  ;;  %v2017_v36 = vmul.f32 %v1888_v14, %v1888_v14  ;;  %v2973_v23 = vpack.c.bf16 %v1888_v14, %v1888_v14 }
 0x241   : > { %v1969_v52 = vadd.f32 %v1968_v53, %v1967_v49  ;;  %v2020_v24 = vmul.f32 %v4574_v4, %v4574_v4  ;;  %v2073_v9 = vsel %vm1166_vm4, %v2018_v40, 0.0  ;;  %v1972_v6 = vsel %vm1166_vm4, %v4617_v8, 0.0 }
 0x242   : > { %v2443_v41 = vor.u32 %v2441_v35, %v2440_v56  ;;  %v2071_v21 = vsel %vm1166_vm4, %v2017_v36, 0.0  ;;  %v2446_v46 = vshrl.u32 %v2973_v23, 16  ;;  %v2449_v54 = vshll.u32 %v2973_v23, 16 }
 0x243   : > { %v1971_v57 = vadd.f32 %v1970_v62, %v1969_v52  ;;  %v2072_v13 = vadd.f32 %v2071_v21, %v2070_v50  ;;  %v1974_v44 = vsel %vm1166_vm4, %v4574_v4, 0.0  ;;  %v2021_v0 = vmul.f32 %v4612_v29, %v4612_v29 }
 0x244   : > { %v2654_v3 = vsel %vm4349_vm12, %v2443_v41, %v2923_v63  ;;  %v2448_v22 = vrot.slane %v2446_v46, 7  ;;  %v2075_v20 = vsel %vm1166_vm4, %v2019_v61, 0.0  ;;  %v2444_v8 = vrot.slane %v2440_v56, 4 }
 0x245   : > { %2924 = vst [vmem:[%s4142_s8 + $0x90] sm:$0xf] %v2654_v3  ;;  %v1973_v38 = vadd.f32 %v1972_v6, %v1971_v57  ;;  %v2074_v12 = vadd.f32 %v2073_v9, %v2072_v13  ;;  %v2077_v51 = vsel %vm1166_vm4, %v2020_v24, 0.0  ;;  %v1976_v4 = vsel %vm1166_vm4, %v4612_v29, 0.0 }
 0x246   : > { %v2451_v60 = vor.u32 %v2449_v54, %v2448_v22  ;;  %v2453_v47 = vrot.slane %v2448_v22, 4  ;;  %v2022_v17 = vmul.f32 %v4658_v33, %v4658_v33  ;;  %v2079_v49 = vsel %vm1166_vm4, %v2021_v0, 0.0 }
 0x247   : > { %v1975_v16 = vadd.f32 %v1974_v44, %v1973_v38  ;;  %v2076_v25 = vadd.f32 %v2075_v20, %v2074_v12  ;;  %v1978_v10 = vsel %vm1166_vm4, %v4658_v33, 0.0  ;;  %v2023_v29 = vmul.f32 %v4708_v5, %v4708_v5 }
 0x248   : > { %v2452_v11 = vsel %vm4361_vm13, %v2444_v8, %v2451_v60  ;;  %v2658_v30 = vsel %vm4370_vm14, %v2453_v47, %v2926_v32  ;;  %v2024_v55 = vmul.f32 %v4654_v43, %v4654_v43  ;;  %v2081_v7 = vsel %vm1166_vm4, %v2022_v17, 0.0 }
 0x249   : > { %v1977_v15 = vadd.f32 %v1976_v4, %v1975_v16  ;;  %v2078_v2 = vadd.f32 %v2077_v51, %v2076_v25  ;;  %2925 = vst.msk [vmem:[%s4142_s8 + $0x94] sm:$0xf] %vm2112_vm7, %v2452_v11  ;;  %2927 = vst [vmem:[%s4142_s8 + $0x98] sm:$0x1] %v2658_v30  ;;  %v1980_v58 = vsel %vm1166_vm4, %v4708_v5, 0.0  ;;  %v1982_v48 = vsel %vm1166_vm4, %v4654_v43, 0.0 }
 0x24a   : > { %v2025_v33 = vmul.f32 %v4662_v27, %v4662_v27  ;;  %v2083_v37 = vsel %vm1166_vm4, %v2023_v29, 0.0  ;;  %v2085_v18 = vsel %vm1166_vm4, %v2024_v55, 0.0  ;;  %v1984_v45 = vsel %vm1166_vm4, %v4662_v27, 0.0 }
 0x24b   : > { %v1979_v26 = vadd.f32 %v1978_v10, %v1977_v15  ;;  %v2080_v42 = vadd.f32 %v2079_v49, %v2078_v2 }
 0x24c   : > { %v2087_v39 = vsel %vm1166_vm4, %v2025_v33, 0.0 }
 0x24d   : > { %v1981_v19 = vadd.f32 %v1980_v58, %v1979_v26  ;;  %v2082_v28 = vadd.f32 %v2081_v7, %v2080_v42 }
 0x24f   : > { %v1983_v59 = vadd.f32 %v1982_v48, %v1981_v19  ;;  %v2084_v1 = vadd.f32 %v2083_v37, %v2082_v28 }
 0x251   : > { %v1985_v50 = vadd.f32 %v1984_v45, %v1983_v59  ;;  %v2086_v5 = vadd.f32 %v2085_v18, %v2084_v1 }
 0x253   : > { %v1986_v14 = vrot.slane %v1985_v50, 4  ;;  %v2088_v43 = vadd.f32 %v2087_v39, %v2086_v5 }
 0x255   : > { %v1987_v40 = vadd.f32 %v1986_v14, %v1985_v50  ;;  %v2089_v34 = vrot.slane %v2088_v43, 4 }
 0x257   : > { %v1988_v31 = vrot.slane %v1987_v40, 2  ;;  %v2090_v35 = vadd.f32 %v2089_v34, %v2088_v43 }
 0x259   : > { %v1989_v56 = vadd.f32 %v1988_v31, %v1987_v40  ;;  %v2091_v53 = vrot.slane %v2090_v35, 2 }
 0x25b   : > { %v1990_v36 = vrot.slane %v1989_v56, 1  ;;  %v2092_v23 = vadd.f32 %v2091_v53, %v2090_v35 }
 0x25d   : > { %v1991_v27 = vadd.f32 %v1990_v36, %v1989_v56  ;;  %v2093_v62 = vrot.slane %v2092_v23, 1 }
 0x25f   : > { %1993 = vst.msk [vmem:[%s265_s15] sm:$0x1] %vm1992_vm8, %v1991_v27  ;;  %v2094_v63 = vadd.f32 %v2093_v62, %v2092_v23 }
 0x261   : > { %2095 = vst.msk [vmem:[%s268_s18] sm:$0x1] %vm1992_vm8, %v2094_v63 }
 0x262 PF: > { %s17_s21 = sadd.s32 1, %s3244_s21  }
 0x263   : > { %p14_p4 = scmp.ge.s32.totalorder %s17_s21, 4  }
 0x265   :  { %16 = sbr.rel (!%p14_p4) target bundleno = 1 (0x1), region = 91 }

// kernel: generator_forward.7
= control target key start
LH: loop header
LB: loop body
LE: loop exit
PB: predicated region body
PF: predicated region fallthrough
CT: control target
= control target key end

     0   :  { %s2473_s15 = smov 0   ;;  %s3451_s0 = inlined_call_operand.vmem [shape: bf16[2,18,18,32], index: 0, kind: input, shape index: {}]   ;;  %s3452_s1 = inlined_call_operand.vmem [shape: bf16[288,1], index: 1, kind: input, shape index: {}]   ;;  %s3453_s2 = inlined_call_operand.vmem [shape: f32[1,1,32], index: 2, kind: input, shape index: {}]   ;;  %s3454_s3 = inlined_call_operand.vmem [shape: f32[1,1,32], index: 3, kind: input, shape index: {}]   ;;  %s3455_s4 = inlined_call_operand.vmem [shape: bf16[2,16,16,1], index: 4, kind: output, shape index: {}]  }
   0x1 LB: > { %s2068_s16 = sadd.s32 4294967295, %s2441_s15   ;;  %p2072_p0 = scmp.ge.s32.totalorder %s2441_s15, 1  ;;  %s2441_s15 = sphi %s2473_s15, %s14_s15  }
   0x2   : > { %p162_p1 = scmp.lt.s32.totalorder %s2441_s15, 3 }
   0x4   : > { %p163_p2 = pnand %p2072_p0, %p162_p1 }
   0x6   : > { %166 = sbr.rel (%p163_p2) target bundleno = 560 (0x230), region = 36 }
   0xd   : > { %v483_v0 = vlaneseq  ;;  %v2443_v1 = vmov 0.0|0.0   ;;  %v2444_v3 = vmov 0   ;;  %p188_p3 = scmp.lt.s32.totalorder %s2068_s16, 1  ;;  %s2445_s17 = smov 64   ;;  %v2415_v6 = vld [vmem:[%s3452_s1 + $0x40] sm:$0xff]   ;;  %v2417_v10 = vld [vmem:[%s3452_s1 + $0x48] sm:$0xff]  }
   0xe   : > { %v2482_v2 = vrot.slane %v2443_v1, 1  ;;  %v2484_v4 = vrot.slane %v2444_v3, 1  ;;  %s2446_s18 = smov 32   ;;  %2219 = vmatprep.subr.bf16.mxu0 %v2415_v6  ;;  %v2416_v8 = vld [vmem:[%s3452_s1] sm:$0xff]   ;;  %2385 = vmatprep.subr.bf16.mxu1 %v2415_v6  ;;  %v2418_v11 = vld [vmem:[%s3452_s1 + $0x8] sm:$0xff]   ;;  %vm852_vm2 = vcmask 1046528  }
   0xf   : > { %v2486_v5 = vshrl.u32 %v483_v0, 7  ;;  %s3484_s16 = smov (!%p188_p3, %s2068_s16), 1  ;;  %v2507_v9 = vld [vmem:[%s3453_s2] ss:$0 sm:$0xff]  ;;  %2220 = vmatpush3.bf16.msra.mxu0 %v2416_v8  ;;  %2393 = vmatpush3.bf16.msra.mxu1 %v2416_v8  ;;  %v2419_v53 = vld [vmem:[%s3452_s1 + $0x50] sm:$0xff]   ;;  %s2447_s25 = smov 96  }
  0x10   : > { %3465 = vst [vmem:[#allocation2_spill] sm:$0xff] %v2482_v2  ;;  %901 = vrot.lane.b32.xlu1 %v2482_v2, %s2445_s17  ;;  %788 = vrot.lane.b32.xlu0 %v2484_v4, %s2446_s18  ;;  %s2401_s21 = smul.u32 216, %s3484_s16  ;;  %v2530_v21 = vld [vmem:[%s3454_s3] ss:$0 sm:$0xff]  ;;  %v2420_v54 = vld [vmem:[%s3452_s1 + $0x10] sm:$0xff]   ;;  %vm1095_vm4 = vcmask 261120  }
  0x11   : > { %v2498_v7 = vadd.s32 16, %v2486_v5  ;;  %vm487_vm0 = vcmp.ge.s32.totalorder %v2486_v5, 1  ;;  %2221 = vmatprep.subr.bf16.mxu0 %v2417_v10  ;;  %2386 = vmatprep.subr.bf16.mxu1 %v2417_v10  ;;  %v2421_v10 = vld [vmem:[%s3452_s1 + $0x58] sm:$0xff]   ;;  %vm595_vm3 = vsmask.f32 7424  ;;  %vm1128_vm5 = vcmask 523264  }
  0x12   : > { %s2515_s30 = scalar_lea.vmem %s3451_s0, %s2401_s21  ;;  %vm1161_vm6 = vcmask 785408   ;;  %vm1980_vm7 = vcmask 3072  }
  0x13   : > { %v2217_v12 = vld [vmem:[%s2515_s30 + $0xa8] sm:$0xff]   ;;  %v2211_v13 = vld [vmem:[%s2515_s30 + $0x18] sm:$0xff]   ;;  %vm498_vm1 = vcmp.le.s32.totalorder %v2498_v7, 16  ;;  %v204_v19 = vld [vmem:[%s2515_s30 + $0x14] sm:$0x1]  ;;  %2222 = vmatpush3.bf16.msra.mxu0 %v2418_v11  ;;  %2394 = vmatpush3.bf16.msra.mxu1 %v2418_v11 }
  0x14   : > { %v202_v14 = vld [vmem:[%s2515_s30 + $0xc] sm:$0xff]   ;;  %v2205_v15 = vunpack.c.l.bf16 %v2217_v12  ;;  %v2206_v16 = vunpack.c.h.bf16 %v2217_v12  ;;  %v2181_v17 = vunpack.c.l.bf16 %v2211_v13  ;;  %v2182_v18 = vunpack.c.h.bf16 %v2211_v13  ;;  %v238_v20 = vld [vmem:[%s2515_s30 + $0x9c] sm:$0xff]   ;;  %v240_v42 = vld [vmem:[%s2515_s30 + $0xa4] sm:$0x1]  ;;  %2223 = vmatprep.subr.bf16.mxu0 %v2419_v53  ;;  %2387 = vmatprep.subr.bf16.mxu1 %v2419_v53 }
  0x15   : > { %v256_v22 = vunpack.c.l.bf16 %v202_v14  ;;  %v257_v23 = vunpack.c.h.bf16 %v202_v14  ;;  %v258_v24 = vunpack.c.l.bf16 %v204_v19  ;;  %v292_v25 = vunpack.c.l.bf16 %v238_v20  ;;  %v237_v47 = vld [vmem:[%s2515_s30 + $0x98] sm:$0x1]  ;;  %v2216_v52 = vld [vmem:[%s2515_s30 + $0x90] sm:$0xff]   ;;  %v207_v63 = vld [vmem:[%s2515_s30 + $0x20] sm:$0x1] }
  0x16   : > { %v357_v26 = vmul.f32 %v2205_v15, %v2507_v9  ;;  %v358_v27 = vmul.f32 %v2206_v16, %v2507_v9  ;;  %v321_v28 = vmul.f32 %v2181_v17, %v2507_v9  ;;  %v322_v29 = vmul.f32 %v2182_v18, %v2507_v9  ;;  %v2422_v15 = vld [vmem:[%s3452_s1 + $0x18] sm:$0xff]  }
  0x17   : > { %v318_v30 = vmul.f32 %v2507_v9, %v256_v22  ;;  %v319_v31 = vmul.f32 %v2507_v9, %v257_v23  ;;  %v320_v32 = vmul.f32 %v2507_v9, %v258_v24  ;;  %v293_v33 = vunpack.c.h.bf16 %v238_v20  ;;  %2224 = vmatpush3.bf16.msra.mxu0 %v2420_v54  ;;  %2395 = vmatpush3.bf16.msra.mxu1 %v2420_v54 }
  0x18   : > { %v417_v34 = vadd.f32 %v2530_v21, %v357_v26  ;;  %v418_v35 = vadd.f32 %v2530_v21, %v358_v27  ;;  %v381_v36 = vadd.f32 %v2530_v21, %v321_v28  ;;  %v382_v37 = vadd.f32 %v2530_v21, %v322_v29  ;;  %2225 = vmatprep.subr.bf16.mxu0 %v2421_v10  ;;  %v243_v29 = vld [vmem:[%s2515_s30 + $0xb0] sm:$0x1] }
  0x19   : > { %v378_v38 = vadd.f32 %v2530_v21, %v318_v30  ;;  %v379_v39 = vadd.f32 %v2530_v21, %v319_v31  ;;  %v380_v40 = vadd.f32 %v2530_v21, %v320_v32  ;;  %v354_v41 = vmul.f32 %v2507_v9, %v292_v25  ;;  %2388 = vmatprep.subr.bf16.mxu1 %v2421_v10  ;;  %v2423_v25 = vld [vmem:[%s3452_s1 + $0x60] sm:$0xff]  }
  0x1a   : > { %v471_v43 = vmax.f32 %v417_v34, 0.0  ;;  %v472_v44 = vmax.f32 %v418_v35, 0.0  ;;  %v435_v45 = vmax.f32 %v381_v36, 0.0  ;;  %v436_v46 = vmax.f32 %v382_v37, 0.0  ;;  %v2424_v30 = vld [vmem:[%s3452_s1 + $0x20] sm:$0xff]  }
  0x1b   : > { %v432_v48 = vmax.f32 %v378_v38, 0.0  ;;  %v433_v49 = vmax.f32 %v379_v39, 0.0  ;;  %v434_v50 = vmax.f32 %v380_v40, 0.0  ;;  %v355_v51 = vmul.f32 %v2507_v9, %v293_v33  ;;  %2226 = vmatpush3.bf16.msra.mxu0 %v2422_v15  ;;  %2396 = vmatpush3.bf16.msra.mxu1 %v2422_v15  ;;  %v2425_v39 = vld [vmem:[%s3452_s1 + $0x68] sm:$0xff]  }
  0x1c   : > { %v547_v55 = vsel %vm487_vm0, %v471_v43, 0.0  ;;  %v511_v56 = vsel %vm487_vm0, %v435_v45, 0.0  ;;  %v414_v57 = vadd.f32 %v2530_v21, %v354_v41  ;;  %v294_v58 = vunpack.c.l.bf16 %v240_v42  ;;  %2227 = vmatprep.subr.bf16.mxu0 %v2423_v25  ;;  %2389 = vmatprep.subr.bf16.mxu1 %v2423_v25 }
  0x1d   : > { %v2562_v59 = vpack.c.bf16 %v472_v44, %v547_v55  ;;  %v2564_v60 = vpack.c.bf16 %v436_v46, %v511_v56  ;;  %v508_v61 = vsel %vm487_vm0, %v432_v48, 0.0  ;;  %v510_v62 = vsel %vm498_vm1, %v434_v50, 0.0  ;;  %v2426_v48 = vld [vmem:[%s3452_s1 + $0x28] sm:$0xff]  }
  0x1e   : > { %v2571_v0 = vpack.c.bf16 %v433_v49, %v508_v61  ;;  %v2573_v3 = vpack.c.bf16 %v510_v62, %v510_v62  ;;  %v415_v6 = vadd.f32 %v2530_v21, %v355_v51  ;;  %v468_v8 = vmax.f32 %v414_v57, 0.0  ;;  %v2427_v57 = vld [vmem:[%s3452_s1 + $0x70] sm:$0xff]  }
  0x1f   : > { %1039 = vrot.lane.b32.xlu0 %v2562_v59, %s2445_s17  ;;  %1015 = vrot.lane.b32.xlu1 %v2564_v60, %s2445_s17  ;;  %v356_v11 = vmul.f32 %v2507_v9, %v294_v58  ;;  %v2201_v12 = vunpack.c.l.bf16 %v2216_v52  ;;  %v2202_v13 = vunpack.c.h.bf16 %v2216_v52  ;;  %v291_v14 = vunpack.c.l.bf16 %v237_v47 }
  0x20   : > { %v856_v16 = vrot.slane %v2571_v0, 1  ;;  %v857_v17 = vrot.slane %v2573_v3, 1  ;;  %v469_v18 = vmax.f32 %v415_v6, 0.0  ;;  %v544_v19 = vsel %vm487_vm0, %v468_v8, 0.0  ;;  %2228 = vmatpush3.bf16.msra.mxu0 %v2424_v30  ;;  %2397 = vmatpush3.bf16.msra.mxu1 %v2424_v30  ;;  %v208_v6 = vld [vmem:[%s2515_s30 + $0x24] sm:$0xff]  }
  0x21   : > { %v416_v20 = vadd.f32 %v2530_v21, %v356_v11  ;;  %v351_v22 = vmul.f32 %v2201_v12, %v2507_v9  ;;  %v352_v23 = vmul.f32 %v2202_v13, %v2507_v9  ;;  %v353_v24 = vmul.f32 %v2507_v9, %v291_v14  ;;  %2229 = vmatprep.subr.bf16.mxu0 %v2425_v39  ;;  %v2428_v13 = vld [vmem:[%s3452_s1 + $0x30] sm:$0xff]  }
  0x22   : > { %v2599_v26 = vsel %vm852_vm2, %v856_v16, %v857_v17  ;;  %v2601_v27 = vpack.c.bf16 %v469_v18, %v544_v19  ;;  %v261_v28 = vunpack.c.l.bf16 %v207_v63  ;;  %v621_v37 = vshrl.u32 %v2564_v60, 16  ;;  %2390 = vmatprep.subr.bf16.mxu1 %v2425_v39  ;;  %v2429_v18 = vld [vmem:[%s3452_s1 + $0x78] sm:$0xff]  }
  0x23   : > { %934 = vrot.lane.b32.xlu1 %v2571_v0, %s2447_s25  ;;  %982 = vrot.lane.b32.xlu0 %v2599_v26, %s2446_s18  ;;  %v470_v31 = vmax.f32 %v416_v20, 0.0  ;;  %v411_v32 = vadd.f32 %v2530_v21, %v351_v22  ;;  %v412_v33 = vadd.f32 %v2530_v21, %v352_v23  ;;  %v413_v34 = vadd.f32 %v2530_v21, %v353_v24 }
  0x24   : > { %v892_v35 = vrot.slane %v2601_v27, 1  ;;  %v323_v36 = vmul.f32 %v2507_v9, %v261_v28  ;;  %v623_v38 = vshll.u32 %v2564_v60, 16  ;;  %v297_v47 = vunpack.c.l.bf16 %v243_v29  ;;  %2230 = vmatpush3.bf16.msra.mxu0 %v2426_v48  ;;  %2398 = vmatpush3.bf16.msra.mxu1 %v2426_v48 }
  0x25   : > { %v546_v40 = vsel %vm498_vm1, %v470_v31, 0.0  ;;  %v465_v41 = vmax.f32 %v411_v32, 0.0  ;;  %v466_v42 = vmax.f32 %v412_v33, 0.0  ;;  %v467_v43 = vmax.f32 %v413_v34, 0.0  ;;  %2231 = vmatprep.subr.bf16.mxu0 %v2427_v57  ;;  %2391 = vmatprep.subr.bf16.mxu1 %v2427_v57  ;;  %v210_v34 = vld [vmem:[%s2515_s30 + $0x2c] sm:$0x1] }
  0x26   : > { %v2623_v44 = vpack.c.bf16 %v546_v40, %v546_v40  ;;  %v383_v45 = vadd.f32 %v2530_v21, %v323_v36  ;;  %v625_v46 = vrot.slane %v623_v38, 1  ;;  %v859_v51 = vrot.slane %v2564_v60, 1 }
  0x27   : > { %958 = vrot.lane.b32.xlu1 %v2601_v27, %s2447_s25  ;;  %v541_v49 = vsel %vm487_vm0, %v465_v41, 0.0  ;;  %v543_v50 = vsel %vm498_vm1, %v467_v43, 0.0  ;;  %v767_v52 = vshll.u32 %v2562_v59, 16  ;;  %v359_v61 = vmul.f32 %v2507_v9, %v297_v47 }
  0x28   : > { %v893_v53 = vrot.slane %v2623_v44, 1  ;;  %v2638_v54 = vpack.c.bf16 %v466_v42, %v541_v49  ;;  %v584_v55 = vpack.c.bf16 %v543_v50, %v543_v50  ;;  %v437_v56 = vmax.f32 %v383_v45, 0.0  ;;  %2232 = vmatpush3.bf16.msra.mxu0 %v2428_v13  ;;  %2399 = vmatpush3.bf16.msra.mxu1 %v2428_v13  ;;  %v2212_v13 = vld [vmem:[%s2515_s30 + $0x30] sm:$0xff]  }
  0x29   : > { %v626_v58 = vor.u32 %v625_v46, %v621_v37  ;;  %v765_v62 = vshrl.u32 %v2562_v59, 16  ;;  %v769_v63 = vrot.slane %v767_v52, 1  ;;  %v419_v20 = vadd.f32 %v2530_v21, %v359_v61  ;;  %2233 = vmatprep.subr.bf16.mxu0 %v2429_v18  ;;  %2392 = vmatprep.subr.bf16.mxu1 %v2429_v18 }
  0x2a   : > { %v2647_v8 = vsel %vm852_vm2, %v892_v35, %v893_v53  ;;  %v889_v10 = vrot.slane %v2638_v54, 1  ;;  %v890_v11 = vrot.slane %v584_v55, 1  ;;  %v513_v12 = vsel %vm498_vm1, %v437_v56, 0.0  ;;  %v2430_v35 = vld [vmem:[%s3452_s1 + $0x38] sm:$0xff]  }
  0x2b   : > { %3466 = vst [vmem:[#allocation3_spill] sm:$0xff] %v2647_v8  ;;  %1006 = vrot.lane.b32.xlu0 %v2647_v8, %s2446_s18  ;;  %v564_v14 = vpack.c.bf16 %v513_v12, %v513_v12  ;;  %v741_v15 = vshrl.u32 %v2638_v54, 16  ;;  %v743_v16 = vshll.u32 %v2638_v54, 16  ;;  %v748_v17 = vshll.u32 %v584_v55, 16  ;;  %v246_v12 = vld [vmem:[%s2515_s30 + $0xbc] sm:$0x1] }
  0x2c   : > { %v2663_v19 = vsel %vm852_vm2, %v889_v10, %v890_v11  ;;  %v609_v22 = vshrl.u32 %v2571_v0, 16  ;;  %v611_v23 = vshll.u32 %v2571_v0, 16  ;;  %v473_v30 = vmax.f32 %v419_v20, 0.0  ;;  %2234 = vmatpush3.bf16.msra.mxu0 %v2430_v35  ;;  %2400 = vmatpush3.bf16.msra.mxu1 %v2430_v35 }
  0x2d   : > { %925 = vrot.lane.b32.xlu1 %v2663_v19, %s2445_s17  ;;  %v860_v24 = vrot.slane %v564_v14, 1  ;;  %v628_v25 = vshll.u32 %v564_v14, 16  ;;  %v745_v28 = vrot.slane %v743_v16, 1  ;;  %v750_v29 = vrot.slane %v748_v17, 1 }
  0x2e   : > { %v613_v31 = vrot.slane %v611_v23, 1  ;;  %v616_v32 = vshll.u32 %v2573_v3, 16  ;;  %v262_v33 = vunpack.c.l.bf16 %v208_v6  ;;  %v263_v39 = vunpack.c.h.bf16 %v208_v6 }
  0x2f   : > { %v2676_v36 = vsel %vm852_vm2, %v859_v51, %v860_v24  ;;  %v630_v37 = vrot.slane %v628_v25, 1  ;;  %v746_v38 = vor.u32 %v745_v28, %v741_v15  ;;  %v549_v3 = vsel %vm498_vm1, %v473_v30, 0.0  ;;  %v244_v51 = vld [vmem:[%s2515_s30 + $0xb4] sm:$0xff]  }
  0x30   : > { %984 = vrot.lane.b32.xlu0 %v2676_v36, %s2446_s18  ;;  %v614_v40 = vor.u32 %v613_v31, %v609_v22  ;;  %v618_v41 = vrot.slane %v616_v32, 1  ;;  %v324_v42 = vmul.f32 %v2507_v9, %v262_v33  ;;  %v588_v46 = vpack.c.bf16 %v549_v3, %v549_v3  ;;  %v213_v33 = vld [vmem:[%s2515_s30 + $0x38] sm:$0x1] }
  0x31   : > { %v2684_v43 = vsel %vm595_vm3, %v626_v58, %v630_v37  ;;  %v2687_v45 = vsel %vm595_vm3, %v746_v38, %v750_v29  ;;  %v325_v47 = vmul.f32 %v2507_v9, %v263_v39  ;;  %v770_v48 = vor.u32 %v769_v63, %v765_v62 }
  0x32   : > { %1059 = vrot.lane.b32.xlu1 %v2684_v43, %s2447_s25  ;;  %v384_v49 = vadd.f32 %v2530_v21, %v324_v42  ;;  %v264_v50 = vunpack.c.l.bf16 %v210_v34  ;;  %v772_v52 = vshll.u32 %v588_v46, 16  ;;  %v2695_v53 = vsel %vm595_vm3, %v614_v40, %v618_v41 }
  0x33   : > { %v385_v55 = vadd.f32 %v2530_v21, %v325_v47  ;;  %v895_v56 = vrot.slane %v2562_v59, 1  ;;  %v896_v58 = vrot.slane %v588_v46, 1  ;;  %v755_v62 = vshll.u32 %v2601_v27, 16 }
  0x34   : > { %812 = vrot.lane.b32.xlu0 %v2687_v45, %s2446_s18  ;;  %v438_v57 = vmax.f32 %v384_v49, 0.0  ;;  %v326_v61 = vmul.f32 %v2507_v9, %v264_v50  ;;  %v774_v63 = vrot.slane %v772_v52, 1  ;;  %v753_v10 = vshrl.u32 %v2601_v27, 16  ;;  %v2218_v52 = vld [vmem:[%s2515_s30 + $0xc0] sm:$0xff]  }
  0x35   : > { %v439_v6 = vmax.f32 %v385_v55, 0.0  ;;  %v298_v11 = vunpack.c.l.bf16 %v244_v51  ;;  %v757_v16 = vrot.slane %v755_v62, 1  ;;  %v760_v17 = vshll.u32 %v2623_v44, 16 }
  0x36   : > { %790 = vrot.lane.b32.xlu1 %v2695_v53, %s2446_s18  ;;  %v514_v14 = vsel %vm487_vm0, %v438_v57, 0.0  ;;  %v386_v15 = vadd.f32 %v2530_v21, %v326_v61  ;;  %v2713_v18 = vsel %vm595_vm3, %v770_v48, %v774_v63  ;;  %v299_v22 = vunpack.c.h.bf16 %v244_v51 }
  0x37   : > { %v2715_v20 = vpack.c.bf16 %v439_v6, %v514_v14  ;;  %v360_v23 = vmul.f32 %v2507_v9, %v298_v11  ;;  %v2721_v24 = vsel %vm852_vm2, %v895_v56, %v896_v58  ;;  %v300_v28 = vunpack.c.l.bf16 %v246_v12 }
  0x38   : > { %1083 = vrot.lane.b32.xlu0 %v2713_v18, %s2447_s25  ;;  %3467 = vst [vmem:[#allocation4_spill] sm:$0xff] %v2721_v24  ;;  %v440_v25 = vmax.f32 %v386_v15, 0.0  ;;  %v2185_v29 = vunpack.c.l.bf16 %v2212_v13  ;;  %v361_v31 = vmul.f32 %v2507_v9, %v299_v22  ;;  %v758_v35 = vor.u32 %v757_v16, %v753_v10 }
  0x39   : > { %v633_v30 = vshrl.u32 %v2715_v20, 16  ;;  %v635_v44 = vshll.u32 %v2715_v20, 16  ;;  %v420_v32 = vadd.f32 %v2530_v21, %v360_v23  ;;  %v762_v37 = vrot.slane %v760_v17, 1  ;;  %v249_v17 = vld [vmem:[%s2515_s30 + $0xc8] sm:$0x1] }
  0x3a   : > { %903 = vrot.lane.b32.xlu1 %v2599_v26, %s2445_s17  ;;  %v516_v34 = vsel %vm498_vm1, %v440_v25, 0.0  ;;  %v362_v38 = vmul.f32 %v2507_v9, %v300_v28  ;;  %v421_v40 = vadd.f32 %v2530_v21, %v361_v31  ;;  %v2186_v26 = vunpack.c.h.bf16 %v2212_v13 }
  0x3b   : > { %v2733_v39 = vpack.c.bf16 %v516_v34, %v516_v34  ;;  %v637_v3 = vrot.slane %v635_v44, 1  ;;  %v474_v41 = vmax.f32 %v420_v32, 0.0  ;;  %v327_v46 = vmul.f32 %v2185_v29, %v2507_v9 }
  0x3c   : > { %1017 = vrot.lane.b32.xlu0 %v2715_v20, %s2445_s17  ;;  %v422_v42 = vadd.f32 %v2530_v21, %v362_v38  ;;  %v267_v47 = vunpack.c.l.bf16 %v213_v33  ;;  %v475_v50 = vmax.f32 %v421_v40, 0.0  ;;  %v328_v56 = vmul.f32 %v2186_v26, %v2507_v9 }
  0x3d   : > { %v638_v48 = vor.u32 %v637_v3, %v633_v30  ;;  %v640_v49 = vshll.u32 %v2733_v39, 16  ;;  %v550_v51 = vsel %vm487_vm0, %v474_v41, 0.0  ;;  %v387_v57 = vadd.f32 %v2530_v21, %v327_v46 }
  0x3e   : > { %v476_v55 = vmax.f32 %v422_v42, 0.0  ;;  %v2747_v61 = vsel %vm595_vm3, %v758_v35, %v762_v37  ;;  %v2749_v62 = vpack.c.bf16 %v475_v50, %v550_v51  ;;  %v329_v63 = vmul.f32 %v2507_v9, %v267_v47  ;;  %v214_v47 = vld [vmem:[%s2515_s30 + $0x3c] sm:$0xff]  }
  0x3f   : > { %v642_v58 = vrot.slane %v640_v49, 1  ;;  %v388_v10 = vadd.f32 %v2530_v21, %v328_v56  ;;  %v441_v11 = vmax.f32 %v387_v57, 0.0  ;;  %v2209_v12 = vunpack.c.l.bf16 %v2218_v52  ;;  %v216_v56 = vld [vmem:[%s2515_s30 + $0x44] sm:$0x1] }
  0x40   : > { %1008 = vrot.lane.b32.xlu0 %v2721_v24, %s2446_s18  ;;  %v552_v6 = vsel %vm498_vm1, %v476_v55, 0.0  ;;  %v777_v15 = vshrl.u32 %v2749_v62, 16  ;;  %v779_v16 = vshll.u32 %v2749_v62, 16  ;;  %v389_v22 = vadd.f32 %v2530_v21, %v329_v63 }
  0x41   : > { %v2758_v13 = vsel %vm595_vm3, %v638_v48, %v642_v58  ;;  %v590_v14 = vpack.c.bf16 %v552_v6, %v552_v6  ;;  %v442_v28 = vmax.f32 %v388_v10, 0.0  ;;  %v2210_v29 = vunpack.c.h.bf16 %v2218_v52 }
  0x42   : > { %1061 = vrot.lane.b32.xlu1 %v2758_v13, %s2447_s25  ;;  %v781_v23 = vrot.slane %v779_v16, 1  ;;  %v517_v30 = vsel %vm487_vm0, %v441_v11, 0.0  ;;  %v443_v44 = vmax.f32 %v389_v22, 0.0  ;;  %v363_v31 = vmul.f32 %v2209_v12, %v2507_v9 }
  0x43   : > { %v784_v25 = vshll.u32 %v590_v14, 16  ;;  %v303_v32 = vunpack.c.l.bf16 %v249_v17  ;;  %v364_v35 = vmul.f32 %v2210_v29, %v2507_v9  ;;  %v2775_v38 = vpack.c.bf16 %v442_v28, %v517_v30 }
  0x44   : > { %814 = vrot.lane.b32.xlu0 %v2747_v61, %s2446_s18  ;;  %v782_v33 = vor.u32 %v781_v23, %v777_v15  ;;  %v423_v37 = vadd.f32 %v2530_v21, %v363_v31  ;;  %v519_v40 = vsel %vm498_vm1, %v443_v44, 0.0  ;;  %v862_v42 = vrot.slane %v2715_v20, 1 }
  0x45   : > { %v786_v34 = vrot.slane %v784_v25, 1  ;;  %v365_v3 = vmul.f32 %v2507_v9, %v303_v32  ;;  %v863_v26 = vrot.slane %v2733_v39, 1  ;;  %v424_v46 = vadd.f32 %v2530_v21, %v364_v35 }
  0x46   : > { %936 = vrot.lane.b32.xlu1 %v2564_v60, %s2447_s25  ;;  %v477_v48 = vmax.f32 %v423_v37, 0.0  ;;  %v2792_v50 = vpack.c.bf16 %v519_v40, %v519_v40  ;;  %v647_v51 = vshll.u32 %v2775_v38, 16  ;;  %v268_v52 = vunpack.c.l.bf16 %v214_v47 }
  0x47   : > { %v2783_v41 = vsel %vm595_vm3, %v782_v33, %v786_v34  ;;  %v425_v49 = vadd.f32 %v2530_v21, %v365_v3  ;;  %v2798_v55 = vsel %vm852_vm2, %v862_v42, %v863_v26  ;;  %v478_v39 = vmax.f32 %v424_v46, 0.0 }
  0x48   : > { %1041 = vrot.lane.b32.xlu0 %v2749_v62, %s2445_s17  ;;  %v553_v57 = vsel %vm487_vm0, %v477_v48, 0.0  ;;  %v645_v63 = vshrl.u32 %v2775_v38, 16  ;;  %v649_v6 = vrot.slane %v647_v51, 1  ;;  %v652_v10 = vshll.u32 %v2792_v50, 16 }
  0x49   : > { %v479_v58 = vmax.f32 %v425_v49, 0.0  ;;  %v269_v11 = vunpack.c.h.bf16 %v214_v47  ;;  %v330_v12 = vmul.f32 %v2507_v9, %v268_v52  ;;  %v270_v15 = vunpack.c.l.bf16 %v216_v56  ;;  %v2213_v52 = vld [vmem:[%s2515_s30 + $0x48] sm:$0xff]  }
  0x4a   : > { %927 = vrot.lane.b32.xlu1 %v2647_v8, %s2445_s17  ;;  %v898_v16 = vrot.slane %v2749_v62, 1  ;;  %v899_v17 = vrot.slane %v590_v14, 1  ;;  %v2811_v22 = vpack.c.bf16 %v478_v39, %v553_v57  ;;  %v650_v25 = vor.u32 %v649_v6, %v645_v63 }
  0x4b   : > { %v555_v23 = vsel %vm498_vm1, %v479_v58, 0.0  ;;  %v654_v28 = vrot.slane %v652_v10, 1  ;;  %v331_v29 = vmul.f32 %v2507_v9, %v269_v11  ;;  %v390_v30 = vadd.f32 %v2530_v21, %v330_v12  ;;  %v219_v11 = vld [vmem:[%s2515_s30 + $0x50] sm:$0x1] }
  0x4c   : > { %1085 = vrot.lane.b32.xlu0 %v2783_v41, %s2447_s25  ;;  %v332_v44 = vmul.f32 %v2507_v9, %v270_v15  ;;  %v2823_v14 = vsel %vm852_vm2, %v898_v16, %v899_v17  ;;  %v592_v31 = vpack.c.bf16 %v555_v23, %v555_v23  ;;  %v969_v32 = vshll.u32 %v2811_v22, 16 }
  0x4d   : > { %3468 = vst [vmem:[#allocation5_spill] sm:$0xff] %v2823_v14  ;;  %v2829_v33 = vsel %vm595_vm3, %v650_v25, %v654_v28  ;;  %v391_v34 = vadd.f32 %v2530_v21, %v331_v29  ;;  %v444_v35 = vmax.f32 %v390_v30, 0.0  ;;  %v967_v3 = vshrl.u32 %v2811_v22, 16 }
  0x4e   : > { %960 = vrot.lane.b32.xlu1 %v2562_v59, %s2447_s25  ;;  %v392_v37 = vadd.f32 %v2530_v21, %v332_v44  ;;  %v971_v40 = vrot.slane %v969_v32, 1  ;;  %v974_v42 = vshll.u32 %v592_v31, 16  ;;  %v865_v57 = vrot.slane %v2775_v38, 1 }
  0x4f   : > { %v445_v26 = vmax.f32 %v391_v34, 0.0  ;;  %v520_v46 = vsel %vm487_vm0, %v444_v35, 0.0  ;;  %v866_v58 = vrot.slane %v2792_v50, 1  ;;  %v2189_v63 = vunpack.c.l.bf16 %v2213_v52 }
  0x50   : > { %986 = vrot.lane.b32.xlu0 %v2798_v55, %s2446_s18  ;;  %v446_v47 = vmax.f32 %v392_v37, 0.0  ;;  %v972_v48 = vor.u32 %v971_v40, %v967_v3  ;;  %v976_v49 = vrot.slane %v974_v42, 1  ;;  %v2190_v15 = vunpack.c.h.bf16 %v2213_v52  ;;  %v220_v37 = vld [vmem:[%s2515_s30 + $0x54] sm:$0xff]   ;;  %v2899_v52 = vld [vmem:[%s3452_s1 + $0x80] sm:$0xff]  }
  0x51   : > { %v2844_v51 = vpack.c.bf16 %v445_v26, %v520_v46  ;;  %v2865_v12 = vsel %vm852_vm2, %v865_v57, %v866_v58  ;;  %v333_v50 = vmul.f32 %v2189_v63, %v2507_v9  ;;  %v273_v16 = vunpack.c.l.bf16 %v219_v11  ;;  %2349 = vmatprep.subr.bf16.mxu1 %v2899_v52 }
  0x52   : > { %792 = vrot.lane.b32.xlu1 %v2684_v43, %s2446_s18  ;;  %v522_v39 = vsel %vm498_vm1, %v446_v47, 0.0  ;;  %v2852_v56 = vsel %vm595_vm3, %v972_v48, %v976_v49  ;;  %v979_v28 = vrot.slane %v2811_v22, 1  ;;  %v980_v29 = vrot.slane %v592_v31, 1  ;;  %v222_v47 = vld [vmem:[%s2515_s30 + $0x5c] sm:$0x1] }
  0x53   : > { %3469 = vst [vmem:[#allocation6_spill] sm:$0xff] %v2844_v51  ;;  %v2858_v6 = vpack.c.bf16 %v522_v39, %v522_v39  ;;  %v659_v10 = vshll.u32 %v2844_v51, 16  ;;  %v657_v17 = vshrl.u32 %v2844_v51, 16  ;;  %v334_v30 = vmul.f32 %v2190_v15, %v2507_v9 }
  0x54   : > { %1019 = vrot.lane.b32.xlu0 %v2775_v38, %s2445_s17  ;;  %v393_v44 = vadd.f32 %v2530_v21, %v333_v50  ;;  %v335_v32 = vmul.f32 %v2507_v9, %v273_v16  ;;  %v2884_v3 = vsel %vm852_vm2, %v979_v28, %v980_v29  ;;  %v274_v26 = vunpack.c.l.bf16 %v220_v37 }
  0x55   : > { %v661_v23 = vrot.slane %v659_v10, 1  ;;  %v664_v25 = vshll.u32 %v2858_v6, 16  ;;  %3470 = vst [vmem:[#allocation7_spill] sm:$0xff] %v2884_v3  ;;  %v394_v31 = vadd.f32 %v2530_v21, %v334_v30  ;;  %v275_v49 = vunpack.c.h.bf16 %v220_v37 }
  0x56   : > { %905 = vrot.lane.b32.xlu1 %v2676_v36, %s2445_s17  ;;  %v447_v40 = vmax.f32 %v393_v44, 0.0  ;;  %v395_v42 = vadd.f32 %v2530_v21, %v335_v32  ;;  %v336_v58 = vmul.f32 %v2507_v9, %v274_v26  ;;  %v276_v63 = vunpack.c.l.bf16 %v222_v47 }
  0x57   : > { %v662_v34 = vor.u32 %v661_v23, %v657_v17  ;;  %v666_v35 = vrot.slane %v664_v25, 1  ;;  %v448_v48 = vmax.f32 %v394_v31, 0.0  ;;  %v337_v11 = vmul.f32 %v2507_v9, %v275_v49  ;;  %v2214_v17 = vld [vmem:[%s2515_s30 + $0x60] sm:$0xff]  }
  0x58   : > { %1010 = vrot.lane.b32.xlu0 %v2823_v14, %s2446_s18  ;;  %v523_v39 = vsel %vm487_vm0, %v447_v40, 0.0  ;;  %v449_v57 = vmax.f32 %v395_v42, 0.0  ;;  %v396_v50 = vadd.f32 %v2530_v21, %v336_v58  ;;  %v338_v16 = vmul.f32 %v2507_v9, %v276_v63 }
  0x59   : > { %v2891_v46 = vsel %vm595_vm3, %v662_v34, %v666_v35  ;;  %v2909_v10 = vpack.c.bf16 %v448_v48, %v523_v39  ;;  %v868_v23 = vrot.slane %v2844_v51, 1  ;;  %v869_v25 = vrot.slane %v2858_v6, 1  ;;  %v225_v35 = vld [vmem:[%s2515_s30 + $0x68] sm:$0x1] }
  0x5a   : > { %1063 = vrot.lane.b32.xlu1 %v2829_v33, %s2447_s25  ;;  %v525_v15 = vsel %vm498_vm1, %v449_v57, 0.0  ;;  %v397_v30 = vadd.f32 %v2530_v21, %v337_v11  ;;  %v2193_v44 = vunpack.c.l.bf16 %v2214_v17  ;;  %v450_v32 = vmax.f32 %v396_v50, 0.0  ;;  %v226_v11 = vld [vmem:[%s2515_s30 + $0x6c] sm:$0xff]  }
  0x5b   : > { %3471 = vst [vmem:[#allocation8_spill] sm:$0xff] %v2909_v10  ;;  %v572_v28 = vpack.c.bf16 %v525_v15, %v525_v15  ;;  %v671_v29 = vshll.u32 %v2909_v10, 16  ;;  %v398_v34 = vadd.f32 %v2530_v21, %v338_v16  ;;  %v669_v6 = vshrl.u32 %v2909_v10, 16 }
  0x5c   : > { %816 = vrot.lane.b32.xlu0 %v2713_v18, %s2446_s18  ;;  %v2194_v37 = vunpack.c.h.bf16 %v2214_v17  ;;  %v451_v42 = vmax.f32 %v397_v30, 0.0  ;;  %v339_v26 = vmul.f32 %v2193_v44, %v2507_v9  ;;  %v526_v47 = vsel %vm487_vm0, %v450_v32, 0.0 }
  0x5d   : > { %v673_v31 = vrot.slane %v671_v29, 1  ;;  %v676_v40 = vshll.u32 %v572_v28, 16  ;;  %v452_v48 = vmax.f32 %v398_v34, 0.0  ;;  %v871_v50 = vrot.slane %v2909_v10, 1  ;;  %v228_v34 = vld [vmem:[%s2515_s30 + $0x74] sm:$0x1] }
  0x5e   : > { %938 = vrot.lane.b32.xlu1 %v2715_v20, %s2447_s25  ;;  %v340_v49 = vmul.f32 %v2194_v37, %v2507_v9  ;;  %v2943_v58 = vpack.c.bf16 %v451_v42, %v526_v47  ;;  %v399_v63 = vadd.f32 %v2530_v21, %v339_v26  ;;  %v872_v16 = vrot.slane %v572_v28, 1 }
  0x5f   : > { %v674_v39 = vor.u32 %v673_v31, %v669_v6  ;;  %v678_v57 = vrot.slane %v676_v40, 1  ;;  %v281_v37 = vunpack.c.h.bf16 %v226_v11 }
  0x60   : > { %1043 = vrot.lane.b32.xlu0 %v2811_v22, %s2445_s17  ;;  %3472 = vst [vmem:[#allocation9_spill] sm:$0xff] %v2943_v58  ;;  %v400_v17 = vadd.f32 %v2530_v21, %v340_v49  ;;  %v683_v30 = vshll.u32 %v2943_v58, 16  ;;  %v453_v44 = vmax.f32 %v399_v63, 0.0  ;;  %v2967_v28 = vsel %vm852_vm2, %v871_v50, %v872_v16  ;;  %v2215_v16 = vld [vmem:[%s2515_s30 + $0x78] sm:$0xff]  }
  0x62   : > { %929 = vrot.lane.b32.xlu1 %v2721_v24, %s2445_s17  ;;  %v454_v6 = vmax.f32 %v400_v17, 0.0  ;;  %v685_v31 = vrot.slane %v683_v30, 1  ;;  %v529_v42 = vsel %vm487_vm0, %v453_v44, 0.0  ;;  %v874_v17 = vrot.slane %v2943_v58, 1  ;;  %v234_v24 = vld [vmem:[%s2515_s30 + $0x8c] sm:$0x1] }
  0x64   : > { %1087 = vrot.lane.b32.xlu0 %v2852_v56, %s2447_s25 }
  0x66   : > { %962 = vrot.lane.b32.xlu1 %v2749_v62, %s2447_s25 }
  0x68   : > { %988 = vrot.lane.b32.xlu0 %v2865_v12, %s2446_s18 }
  0x6a   : > { %794 = vrot.lane.b32.xlu1 %v2758_v13, %s2446_s18 }
  0x6c   : > { %1021 = vrot.lane.b32.xlu0 %v2844_v51, %s2445_s17 }
  0x6e   : > { %907 = vrot.lane.b32.xlu1 %v2798_v55, %s2445_s17 }
  0x70   : > { %1012 = vrot.lane.b32.xlu0 %v2884_v3, %s2446_s18 }
  0x72   : > { %1065 = vrot.lane.b32.xlu1 %v2891_v46, %s2447_s25 }
  0x74   : > { %818 = vrot.lane.b32.xlu0 %v2783_v41, %s2446_s18 }
  0x76   : > { %940 = vrot.lane.b32.xlu1 %v2775_v38, %s2447_s25 }
  0x78   : > { %1045 = vrot.lane.b32.xlu0 %v2443_v1, %s2445_s17  ;;  %v2932_v1 = vsel %vm852_vm2, %v868_v23, %v869_v25  ;;  %v280_v23 = vunpack.c.l.bf16 %v226_v11  ;;  %v2957_v25 = vsel %vm595_vm3, %v674_v39, %v678_v57  ;;  %v2981_v39 = vpack.c.bf16 %v454_v6, %v529_v42 }
  0x79   : > { %3473 = vst [vmem:[#allocation10_spill] sm:$0xff] %v2957_v25  ;;  %v343_v57 = vmul.f32 %v2507_v9, %v281_v37  ;;  %v2197_v37 = vunpack.c.l.bf16 %v2215_v16 }
  0x7a   : > { %931 = vrot.lane.b32.xlu1 %v2823_v14, %s2445_s17  ;;  %v342_v26 = vmul.f32 %v2507_v9, %v280_v23  ;;  %v695_v30 = vshll.u32 %v2981_v39, 16  ;;  %v693_v42 = vshrl.u32 %v2981_v39, 16 }
  0x7b   : > { %v403_v44 = vadd.f32 %v2530_v21, %v343_v57 }
  0x7c   : > { %1089 = vrot.lane.b32.xlu0 %v2484_v4, %s2447_s25  ;;  %v279_v4 = vunpack.c.l.bf16 %v225_v35  ;;  %v681_v35 = vshrl.u32 %v2943_v58, 16  ;;  %v697_v57 = vrot.slane %v695_v30, 1 }
  0x7e   : > { %964 = vrot.lane.b32.xlu1 %v2811_v22, %s2447_s25  ;;  %v528_v22 = vsel %vm498_vm1, %v452_v48, 0.0  ;;  %v341_v15 = vmul.f32 %v2507_v9, %v279_v4  ;;  %v282_v48 = vunpack.c.l.bf16 %v228_v34  ;;  %v686_v63 = vor.u32 %v685_v31, %v681_v35 }
  0x7f   : > { %v574_v29 = vpack.c.bf16 %v528_v22, %v528_v22  ;;  %v402_v22 = vadd.f32 %v2530_v21, %v342_v26  ;;  %v457_v26 = vmax.f32 %v403_v44, 0.0 }
  0x80   : > { %990 = vrot.lane.b32.xlu0 %v2932_v1, %s2446_s18  ;;  %v401_v32 = vadd.f32 %v2530_v21, %v341_v15  ;;  %v344_v50 = vmul.f32 %v2507_v9, %v282_v48 }
  0x81   : > { %v688_v40 = vshll.u32 %v574_v29, 16  ;;  %v875_v23 = vrot.slane %v574_v29, 1  ;;  %v456_v9 = vmax.f32 %v402_v22, 0.0  ;;  %v231_v29 = vld [vmem:[%s2515_s30 + $0x80] sm:$0x1] }
  0x82   : > { %796 = vrot.lane.b32.xlu1 %v2829_v33, %s2446_s18  ;;  %v455_v47 = vmax.f32 %v401_v32, 0.0  ;;  %v2975_v4 = vpop.permute.xlu1 %901  ;;  %v2977_v49 = vpop.permute.xlu0 %788  ;;  %v404_v31 = vadd.f32 %v2530_v21, %v344_v50  ;;  %v3020_v22 = vld [vmem:[%s3453_s2] ss:$0 sm:$0xff] }
  0x83   : > { %v690_v11 = vrot.slane %v688_v40, 1  ;;  %v3010_v40 = vsel %vm852_vm2, %v874_v17, %v875_v23 }
  0x84   : > { %1023 = vrot.lane.b32.xlu0 %v2909_v10, %s2445_s17  ;;  %v531_v15 = vsel %vm498_vm1, %v455_v47, 0.0  ;;  %v2198_v47 = vunpack.c.h.bf16 %v2215_v16  ;;  %v458_v50 = vmax.f32 %v404_v31, 0.0  ;;  %v285_v16 = vunpack.c.l.bf16 %v231_v29  ;;  %v232_v29 = vld [vmem:[%s2515_s30 + $0x84] sm:$0xff]  }
  0x85   : > { %v2997_v32 = vsel %vm595_vm3, %v686_v63, %v690_v11  ;;  %v576_v6 = vpack.c.bf16 %v531_v15, %v531_v15  ;;  %v532_v11 = vsel %vm487_vm0, %v456_v9, 0.0  ;;  %v345_v15 = vmul.f32 %v3020_v22, %v2197_v37 }
  0x86   : > { %909 = vrot.lane.b32.xlu1 %v2865_v12, %s2445_s17  ;;  %v3027_v23 = vpack.c.bf16 %v457_v26, %v532_v11  ;;  %v346_v30 = vmul.f32 %v3020_v22, %v2198_v47  ;;  %v698_v9 = vor.u32 %v697_v57, %v693_v42  ;;  %v534_v37 = vsel %vm498_vm1, %v458_v50, 0.0 }
  0x87   : > { %v700_v63 = vshll.u32 %v576_v6, 16  ;;  %v405_v3 = vadd.f32 %v2530_v21, %v345_v15  ;;  %v347_v31 = vmul.f32 %v3020_v22, %v285_v16  ;;  %v877_v26 = vrot.slane %v2981_v39, 1  ;;  %v2434_v21 = vld [vmem:[%s3454_s3] ss:$0 sm:$0xff] }
  0x88   : > { %1067 = vrot.lane.b32.xlu0 %v2957_v25, %s2447_s25  ;;  %v878_v47 = vrot.slane %v576_v6, 1  ;;  %v707_v42 = vshll.u32 %v3027_v23, 16  ;;  %v406_v57 = vadd.f32 %v2434_v21, %v346_v30  ;;  %v3049_v15 = vpack.c.bf16 %v534_v37, %v534_v37 }
  0x89   : > { %v702_v2 = vrot.slane %v700_v63, 1  ;;  %v459_v50 = vmax.f32 %v405_v3, 0.0  ;;  %v407_v16 = vadd.f32 %v2434_v21, %v347_v31  ;;  %v286_v14 = vunpack.c.l.bf16 %v232_v29 }
  0x8a   : > { %942 = vrot.lane.b32.xlu1 %v2844_v51, %s2447_s25  ;;  %v3057_v30 = vsel %vm852_vm2, %v877_v26, %v878_v47  ;;  %v460_v37 = vmax.f32 %v406_v57, 0.0  ;;  %v712_v31 = vshll.u32 %v3049_v15, 16  ;;  %v1097_v51 = vsel %vm1095_vm4, 0.0|0.0, %v2977_v49 }
  0x8b   : > { %v3047_v11 = vsel %vm595_vm3, %v698_v9, %v702_v2  ;;  %v705_v2 = vshrl.u32 %v3027_v23, 16  ;;  %v709_v9 = vrot.slane %v707_v42, 1  ;;  %v535_v8 = vsel %vm487_vm0, %v459_v50, 0.0 }
  0x8c   : > { %992 = vrot.lane.b32.xlu0 %v2967_v28, %s2446_s18  ;;  %v461_v47 = vmax.f32 %v407_v16, 0.0  ;;  %v348_v42 = vmul.f32 %v3020_v22, %v286_v14  ;;  %v288_v57 = vunpack.c.l.bf16 %v234_v24  ;;  %v3076_v50 = vpack.c.bf16 %v460_v37, %v535_v8 }
  0x8d   : > { %v1130_v49 = vsel %vm1128_vm5, %v1097_v51, %v2975_v4  ;;  %v714_v16 = vrot.slane %v712_v31, 1  ;;  %v880_v4 = vrot.slane %v3027_v23, 1 }
  0x8e   : > { %798 = vrot.lane.b32.xlu1 %v2891_v46, %s2446_s18  ;;  %v537_v8 = vsel %vm498_vm1, %v461_v47, 0.0 }
  0x90   : > { %1025 = vrot.lane.b32.xlu0 %v2943_v58, %s2445_s17 }
  0x91   : > { %v2999_v34 = vpop.permute.xlu0 %1039  ;;  %v3001_v35 = vpop.permute.xlu1 %1015 }
  0x92   : > { %911 = vrot.lane.b32.xlu1 %v2932_v1, %s2445_s17 }
  0x94   : > { %1069 = vrot.lane.b32.xlu0 %v2997_v32, %s2447_s25 }
  0x95   : > { %v3013_v48 = vpop.permute.xlu1 %934  ;;  %v983_v17 = vpop.permute.xlu0 %982 }
  0x96   : > { %944 = vrot.lane.b32.xlu1 %v2909_v10, %s2447_s25  ;;  %v1212_v3 = vsel %vm1095_vm4, %v2695_v53, %v983_v17  ;;  %v287_v10 = vunpack.c.h.bf16 %v232_v29  ;;  %v710_v29 = vor.u32 %v709_v9, %v705_v2  ;;  %v350_v2 = vmul.f32 %v3020_v22, %v288_v57  ;;  %v2432_v57 = vld [vmem:[%s3452_s1 + $0x88] sm:$0xff]  }
  0x97   : > { %v1259_v17 = vsel %vm1128_vm5, %v1212_v3, %v3001_v35  ;;  %v408_v35 = vadd.f32 %v2434_v21, %v348_v42  ;;  %v719_v9 = vshll.u32 %v3076_v50, 16 }
  0x98   : > { %994 = vrot.lane.b32.xlu0 %v3010_v40, %s2446_s18  ;;  %v349_v14 = vmul.f32 %v3020_v22, %v287_v10  ;;  %v3099_v37 = vsel %vm595_vm3, %v710_v29, %v714_v16  ;;  %v410_v42 = vadd.f32 %v2434_v21, %v350_v2 }
  0x99   : > { %v3030_v44 = vpop.permute.xlu1 %958  ;;  %v462_v47 = vmax.f32 %v408_v35, 0.0 }
  0x9a   : > { %800 = vrot.lane.b32.xlu1 %v2957_v25, %s2446_s18  ;;  %v1163_v25 = vsel %vm1161_vm6, %v1130_v49, %v3013_v48  ;;  %v881_v48 = vrot.slane %v3049_v15, 1  ;;  %v409_v3 = vadd.f32 %v2434_v21, %v349_v14  ;;  %v721_v21 = vrot.slane %v719_v9, 1 }
  0x9b   : > { %v538_v14 = vsel %vm487_vm0, %v462_v47, 0.0 }
  0x9c   : > { %1027 = vrot.lane.b32.xlu0 %v2981_v39, %s2445_s17  ;;  %v463_v29 = vmax.f32 %v409_v3, 0.0 }
  0x9d   : > { %v1007_v63 = vpop.permute.xlu0 %1006 }
  0x9e   : > { %913 = vrot.lane.b32.xlu1 %v2967_v28, %s2445_s17  ;;  %v1248_v51 = vsel %vm1095_vm4, %v2747_v61, %v1007_v63  ;;  %v580_v63 = vpack.c.bf16 %v537_v8, %v537_v8  ;;  %v3125_v35 = vpack.c.bf16 %v463_v29, %v538_v14 }
  0x9f   : > { %v926_v6 = vpop.permute.xlu1 %925  ;;  %v1283_v31 = vsel %vm1128_vm5, %v1248_v51, %v2999_v34  ;;  %v717_v34 = vshrl.u32 %v3076_v50, 16 }
  0xa0   : > { %1071 = vrot.lane.b32.xlu0 %v3047_v11, %s2447_s25  ;;  %v731_v3 = vshll.u32 %v3125_v35, 16 }
  0xa2   : > { %946 = vrot.lane.b32.xlu1 %v2943_v58, %s2447_s25  ;;  %v3069_v26 = vpop.permute.xlu0 %984 }
  0xa3   : > { %v1215_v5 = vsel %vm1095_vm4, %v2684_v43, %v3069_v26 }
  0xa4   : > { %996 = vrot.lane.b32.xlu0 %v3057_v30, %s2446_s18  ;;  %v1060_v53 = vpop.permute.xlu1 %1059 }
  0xa5   : > { %v1291_v58 = vsel %vm1161_vm6, %v1259_v17, %v1060_v53  ;;  %v3115_v53 = vsel %vm852_vm2, %v880_v4, %v881_v48  ;;  %v724_v17 = vshll.u32 %v580_v63, 16  ;;  %v883_v4 = vrot.slane %v3076_v50, 1 }
  0xa6   : > { %802 = vrot.lane.b32.xlu1 %v2997_v32, %s2446_s18  ;;  %v813_v24 = vpop.permute.xlu0 %812  ;;  %1562 = vmatprep.mubr.bf16.mxu0 %v1291_v58  ;;  %v884_v48 = vrot.slane %v580_v63, 1 }
  0xa7   : > { %v1121_v10 = vsel %vm1095_vm4, %v2638_v54, %v813_v24  ;;  %1563 = vmatmul.mubr.bf16.vlgmr.msra.gmra.mrb[0].mxu0 %v1163_v25  ;;  %v464_v24 = vmax.f32 %v410_v42, 0.0  ;;  %v726_v8 = vrot.slane %v724_v17, 1  ;;  %v729_v42 = vshrl.u32 %v3125_v35, 16 }
  0xa8   : > { %1029 = vrot.lane.b32.xlu0 %v3027_v23, %s2445_s17  ;;  %v791_v58 = vpop.permute.xlu1 %790  ;;  %v1154_v22 = vsel %vm1128_vm5, %v1121_v10, %v926_v6  ;;  %v3151_v63 = vsel %vm852_vm2, %v883_v4, %v884_v48 }
  0xa9   : > { %v1199_v6 = vsel %vm1161_vm6, %v1154_v22, %v3030_v44  ;;  %v722_v44 = vor.u32 %v721_v21, %v717_v34  ;;  %v540_v51 = vsel %vm498_vm1, %v464_v24, 0.0  ;;  %v1099_v26 = vsel %vm1095_vm4, %v2571_v0, %v791_v58 }
  0xaa   : > { %915 = vrot.lane.b32.xlu1 %v3010_v40, %s2445_s17  ;;  %v1084_v25 = vpop.permute.xlu0 %1083  ;;  %v582_v7 = vpack.c.bf16 %v540_v51, %v540_v51 }
  0xab   : > { %v1327_v15 = vsel %vm1161_vm6, %v1283_v31, %v1084_v25  ;;  %v3140_v22 = vsel %vm595_vm3, %v722_v44, %v726_v8  ;;  %v886_v8 = vrot.slane %v3125_v35, 1 }
  0xac   : > { %1073 = vrot.lane.b32.xlu0 %v3099_v37, %s2447_s25  ;;  %1658 = vmatprep.mubr.bf16.mxu1 %v1327_v15  ;;  %v904_v16 = vpop.permute.xlu1 %903  ;;  %v733_v15 = vrot.slane %v731_v3, 1 }
  0xad   : > { %1659 = vmatmul.mubr.bf16.vlgmr.msra.gmra.mrb[0].mxu1 %v1199_v6  ;;  %v1132_v25 = vsel %vm1128_vm5, %v1099_v26, %v904_v16 }
  0xae   : > { %948 = vrot.lane.b32.xlu1 %v2981_v39, %s2447_s25  ;;  %v1018_v49 = vpop.permute.xlu0 %1017  ;;  %2350 = vmatpush3.bf16.msra.mxu1 %v2899_v52  ;;  %v734_v34 = vor.u32 %v733_v15, %v729_v42 }
  0xaf   : > { %2351 = vmatprep.subr.bf16.mxu1 %v2432_v57  ;;  %v1261_v52 = vsel %vm1128_vm5, %v1215_v5, %v1018_v49 }
  0xb0   : > { %998 = vrot.lane.b32.xlu0 %v3115_v53, %s2446_s18 }
  0xb2   : > { %804 = vrot.lane.b32.xlu1 %v3047_v11, %s2446_s18  ;;  %v1009_v2 = vpop.permute.xlu0 %1008  ;;  %2352 = vmatpush3.bf16.msra.mxu1 %v2432_v57  ;;  %v736_v57 = vshll.u32 %v582_v7, 16 }
  0xb3   : > { %v1251_v6 = vsel %vm1095_vm4, %v2713_v18, %v1009_v2  ;;  %v887_v2 = vrot.slane %v582_v7, 1 }
  0xb4   : > { %v1062_v10 = vpop.permute.xlu1 %1061  ;;  %1031 = vrot.lane.b32.xlu0 %v3076_v50, %s2445_s17  ;;  %v738_v21 = vrot.slane %v736_v57, 1 }
  0xb5   : > { %v1294_v9 = vsel %vm1161_vm6, %v1261_v52, %v1062_v10  ;;  %v3180_v52 = vsel %vm852_vm2, %v886_v8, %v887_v2 }
  0xb6   : > { %917 = vrot.lane.b32.xlu1 %v3057_v30, %s2445_s17  ;;  %1570 = vmatprep.mubr.bf16.mxu0 %v1294_v9  ;;  %v815_v43 = vpop.permute.xlu0 %814  ;;  %v3172_v44 = vsel %vm595_vm3, %v734_v34, %v738_v21 }
  0xb7   : > { %v1123_v49 = vsel %vm1095_vm4, %v2601_v27, %v815_v43 }
  0xb8   : > { %v937_v31 = vpop.permute.xlu1 %936  ;;  %1075 = vrot.lane.b32.xlu0 %v3140_v22, %s2447_s25 }
  0xb9   : > { %v1166_v47 = vsel %vm1161_vm6, %v1132_v25, %v937_v31 }
  0xba   : > { %950 = vrot.lane.b32.xlu1 %v3027_v23, %s2447_s25  ;;  %1571 = vmatmul.mubr.bf16.gmra.mrb[4].mxu0 %v1166_v47  ;;  %v1042_v0 = vpop.permute.xlu0 %1041 }
  0xbb   : > { %v1285_v17 = vsel %vm1128_vm5, %v1251_v6, %v1042_v0 }
  0xbc   : > { %v928_v58 = vpop.permute.xlu1 %927  ;;  %1000 = vrot.lane.b32.xlu0 %v3151_v63, %s2446_s18 }
  0xbd   : > { %v1156_v14 = vsel %vm1128_vm5, %v1123_v49, %v928_v58 }
  0xbe   : > { %806 = vrot.lane.b32.xlu1 %v3099_v37, %s2446_s18  ;;  %v1086_v29 = vpop.permute.xlu0 %1085 }
  0xbf   : > { %v1330_v16 = vsel %vm1161_vm6, %v1285_v17, %v1086_v29 }
  0xc0   : > { %v961_v24 = vpop.permute.xlu1 %960  ;;  %1033 = vrot.lane.b32.xlu0 %v3125_v35, %s2445_s17  ;;  %1666 = vmatprep.mubr.bf16.mxu1 %v1330_v16 }
  0xc1   : > { %v1202_v18 = vsel %vm1161_vm6, %v1156_v14, %v961_v24 }
  0xc2   : > { %919 = vrot.lane.b32.xlu1 %v3115_v53, %s2445_s17  ;;  %1667 = vmatmul.mubr.bf16.gmra.mrb[4].mxu1 %v1202_v18  ;;  %v987_v51 = vpop.permute.xlu0 %986 }
  0xc3   : > { %v1218_v9 = vsel %vm1095_vm4, %v2758_v13, %v987_v51 }
  0xc4   : > { %v793_v5 = vpop.permute.xlu1 %792  ;;  %1077 = vrot.lane.b32.xlu0 %v3172_v44, %s2447_s25 }
  0xc5   : > { %v1101_v25 = vsel %vm1095_vm4, %v2564_v60, %v793_v5 }
  0xc6   : > { %952 = vrot.lane.b32.xlu1 %v3076_v50, %s2447_s25  ;;  %v1020_v10 = vpop.permute.xlu0 %1019 }
  0xc7   : > { %v1263_v7 = vsel %vm1128_vm5, %v1218_v9, %v1020_v10 }
  0xc8   : > { %v906_v4 = vpop.permute.xlu1 %905  ;;  %1002 = vrot.lane.b32.xlu0 %v3180_v52, %s2446_s18 }
  0xc9   : > { %v1134_v31 = vsel %vm1128_vm5, %v1101_v25, %v906_v4 }
  0xca   : > { %808 = vrot.lane.b32.xlu1 %v3140_v22, %s2446_s18  ;;  %v1011_v48 = vpop.permute.xlu0 %1010 }
  0xcb   : > { %v1254_v60 = vsel %vm1095_vm4, %v2783_v41, %v1011_v48 }
  0xcc   : > { %v1064_v3 = vpop.permute.xlu1 %1063  ;;  %1035 = vrot.lane.b32.xlu0 %v2638_v54, %s2445_s17 }
  0xcd   : > { %v1297_v43 = vsel %vm1161_vm6, %v1263_v7, %v1064_v3 }
  0xce   : > { %921 = vrot.lane.b32.xlu1 %v3151_v63, %s2445_s17  ;;  %1578 = vmatprep.mubr.bf16.mxu0 %v1297_v43  ;;  %v817_v26 = vpop.permute.xlu0 %816 }
  0xcf   : > { %v1125_v58 = vsel %vm1095_vm4, %v2562_v59, %v817_v26 }
  0xd0   : > { %v939_v47 = vpop.permute.xlu1 %938  ;;  %1079 = vrot.lane.b32.xlu0 %v2687_v45, %s2447_s25 }
  0xd1   : > { %v1169_v13 = vsel %vm1161_vm6, %v1134_v31, %v939_v47 }
  0xd2   : > { %954 = vrot.lane.b32.xlu1 %v3125_v35, %s2447_s25  ;;  %1579 = vmatmul.mubr.bf16.gmra.mrb[8].mxu0 %v1169_v13  ;;  %v1044_v42 = vpop.permute.xlu0 %1043 }
  0xd3   : > { %v1287_v57 = vsel %vm1128_vm5, %v1254_v60, %v1044_v42 }
  0xd4   : > { %v930_v15 = vpop.permute.xlu1 %929  ;;  %1004 = vrot.lane.b32.xlu0 %v2663_v19, %s2446_s18 }
  0xd5   : > { %v1158_v34 = vsel %vm1128_vm5, %v1125_v58, %v930_v15  ;;  %v3474_v58 = vld [vmem:[#allocation10_spill] sm:$0xff] }
  0xd6   : > { %810 = vrot.lane.b32.xlu1 %v3172_v44, %s2446_s18  ;;  %v1088_v0 = vpop.permute.xlu0 %1087 }
  0xd7   : > { %v1333_v6 = vsel %vm1161_vm6, %v1287_v57, %v1088_v0 }
  0xd8   : > { %v963_v21 = vpop.permute.xlu1 %962  ;;  %1037 = vrot.lane.b32.xlu0 %v2601_v27, %s2445_s17  ;;  %1674 = vmatprep.mubr.bf16.mxu1 %v1333_v6 }
  0xd9   : > { %v1205_v41 = vsel %vm1161_vm6, %v1158_v34, %v963_v21  ;;  %v3475_v21 = vld [vmem:[#allocation6_spill] sm:$0xff] }
  0xda   : > { %923 = vrot.lane.b32.xlu1 %v3180_v52, %s2445_s17  ;;  %1675 = vmatmul.mubr.bf16.gmra.mrb[8].mxu1 %v1205_v41  ;;  %v989_v17 = vpop.permute.xlu0 %988  ;;  %s2146_s17 = sshll.u32 %s3484_s16, 7 }
  0xdb   : > { %v1221_v27 = vsel %vm1095_vm4, %v2829_v33, %v989_v17 }
  0xdc   : > { %v795_v29 = vpop.permute.xlu1 %794  ;;  %1081 = vrot.lane.b32.xlu0 %v2747_v61, %s2447_s25 }
  0xdd   : > { %v1103_v2 = vsel %vm1095_vm4, %v2715_v20, %v795_v29 }
  0xde   : > { %956 = vrot.lane.b32.xlu1 %v2638_v54, %s2447_s25  ;;  %v1022_v59 = vpop.permute.xlu0 %1021  ;;  %s3356_s25 = scalar_lea.vmem %s3455_s4, %s2146_s17 }
  0xdf   : > { %v1265_v14 = vsel %vm1128_vm5, %v1221_v27, %v1022_v59 }
  0xe0   : > { %v908_v49 = vpop.permute.xlu1 %907 }
  0xe1   : > { %v1136_v61 = vsel %vm1128_vm5, %v1103_v2, %v908_v49 }
  0xe2   : > { %v1013_v16 = vpop.permute.xlu0 %1012 }
  0xe3   : > { %v1257_v33 = vsel %vm1095_vm4, %v2852_v56, %v1013_v16 }
  0xe4   : > { %v1066_v24 = vpop.permute.xlu1 %1065 }
  0xe5   : > { %v1300_v18 = vsel %vm1161_vm6, %v1265_v14, %v1066_v24 }
  0xe6   : > { %1586 = vmatprep.mubr.bf16.mxu0 %v1300_v18  ;;  %v819_v8 = vpop.permute.xlu0 %818 }
  0xe7   : > { %v1127_v9 = vsel %vm1095_vm4, %v2749_v62, %v819_v8  ;;  %v3476_v8 = vld [vmem:[#allocation8_spill] sm:$0xff] }
  0xe8   : > { %v941_v51 = vpop.permute.xlu1 %940 }
  0xe9   : > { %v1172_v54 = vsel %vm1161_vm6, %v1136_v61, %v941_v51 }
  0xea   : > { %1587 = vmatmul.mubr.bf16.gmra.mrb[12].mxu0 %v1172_v54  ;;  %v1046_v5 = vpop.permute.xlu0 %1045 }
  0xeb   : > { %v1289_v4 = vsel %vm1128_vm5, %v1257_v33, %v1046_v5 }
  0xec   : > { %v932_v10 = vpop.permute.xlu1 %931 }
  0xed   : > { %v1160_v20 = vsel %vm1128_vm5, %v1127_v9, %v932_v10 }
  0xee   : > { %v1090_v48 = vpop.permute.xlu0 %1089 }
  0xef   : > { %v1336_v7 = vsel %vm1161_vm6, %v1289_v4, %v1090_v48  ;;  %v3477_v4 = vld [vmem:[#allocation9_spill] sm:$0xff] }
  0xf0   : > { %v965_v3 = vpop.permute.xlu1 %964  ;;  %1682 = vmatprep.mubr.bf16.mxu1 %v1336_v7 }
  0xf1   : > { %v1208_v43 = vsel %vm1161_vm6, %v1160_v20, %v965_v3 }
  0xf2   : > { %1683 = vmatmul.mubr.bf16.gmra.mrb[12].mxu1 %v1208_v43  ;;  %v991_v26 = vpop.permute.xlu0 %990 }
  0xf3   : > { %2353 = vmatprep.mubr.msk.bf16.mxu1 %vm1095_vm4, %v2676_v36  ;;  %v1224_v47 = vsel %vm1095_vm4, %v2891_v46, %v991_v26 }
  0xf4   : > { %v797_v56 = vpop.permute.xlu1 %796 }
  0xf5   : > { %v1105_v42 = vsel %vm1095_vm4, %v2775_v38, %v797_v56 }
  0xf6   : > { %v1024_v25 = vpop.permute.xlu0 %1023 }
  0xf7   : > { %v1267_v62 = vsel %vm1128_vm5, %v1224_v47, %v1024_v25  ;;  %v3480_v47 = vld [vmem:[#allocation5_spill] sm:$0xff] }
  0xf8   : > { %v910_v31 = vpop.permute.xlu1 %909 }
  0xf9   : > { %v1138_v36 = vsel %vm1128_vm5, %v1105_v42, %v910_v31 }
  0xfa   : > { %2354 = vmatmul.mubr.msk.bf16.vlgmr.msra.gmra.mrb[16].mxu1 %vm1095_vm4, %v2798_v55  ;;  %v1068_v13 = vpop.permute.xlu0 %1067 }
  0xfb   : > { %v1303_v15 = vsel %vm1161_vm6, %v1267_v62, %v1068_v13  ;;  %2357 = vmatprep.mubr.msk.bf16.mxu1 %vm1095_vm4, %v2865_v12 }
  0xfc   : > { %v943_v60 = vpop.permute.xlu1 %942  ;;  %1594 = vmatprep.mubr.bf16.mxu0 %v1303_v15  ;;  %v3481_v15 = vld [vmem:[#allocation7_spill] sm:$0xff] }
  0xfd   : > { %v1175_v46 = vsel %vm1161_vm6, %v1138_v36, %v943_v60 }
  0xfe   : > { %1595 = vmatmul.mubr.bf16.gmra.mrb[16].mxu0 %v1175_v46  ;;  %v993_v57 = vpop.permute.xlu0 %992 }
  0xff   : > { %v1227_v12 = vsel %vm1095_vm4, %v3474_v58, %v993_v57 }
 0x100   : > { %v799_v0 = vpop.permute.xlu1 %798 }
 0x101   : > { %v1107_v41 = vsel %vm1095_vm4, %v3475_v21, %v799_v0  ;;  %v3482_v0 = vld [vmem:[#allocation2_spill] sm:$0xff] }
 0x102   : > { %2358 = vmatmul.mubr.msk.bf16.gmra.mrb[20].mxu1 %vm1095_vm4, %v2932_v1  ;;  %v1026_v55 = vpop.permute.xlu0 %1025 }
 0x103   : > { %2361 = vmatprep.mubr.msk.bf16.mxu1 %vm1095_vm4, %v2967_v28  ;;  %v1269_v6 = vsel %vm1128_vm5, %v1227_v12, %v1026_v55 }
 0x104   : > { %v912_v38 = vpop.permute.xlu1 %911 }
 0x105   : > { %v1140_v29 = vsel %vm1128_vm5, %v1107_v41, %v912_v38 }
 0x106   : > { %v1070_v34 = vpop.permute.xlu0 %1069 }
 0x107   : > { %v1306_v17 = vsel %vm1161_vm6, %v1269_v6, %v1070_v34 }
 0x108   : > { %v945_v59 = vpop.permute.xlu1 %944  ;;  %1602 = vmatprep.mubr.bf16.mxu0 %v1306_v17 }
 0x109   : > { %v1178_v1 = vsel %vm1161_vm6, %v1140_v29, %v945_v59 }
 0x10a   : > { %1603 = vmatmul.mubr.bf16.gmra.mrb[20].mxu0 %v1178_v1  ;;  %2362 = vmatmul.mubr.msk.bf16.gmra.mrb[24].mxu1 %vm1095_vm4, %v3010_v40  ;;  %v995_v28 = vpop.permute.xlu0 %994 }
 0x10b   : > { %2365 = vmatprep.mubr.msk.bf16.mxu1 %vm1095_vm4, %v3057_v30  ;;  %v1230_v14 = vsel %vm1095_vm4, %v2997_v32, %v995_v28 }
 0x10c   : > { %v801_v49 = vpop.permute.xlu1 %800 }
 0x10d   : > { %v1109_v2 = vsel %vm1095_vm4, %v3476_v8, %v801_v49 }
 0x10e   : > { %v1028_v16 = vpop.permute.xlu0 %1027 }
 0x10f   : > { %v1271_v24 = vsel %vm1128_vm5, %v1230_v14, %v1028_v16 }
 0x110   : > { %v914_v27 = vpop.permute.xlu1 %913 }
 0x111   : > { %v1142_v30 = vsel %vm1128_vm5, %v1109_v2, %v914_v27 }
 0x112   : > { %2366 = vmatmul.mubr.msk.bf16.gmra.mrb[28].mxu1 %vm1095_vm4, %v3115_v53  ;;  %v1072_v18 = vpop.permute.xlu0 %1071 }
 0x113   : > { %v1309_v40 = vsel %vm1161_vm6, %v1271_v24, %v1072_v18  ;;  %2369 = vmatprep.mubr.msk.bf16.mxu1 %vm1095_vm4, %v3151_v63 }
 0x114   : > { %v947_v61 = vpop.permute.xlu1 %946  ;;  %1610 = vmatprep.mubr.bf16.mxu0 %v1309_v40 }
 0x115   : > { %v1181_v32 = vsel %vm1161_vm6, %v1142_v30, %v947_v61 }
 0x116   : > { %1611 = vmatmul.mubr.bf16.gmra.mrb[24].mxu0 %v1181_v32  ;;  %v997_v51 = vpop.permute.xlu0 %996 }
 0x117   : > { %v1233_v63 = vsel %vm1095_vm4, %v3047_v11, %v997_v51  ;;  %v3479_v11 = vld [vmem:[#allocation4_spill] sm:$0xff] }
 0x118   : > { %v803_v54 = vpop.permute.xlu1 %802 }
 0x119   : > { %v1111_v48 = vsel %vm1095_vm4, %v3477_v4, %v803_v54 }
 0x11a   : > { %2370 = vmatmul.mubr.msk.bf16.gmra.mrb[32].mxu1 %vm1095_vm4, %v3180_v52  ;;  %v1030_v53 = vpop.permute.xlu0 %1029 }
 0x11b   : > { %2373 = vmatprep.mubr.msk.bf16.mxu1 %vm1095_vm4, %v2663_v19  ;;  %v1273_v10 = vsel %vm1128_vm5, %v1233_v63, %v1030_v53  ;;  %v3478_v19 = vld [vmem:[#allocation3_spill] sm:$0xff] }
 0x11c   : > { %v916_v5 = vpop.permute.xlu1 %915 }
 0x11d   : > { %v1144_v7 = vsel %vm1128_vm5, %v1111_v48, %v916_v5 }
 0x11e   : > { %v1074_v33 = vpop.permute.xlu0 %1073 }
 0x11f   : > { %v1312_v9 = vsel %vm1161_vm6, %v1273_v10, %v1074_v33 }
 0x120   : > { %v949_v20 = vpop.permute.xlu1 %948  ;;  %1618 = vmatprep.mubr.bf16.mxu0 %v1312_v9 }
 0x121   : > { %v1184_v52 = vsel %vm1161_vm6, %v1144_v7, %v949_v20 }
 0x122   : > { %1619 = vmatmul.mubr.bf16.gmra.mrb[28].mxu0 %v1184_v52  ;;  %2374 = vmatmul.mubr.msk.bf16.gmra.mrb[36].mxu1 %vm1095_vm4, %v3478_v19  ;;  %v999_v3 = vpop.permute.xlu0 %998 }
 0x123   : > { %2377 = vmatprep.mubr.msk.bf16.mxu1 %vm1095_vm4, %v3479_v11  ;;  %v1236_v25 = vsel %vm1095_vm4, %v3099_v37, %v999_v3 }
 0x124   : > { %v805_v43 = vpop.permute.xlu1 %804 }
 0x125   : > { %v1113_v13 = vsel %vm1095_vm4, %v2981_v39, %v805_v43 }
 0x126   : > { %v1032_v26 = vpop.permute.xlu0 %1031 }
 0x127   : > { %v1275_v31 = vsel %vm1128_vm5, %v1236_v25, %v1032_v26 }
 0x128   : > { %v918_v56 = vpop.permute.xlu1 %917 }
 0x129   : > { %v1146_v36 = vsel %vm1128_vm5, %v1113_v13, %v918_v56 }
 0x12a   : > { %2378 = vmatmul.mubr.msk.bf16.gmra.mrb[40].mxu1 %vm1095_vm4, %v3480_v47  ;;  %v1076_v62 = vpop.permute.xlu0 %1075 }
 0x12b   : > { %v1315_v42 = vsel %vm1161_vm6, %v1275_v31, %v1076_v62  ;;  %2381 = vmatprep.mubr.msk.bf16.mxu1 %vm1095_vm4, %v3481_v15 }
 0x12c   : > { %v951_v60 = vpop.permute.xlu1 %950  ;;  %1626 = vmatprep.mubr.bf16.mxu0 %v1315_v42 }
 0x12d   : > { %v1187_v37 = vsel %vm1161_vm6, %v1146_v36, %v951_v60 }
 0x12e   : > { %1627 = vmatmul.mubr.bf16.gmra.mrb[32].mxu0 %v1187_v37  ;;  %v1001_v46 = vpop.permute.xlu0 %1000 }
 0x12f   : > { %v1239_v39 = vsel %vm1095_vm4, %v3140_v22, %v1001_v46 }
 0x130   : > { %v807_v57 = vpop.permute.xlu1 %806 }
 0x131   : > { %v1115_v6 = vsel %vm1095_vm4, %v3027_v23, %v807_v57 }
 0x132   : > { %2382 = vmatmul.mubr.msk.bf16.gmra.mrb[44].mxu1 %vm1095_vm4, %v3482_v0  ;;  %v1034_v55 = vpop.permute.xlu0 %1033 }
 0x133   : > { %v1277_v58 = vsel %vm1128_vm5, %v1239_v39, %v1034_v55 }
 0x134   : > { %v920_v38 = vpop.permute.xlu1 %919 }
 0x135   : > { %v1148_v21 = vsel %vm1128_vm5, %v1115_v6, %v920_v38 }
 0x136   : > { %v1078_v12 = vpop.permute.xlu0 %1077 }
 0x137   : > { %v1318_v34 = vsel %vm1161_vm6, %v1277_v58, %v1078_v12 }
 0x138   : > { %v953_v41 = vpop.permute.xlu1 %952  ;;  %1634 = vmatprep.mubr.bf16.mxu0 %v1318_v34 }
 0x139   : > { %v1190_v17 = vsel %vm1161_vm6, %v1148_v21, %v953_v41 }
 0x13a   : > { %1635 = vmatmul.mubr.bf16.gmra.mrb[36].mxu0 %v1190_v17  ;;  %v1003_v29 = vpop.permute.xlu0 %1002 }
 0x13b   : > { %v1242_v22 = vsel %vm1095_vm4, %v3172_v44, %v1003_v29 }
 0x13c   : > { %v809_v59 = vpop.permute.xlu1 %808 }
 0x13d   : > { %v1117_v23 = vsel %vm1095_vm4, %v3076_v50, %v809_v59 }
 0x13e   : > { %v1036_v1 = vpop.permute.xlu0 %1035 }
 0x13f   : > { %v1279_v49 = vsel %vm1128_vm5, %v1242_v22, %v1036_v1 }
 0x140   : > { %v922_v28 = vpop.permute.xlu1 %921 }
 0x141   : > { %v1150_v14 = vsel %vm1128_vm5, %v1117_v23, %v922_v28 }
 0x142   : > { %v1080_v16 = vpop.permute.xlu0 %1079 }
 0x143   : > { %v1321_v27 = vsel %vm1161_vm6, %v1279_v49, %v1080_v16 }
 0x144   : > { %v955_v24 = vpop.permute.xlu1 %954  ;;  %1642 = vmatprep.mubr.bf16.mxu0 %v1321_v27 }
 0x145   : > { %v1193_v18 = vsel %vm1161_vm6, %v1150_v14, %v955_v24 }
 0x146   : > { %1643 = vmatmul.mubr.bf16.gmra.mrb[40].mxu0 %v1193_v18  ;;  %v1005_v8 = vpop.permute.xlu0 %1004 }
 0x147   : > { %v1245_v44 = vsel %vm1095_vm4, %v2687_v45, %v1005_v8 }
 0x148   : > { %v811_v2 = vpop.permute.xlu1 %810 }
 0x149   : > { %v1119_v50 = vsel %vm1095_vm4, %v3125_v35, %v811_v2 }
 0x14a   : > { %v1038_v40 = vpop.permute.xlu0 %1037 }
 0x14b   : > { %v1281_v61 = vsel %vm1128_vm5, %v1245_v44, %v1038_v40 }
 0x14c   : > { %v924_v30 = vpop.permute.xlu1 %923 }
 0x14d   : > { %v1152_v54 = vsel %vm1128_vm5, %v1119_v50, %v924_v30 }
 0x14e   : > { %v1082_v32 = vpop.permute.xlu0 %1081 }
 0x14f   : > { %v1324_v51 = vsel %vm1161_vm6, %v1281_v61, %v1082_v32 }
 0x150   : > { %v957_v53 = vpop.permute.xlu1 %956  ;;  %1650 = vmatprep.mubr.bf16.mxu0 %v1324_v51 }
 0x151   : > { %v1196_v5 = vsel %vm1161_vm6, %v1152_v54, %v957_v53 }
 0x152   : > { %1651 = vmatmul.mubr.bf16.gmra.mrb[44].mxu0 %v1196_v5 }
 0x17a   : > { %v2235_v63 = vpop.f32.mrb[0].mxu0 }
 0x17b   : > { %v2236_v10 = vpop.f32.mrb[1].mxu0 }
 0x17c   : > { %v2237_v33 = vadd.f32 %v2236_v10, %v2235_v63  ;;  %v2238_v4 = vpop.f32.mrb[2].mxu0 }
 0x17d   : > { %v2239_v45 = vpop.f32.mrb[3].mxu0 }
 0x17e   : > { %v2240_v48 = vadd.f32 %v2239_v45, %v2238_v4 }
 0x180   : > { %v2307_v9 = vpop.f32.mrb[0].mxu1 }
 0x181   : > { %v2308_v7 = vpop.f32.mrb[1].mxu1 }
 0x182   : > { %v3336_v20 = vadd.f32 %v2308_v7, %v2307_v9  ;;  %v2310_v35 = vpop.f32.mrb[2].mxu1 }
 0x183   : > { %v2311_v52 = vpop.f32.mrb[3].mxu1 }
 0x184   : > { %v3338_v19 = vadd.f32 %v2311_v52, %v2310_v35 }
 0x18d   : > { %v2241_v3 = vpop.f32.mrb[4].mxu0 }
 0x18e   : > { %v2242_v11 = vpop.f32.mrb[5].mxu0 }
 0x18f   : > { %v2243_v43 = vadd.f32 %v2242_v11, %v2241_v3  ;;  %v2244_v26 = vpop.f32.mrb[6].mxu0 }
 0x190   : > { %v2245_v56 = vpop.f32.mrb[7].mxu0 }
 0x191   : > { %v2246_v25 = vadd.f32 %v2245_v56, %v2244_v26 }
 0x195   : > { %v2313_v31 = vpop.f32.mrb[4].mxu1 }
 0x196   : > { %v2314_v47 = vpop.f32.mrb[5].mxu1 }
 0x197   : > { %v3340_v62 = vadd.f32 %v2314_v47, %v2313_v31  ;;  %v2316_v13 = vpop.f32.mrb[6].mxu1 }
 0x198   : > { %v2317_v42 = vpop.f32.mrb[7].mxu1 }
 0x199   : > { %v3342_v15 = vadd.f32 %v2317_v42, %v2316_v13 }
 0x1a5   : > { %v2247_v36 = vpop.f32.mrb[8].mxu0 }
 0x1a6   : > { %v2248_v60 = vpop.f32.mrb[9].mxu0 }
 0x1a7   : > { %v2249_v37 = vadd.f32 %v2248_v60, %v2247_v36  ;;  %v2250_v46 = vpop.f32.mrb[10].mxu0 }
 0x1a8   : > { %v2251_v57 = vpop.f32.mrb[11].mxu0 }
 0x1a9   : > { %v2252_v0 = vadd.f32 %v2251_v57, %v2250_v46 }
 0x1ad   : > { %v2319_v55 = vpop.f32.mrb[8].mxu1 }
 0x1ae   : > { %v2320_v38 = vpop.f32.mrb[9].mxu1 }
 0x1af   : > { %v3344_v39 = vadd.f32 %v2320_v38, %v2319_v55  ;;  %v2322_v58 = vpop.f32.mrb[10].mxu1 }
 0x1b0   : > { %v2323_v12 = vpop.f32.mrb[11].mxu1 }
 0x1b1   : > { %v3346_v6 = vadd.f32 %v2323_v12, %v2322_v58 }
 0x1bd   : > { %v2253_v34 = vpop.f32.mrb[12].mxu0 }
 0x1be   : > { %v2254_v21 = vpop.f32.mrb[13].mxu0 }
 0x1bf   : > { %v2255_v41 = vadd.f32 %v2254_v21, %v2253_v34  ;;  %v2256_v17 = vpop.f32.mrb[14].mxu0 }
 0x1c0   : > { %v2257_v29 = vpop.f32.mrb[15].mxu0 }
 0x1c1   : > { %v2258_v59 = vadd.f32 %v2257_v29, %v2256_v17 }
 0x1c5   : > { %v2325_v1 = vpop.f32.mrb[12].mxu1 }
 0x1c6   : > { %v2326_v28 = vpop.f32.mrb[13].mxu1 }
 0x1c7   : > { %v3348_v22 = vadd.f32 %v2326_v28, %v2325_v1  ;;  %v2328_v49 = vpop.f32.mrb[14].mxu1 }
 0x1c8   : > { %v2329_v16 = vpop.f32.mrb[15].mxu1 }
 0x1c9   : > { %v3350_v23 = vadd.f32 %v2329_v16, %v2328_v49 }
 0x1cd   : > { %v2355_v27 = vpop.f32.mrb[16].mxu1 }
 0x1ce   : > { %v1734_v14 = vadd.f32 %v2355_v27, %v2243_v43  ;;  %v1725_v24 = vpop.f32.mrb[17].mxu1 }
 0x1cf   : > { %v1726_v18 = vadd.f32 %v2237_v33, %v1725_v24  ;;  %v2356_v8 = vpop.f32.mrb[18].mxu1 }
 0x1d0   : > { %v2149_v2 = vpack.c.bf16 %v1734_v14, %v1734_v14  ;;  %v1737_v40 = vadd.f32 %v2356_v8, %v2246_v25  ;;  %v1728_v30 = vpop.f32.mrb[19].mxu1 }
 0x1d1   : > { %v2147_v44 = vpack.c.bf16 %v1726_v18, %v1726_v18  ;;  %v1729_v61 = vadd.f32 %v2240_v48, %v1728_v30  ;;  %v2259_v32 = vpop.f32.mrb[16].mxu0 }
 0x1d2   : > { %1983 = vst.msk [vmem:[%s3356_s25 + $0x8] sm:$0xf] %vm1980_vm7, %v2149_v2  ;;  %v2150_v50 = vpack.c.bf16 %v1737_v40, %v1737_v40  ;;  %v2260_v51 = vpop.f32.mrb[17].mxu0 }
 0x1d3   : > { %1981 = vst.msk [vmem:[%s3356_s25] sm:$0xf] %vm1980_vm7, %v2147_v44  ;;  %v2148_v54 = vpack.c.bf16 %v1729_v61, %v1729_v61  ;;  %v2261_v53 = vadd.f32 %v2260_v51, %v2259_v32  ;;  %v2262_v5 = vpop.f32.mrb[18].mxu0 }
 0x1d4   : > { %1984 = vst.msk [vmem:[%s3356_s25 + $0xc] sm:$0xf] %vm1980_vm7, %v2150_v50  ;;  %v2263_v63 = vpop.f32.mrb[19].mxu0 }
 0x1d5   : > { %1982 = vst.msk [vmem:[%s3356_s25 + $0x4] sm:$0xf] %vm1980_vm7, %v2148_v54  ;;  %v2264_v10 = vadd.f32 %v2263_v63, %v2262_v5  ;;  %v2359_v33 = vpop.f32.mrb[20].mxu1 }
 0x1d6   : > { %v1750_v4 = vadd.f32 %v2359_v33, %v2255_v41  ;;  %v1741_v45 = vpop.f32.mrb[21].mxu1 }
 0x1d7   : > { %v1742_v48 = vadd.f32 %v2249_v37, %v1741_v45  ;;  %v2360_v9 = vpop.f32.mrb[22].mxu1 }
 0x1d8   : > { %v2153_v7 = vpack.c.bf16 %v1750_v4, %v1750_v4  ;;  %v1753_v35 = vadd.f32 %v2360_v9, %v2258_v59  ;;  %v1744_v52 = vpop.f32.mrb[23].mxu1 }
 0x1d9   : > { %v2151_v3 = vpack.c.bf16 %v1742_v48, %v1742_v48  ;;  %v1745_v11 = vadd.f32 %v2252_v0, %v1744_v52 }
 0x1da   : > { %1987 = vst.msk [vmem:[%s3356_s25 + $0x18] sm:$0xf] %vm1980_vm7, %v2153_v7  ;;  %v2154_v43 = vpack.c.bf16 %v1753_v35, %v1753_v35 }
 0x1db   : > { %1985 = vst.msk [vmem:[%s3356_s25 + $0x10] sm:$0xf] %vm1980_vm7, %v2151_v3  ;;  %v2152_v26 = vpack.c.bf16 %v1745_v11, %v1745_v11 }
 0x1dc   : > { %1988 = vst.msk [vmem:[%s3356_s25 + $0x1c] sm:$0xf] %vm1980_vm7, %v2154_v43 }
 0x1dd   : > { %1986 = vst.msk [vmem:[%s3356_s25 + $0x14] sm:$0xf] %vm1980_vm7, %v2152_v26  ;;  %v2265_v56 = vpop.f32.mrb[20].mxu0  ;;  %v2363_v25 = vpop.f32.mrb[24].mxu1 }
 0x1de   : > { %v2266_v31 = vpop.f32.mrb[21].mxu0  ;;  %v1757_v47 = vpop.f32.mrb[25].mxu1 }
 0x1df   : > { %v2267_v13 = vadd.f32 %v2266_v31, %v2265_v56  ;;  %v1758_v42 = vadd.f32 %v2261_v53, %v1757_v47  ;;  %v2268_v36 = vpop.f32.mrb[22].mxu0  ;;  %v2364_v60 = vpop.f32.mrb[26].mxu1 }
 0x1e0   : > { %v2269_v37 = vpop.f32.mrb[23].mxu0  ;;  %v1760_v46 = vpop.f32.mrb[27].mxu1 }
 0x1e1   : > { %v1766_v57 = vadd.f32 %v2363_v25, %v2267_v13  ;;  %v2155_v0 = vpack.c.bf16 %v1758_v42, %v1758_v42  ;;  %v2270_v55 = vadd.f32 %v2269_v37, %v2268_v36  ;;  %v1761_v38 = vadd.f32 %v2264_v10, %v1760_v46 }
 0x1e3   : > { %v2157_v58 = vpack.c.bf16 %v1766_v57, %v1766_v57  ;;  %1989 = vst.msk [vmem:[%s3356_s25 + $0x20] sm:$0xf] %vm1980_vm7, %v2155_v0  ;;  %v1769_v12 = vadd.f32 %v2364_v60, %v2270_v55  ;;  %v2156_v34 = vpack.c.bf16 %v1761_v38, %v1761_v38 }
 0x1e5   : > { %1991 = vst.msk [vmem:[%s3356_s25 + $0x28] sm:$0xf] %vm1980_vm7, %v2157_v58  ;;  %v2158_v21 = vpack.c.bf16 %v1769_v12, %v1769_v12  ;;  %1990 = vst.msk [vmem:[%s3356_s25 + $0x24] sm:$0xf] %vm1980_vm7, %v2156_v34  ;;  %v2367_v41 = vpop.f32.mrb[28].mxu1 }
 0x1e6   : > { %v1773_v17 = vpop.f32.mrb[29].mxu1 }
 0x1e7   : > { %1992 = vst.msk [vmem:[%s3356_s25 + $0x2c] sm:$0xf] %vm1980_vm7, %v2158_v21  ;;  %v2368_v29 = vpop.f32.mrb[30].mxu1 }
 0x1e8   : > { %v1776_v59 = vpop.f32.mrb[31].mxu1 }
 0x1e9   : > { %v2271_v1 = vpop.f32.mrb[24].mxu0 }
 0x1ea   : > { %v2272_v28 = vpop.f32.mrb[25].mxu0 }
 0x1eb   : > { %v2273_v49 = vadd.f32 %v2272_v28, %v2271_v1  ;;  %v2274_v16 = vpop.f32.mrb[26].mxu0 }
 0x1ec   : > { %v2275_v27 = vpop.f32.mrb[27].mxu0 }
 0x1ed   : > { %v2276_v14 = vadd.f32 %v2275_v27, %v2274_v16  ;;  %v1774_v24 = vadd.f32 %v2273_v49, %v1773_v17  ;;  %v3382_v18 = vpop.f32.mrb[32].mxu1 }
 0x1ee   : > { %v1789_v8 = vpop.f32.mrb[33].mxu1 }
 0x1ef   : > { %v2159_v2 = vpack.c.bf16 %v1774_v24, %v1774_v24  ;;  %v1777_v40 = vadd.f32 %v2276_v14, %v1776_v59  ;;  %v3384_v30 = vpop.f32.mrb[34].mxu1 }
 0x1f0   : > { %v1792_v44 = vpop.f32.mrb[35].mxu1 }
 0x1f1   : > { %1993 = vst.msk [vmem:[%s3356_s25 + $0x30] sm:$0xf] %vm1980_vm7, %v2159_v2  ;;  %v2160_v61 = vpack.c.bf16 %v1777_v40, %v1777_v40 }
 0x1f3   : > { %1994 = vst.msk [vmem:[%s3356_s25 + $0x34] sm:$0xf] %vm1980_vm7, %v2160_v61 }
 0x1f5   : > { %v2277_v32 = vpop.f32.mrb[28].mxu0  ;;  %v3390_v50 = vpop.f32.mrb[36].mxu1 }
 0x1f6   : > { %v2278_v51 = vpop.f32.mrb[29].mxu0  ;;  %v3392_v54 = vpop.f32.mrb[37].mxu1 }
 0x1f7   : > { %v2279_v53 = vadd.f32 %v2278_v51, %v2277_v32  ;;  %v2280_v5 = vpop.f32.mrb[30].mxu0  ;;  %v3394_v63 = vpop.f32.mrb[38].mxu1 }
 0x1f8   : > { %v2281_v10 = vpop.f32.mrb[31].mxu0  ;;  %v3396_v33 = vpop.f32.mrb[39].mxu1 }
 0x1f9   : > { %v1782_v4 = vadd.f32 %v2367_v41, %v2279_v53  ;;  %v2282_v45 = vadd.f32 %v2281_v10, %v2280_v5 }
 0x1fb   : > { %v2161_v48 = vpack.c.bf16 %v1782_v4, %v1782_v4  ;;  %v1785_v9 = vadd.f32 %v2368_v29, %v2282_v45 }
 0x1fd   : > { %1995 = vst.msk [vmem:[%s3356_s25 + $0x38] sm:$0xf] %vm1980_vm7, %v2161_v48  ;;  %v2162_v7 = vpack.c.bf16 %v1785_v9, %v1785_v9  ;;  %v2379_v35 = vpop.f32.mrb[40].mxu1 }
 0x1fe   : > { %v1830_v52 = vadd.f32 %v2379_v35, %v3340_v62  ;;  %v1821_v3 = vpop.f32.mrb[41].mxu1 }
 0x1ff   : > { %1996 = vst.msk [vmem:[%s3356_s25 + $0x3c] sm:$0xf] %vm1980_vm7, %v2162_v7  ;;  %v1822_v11 = vadd.f32 %v3336_v20, %v1821_v3  ;;  %v2380_v43 = vpop.f32.mrb[42].mxu1 }
 0x200   : > { %v2173_v26 = vpack.c.bf16 %v1830_v52, %v1830_v52  ;;  %v1833_v56 = vadd.f32 %v2380_v43, %v3342_v15  ;;  %v1824_v25 = vpop.f32.mrb[43].mxu1 }
 0x201   : > { %v2171_v31 = vpack.c.bf16 %v1822_v11, %v1822_v11  ;;  %v1825_v47 = vadd.f32 %v3338_v19, %v1824_v25  ;;  %v2283_v13 = vpop.f32.mrb[32].mxu0 }
 0x202   : > { %2007 = vst.msk [vmem:[%s3356_s25 + $0x68] sm:$0xf] %vm1980_vm7, %v2173_v26  ;;  %v2174_v42 = vpack.c.bf16 %v1833_v56, %v1833_v56  ;;  %v2284_v62 = vpop.f32.mrb[33].mxu0 }
 0x203   : > { %2005 = vst.msk [vmem:[%s3356_s25 + $0x60] sm:$0xf] %vm1980_vm7, %v2171_v31  ;;  %v2172_v36 = vpack.c.bf16 %v1825_v47, %v1825_v47  ;;  %v2285_v60 = vadd.f32 %v2284_v62, %v2283_v13  ;;  %v2286_v37 = vpop.f32.mrb[34].mxu0 }
 0x204   : > { %2008 = vst.msk [vmem:[%s3356_s25 + $0x6c] sm:$0xf] %vm1980_vm7, %v2174_v42  ;;  %v2287_v20 = vpop.f32.mrb[35].mxu0 }
 0x205   : > { %2006 = vst.msk [vmem:[%s3356_s25 + $0x64] sm:$0xf] %vm1980_vm7, %v2172_v36  ;;  %v1790_v15 = vadd.f32 %v2285_v60, %v1789_v8  ;;  %v2288_v46 = vadd.f32 %v2287_v20, %v2286_v37  ;;  %v2383_v19 = vpop.f32.mrb[44].mxu1 }
 0x206   : > { %v1846_v57 = vadd.f32 %v2383_v19, %v3348_v22  ;;  %v1837_v0 = vpop.f32.mrb[45].mxu1 }
 0x207   : > { %v2163_v55 = vpack.c.bf16 %v1790_v15, %v1790_v15  ;;  %v1793_v38 = vadd.f32 %v2288_v46, %v1792_v44  ;;  %v1838_v58 = vadd.f32 %v3344_v39, %v1837_v0  ;;  %v2384_v12 = vpop.f32.mrb[46].mxu1 }
 0x208   : > { %v2177_v34 = vpack.c.bf16 %v1846_v57, %v1846_v57  ;;  %v1849_v21 = vadd.f32 %v2384_v12, %v3350_v23  ;;  %v1840_v41 = vpop.f32.mrb[47].mxu1 }
 0x209   : > { %1997 = vst.msk [vmem:[%s3356_s25 + $0x40] sm:$0xf] %vm1980_vm7, %v2163_v55  ;;  %v2164_v17 = vpack.c.bf16 %v1793_v38, %v1793_v38  ;;  %v2175_v29 = vpack.c.bf16 %v1838_v58, %v1838_v58  ;;  %v1841_v59 = vadd.f32 %v3346_v6, %v1840_v41 }
 0x20a   : > { %2011 = vst.msk [vmem:[%s3356_s25 + $0x78] sm:$0xf] %vm1980_vm7, %v2177_v34  ;;  %v2178_v22 = vpack.c.bf16 %v1849_v21, %v1849_v21 }
 0x20b   : > { %1998 = vst.msk [vmem:[%s3356_s25 + $0x44] sm:$0xf] %vm1980_vm7, %v2164_v17  ;;  %2009 = vst.msk [vmem:[%s3356_s25 + $0x70] sm:$0xf] %vm1980_vm7, %v2175_v29  ;;  %v2176_v39 = vpack.c.bf16 %v1841_v59, %v1841_v59 }
 0x20c   : > { %2012 = vst.msk [vmem:[%s3356_s25 + $0x7c] sm:$0xf] %vm1980_vm7, %v2178_v22 }
 0x20d   : > { %2010 = vst.msk [vmem:[%s3356_s25 + $0x74] sm:$0xf] %vm1980_vm7, %v2176_v39  ;;  %v2289_v23 = vpop.f32.mrb[36].mxu0 }
 0x20e   : > { %v2290_v1 = vpop.f32.mrb[37].mxu0 }
 0x20f   : > { %v2291_v28 = vadd.f32 %v2290_v1, %v2289_v23  ;;  %v2292_v49 = vpop.f32.mrb[38].mxu0 }
 0x210   : > { %v2293_v16 = vpop.f32.mrb[39].mxu0 }
 0x211   : > { %v1798_v6 = vadd.f32 %v3382_v18, %v2291_v28  ;;  %v2294_v27 = vadd.f32 %v2293_v16, %v2292_v49 }
 0x213   : > { %v2165_v14 = vpack.c.bf16 %v1798_v6, %v1798_v6  ;;  %v1801_v24 = vadd.f32 %v3384_v30, %v2294_v27 }
 0x215   : > { %1999 = vst.msk [vmem:[%s3356_s25 + $0x48] sm:$0xf] %vm1980_vm7, %v2165_v14  ;;  %v2166_v8 = vpack.c.bf16 %v1801_v24, %v1801_v24 }
 0x217   : > { %2000 = vst.msk [vmem:[%s3356_s25 + $0x4c] sm:$0xf] %vm1980_vm7, %v2166_v8 }
 0x219   : > { %v2295_v2 = vpop.f32.mrb[40].mxu0 }
 0x21a   : > { %v2296_v40 = vpop.f32.mrb[41].mxu0 }
 0x21b   : > { %v2297_v44 = vadd.f32 %v2296_v40, %v2295_v2  ;;  %v2298_v61 = vpop.f32.mrb[42].mxu0 }
 0x21c   : > { %v2299_v32 = vpop.f32.mrb[43].mxu0 }
 0x21d   : > { %v1806_v51 = vadd.f32 %v2297_v44, %v3392_v54  ;;  %v2300_v18 = vadd.f32 %v2299_v32, %v2298_v61 }
 0x21f   : > { %v2167_v53 = vpack.c.bf16 %v1806_v51, %v1806_v51  ;;  %v1809_v5 = vadd.f32 %v2300_v18, %v3396_v33 }
 0x221   : > { %2001 = vst.msk [vmem:[%s3356_s25 + $0x50] sm:$0xf] %vm1980_vm7, %v2167_v53  ;;  %v2168_v30 = vpack.c.bf16 %v1809_v5, %v1809_v5 }
 0x223   : > { %2002 = vst.msk [vmem:[%s3356_s25 + $0x54] sm:$0xf] %vm1980_vm7, %v2168_v30 }
 0x225   : > { %v2301_v10 = vpop.f32.mrb[44].mxu0 }
 0x226   : > { %v2302_v4 = vpop.f32.mrb[45].mxu0 }
 0x227   : > { %v2303_v45 = vadd.f32 %v2302_v4, %v2301_v10  ;;  %v2304_v48 = vpop.f32.mrb[46].mxu0 }
 0x228   : > { %v2305_v9 = vpop.f32.mrb[47].mxu0 }
 0x229   : > { %v1814_v7 = vadd.f32 %v3390_v50, %v2303_v45  ;;  %v2306_v35 = vadd.f32 %v2305_v9, %v2304_v48 }
 0x22b   : > { %v2169_v54 = vpack.c.bf16 %v1814_v7, %v1814_v7  ;;  %v1817_v52 = vadd.f32 %v3394_v63, %v2306_v35 }
 0x22d   : > { %2003 = vst.msk [vmem:[%s3356_s25 + $0x58] sm:$0xf] %vm1980_vm7, %v2169_v54  ;;  %v2170_v3 = vpack.c.bf16 %v1817_v52, %v1817_v52 }
 0x22f   : > { %2004 = vst.msk [vmem:[%s3356_s25 + $0x5c] sm:$0xf] %vm1980_vm7, %v2170_v3 }
 0x230 PF: > { %s14_s15 = sadd.s32 1, %s2441_s15  }
 0x231   : > { %p11_p4 = scmp.ge.s32.totalorder %s14_s15, 4  }
 0x233   :  { %13 = sbr.rel (!%p11_p4) target bundleno = 1 (0x1), region = 66 }

</bundles_post_ra>
